<compile_context>
chip_gen: v7x
topology: tpu7x:2x2x1
jax: 0.10.0
libtpu: 0.0.40
codegen_flags: <defaults>
</compile_context>

<pallas_src>
import functools

import numpy as np
import jax
import jax.numpy as jnp
from jax import lax
from jax.experimental import pallas as pl
from jax.experimental.pallas import tpu as pltpu


# ----------------------------------------------------------------------------
# Pallas kernel: WB windows per grid step, all matmuls batched over windows.
# ----------------------------------------------------------------------------
def window_attn_kernel(x_ref, qkvw_ref, qkvb_ref, scale_ref, bias_ref,
                       projw_ref, projb_ref, o_ref, *, num_heads, wb, n, c):
    H = num_heads
    hd = c // H

    # Fused QKV projection for all WB windows at once: (WB*N, C) @ (C, 3C).
    # Matmul operands in bf16, accumulation in f32.
    x = x_ref[...]                                            # (WB*N, C) f32
    qkv = jnp.dot(x.astype(jnp.bfloat16), qkvw_ref[...],
                  preferred_element_type=jnp.float32)
    qkv = qkv + qkvb_ref[...]                                 # + [q_bias, 0, v_bias]
    qkv = qkv.reshape(wb, n, 3 * c)                           # row split only (cheap)

    pw = projw_ref[...]                                       # (C, C) bf16
    eps2 = jnp.float32(1e-24)                                 # (F.normalize eps)^2
    y = jnp.zeros((wb * n, c), jnp.float32)

    # H is small & static -> unrolled. Every matmul below is batched over the
    # WB windows via a single leading batch dim.
    for h in range(H):
        q = qkv[:, :, h * hd:(h + 1) * hd]                    # (WB, N, hd)
        k = qkv[:, :, c + h * hd:c + (h + 1) * hd]
        v = qkv[:, :, 2 * c + h * hd:2 * c + (h + 1) * hd]

        # F.normalize(..., dim=-1) via rsqrt (EUP); per-head logit scale
        # (exp/clamp hoisted to the wrapper, read from SMEM) folded into q.
        qn = q * (lax.rsqrt(jnp.sum(q * q, axis=-1, keepdims=True) + eps2)
                  * scale_ref[h])
        kn = k * lax.rsqrt(jnp.sum(k * k, axis=-1, keepdims=True) + eps2)

        # Cosine-attention logits + relative-position bias: (WB, N, N).
        attn = jnp.einsum("bnd,bmd->bnm", qn, kn,
                          preferred_element_type=jnp.float32)
        attn = attn + bias_ref[h][None]

        # Row softmax. Keep the row-max: max logit ~ 100*cos + 16 can exceed
        # ln(f32_max) ~ 88, so a constant shift is not safe in general.
        attn = attn - jnp.max(attn, axis=-1, keepdims=True)
        p = jnp.exp(attn)
        p = p * pl.reciprocal(jnp.sum(p, axis=-1, keepdims=True), approx=True)

        ctx = jnp.einsum("bnm,bmd->bnd", p, v,
                         preferred_element_type=jnp.float32)  # (WB, N, hd)

        # Head merge folded into the output projection (no concatenate):
        #   concat_h(ctx_h) @ Wp == sum_h ctx_h @ Wp[h*hd:(h+1)*hd, :]
        y = y + jnp.dot(ctx.reshape(wb * n, hd).astype(jnp.bfloat16),
                        pw[h * hd:(h + 1) * hd, :],
                        preferred_element_type=jnp.float32)

    y = y + projb_ref[...]
    o_ref[...] = y.astype(o_ref.dtype)


# ----------------------------------------------------------------------------
# Wrapper: window batching, padding, lane/sublane-safe blocking.
# ----------------------------------------------------------------------------
def window_attention_pallas(x, qkv_w_t, qkv_b, logit_scale, rel_bias,
                            proj_w_t, proj_b, *, num_heads,
                            windows_per_block=None):
    B, N, C = x.shape
    H = num_heads

    # Batch-independent preprocessing hoisted out of the kernel.
    scale = jnp.exp(jnp.minimum(logit_scale.reshape(-1).astype(jnp.float32),
                                jnp.log(jnp.float32(1.0 / 0.01))))   # (H,)

    # Windows per grid step: large enough to amortize per-step overhead and
    # feed the MXU with (WB*N)-row matmuls, small enough to stay far below the
    # scoped-VMEM budget on v5e/v6e/v7x (a few MiB at WB=128 for N=16, C=32).
    if windows_per_block is None:
        WB = B if B <= 8 else min(128, ((B + 7) // 8) * 8)
    else:
        WB = windows_per_block
    Bp = ((B + WB - 1) // WB) * WB
    if Bp != B:
        # Zero-padded windows compute finite garbage that is sliced off below.
        x = jnp.concatenate([x, jnp.zeros((Bp - B, N, C), x.dtype)], axis=0)

    x2 = x.reshape(Bp * N, C)   # free in HBM; kernel blocks are (WB*N, C)

    kernel = functools.partial(window_attn_kernel,
                               num_heads=H, wb=WB, n=N, c=C)
    out2 = pl.pallas_call(
        kernel,
        out_shape=jax.ShapeDtypeStruct((Bp * N, C), x.dtype),
        grid_spec=pltpu.PrefetchScalarGridSpec(
            num_scalar_prefetch=0,
            grid=(Bp // WB,),
            in_specs=[
                pl.BlockSpec((WB * N, C), lambda b: (b, 0)),         # x windows
                pl.BlockSpec((C, 3 * C), lambda b: (0, 0)),          # qkv weight^T (bf16)
                pl.BlockSpec((1, 3 * C), lambda b: (0, 0)),          # qkv bias
                pl.BlockSpec(memory_space=pltpu.MemorySpace.SMEM),   # per-head logit scale
                pl.BlockSpec((H, N, N), lambda b: (0, 0, 0)),        # rel-pos bias
                pl.BlockSpec((C, C), lambda b: (0, 0)),              # proj weight^T (bf16)
                pl.BlockSpec((1, C), lambda b: (0, 0)),              # proj bias
            ],
            out_specs=pl.BlockSpec((WB * N, C), lambda b: (b, 0)),
        ),
        compiler_params=pltpu.CompilerParams(
            dimension_semantics=("parallel",)),
    )(x2,
      qkv_w_t.astype(jnp.bfloat16),
      qkv_b.reshape(1, -1).astype(jnp.float32),
      scale,
      rel_bias.astype(jnp.float32),
      proj_w_t.astype(jnp.bfloat16),
      proj_b.reshape(1, -1).astype(jnp.float32))

    return out2.reshape(Bp, N, C)[:B]


# ----------------------------------------------------------------------------
# Parameter / buffer construction (deterministic, mirrors __init__).
# ----------------------------------------------------------------------------
def build_relative_tables(window_size):
    Wh, Ww = window_size
    rch = jnp.arange(-(Wh - 1), Wh, dtype=jnp.float32)
    rcw = jnp.arange(-(Ww - 1), Ww, dtype=jnp.float32)
    gh, gw = jnp.meshgrid(rch, rcw, indexing="ij")
    table = jnp.stack([gh, gw], axis=-1)[None]               # (1, 2Wh-1, 2Ww-1, 2)
    table = table.at[..., 0].divide(Wh - 1)
    table = table.at[..., 1].divide(Ww - 1)
    table = table * 8.0
    table = jnp.sign(table) * jnp.log2(jnp.abs(table) + 1.0) / np.log2(8)

    ch, cw = jnp.meshgrid(jnp.arange(Wh), jnp.arange(Ww), indexing="ij")
    coords = jnp.stack([ch, cw]).reshape(2, -1)               # (2, N)
    rel = coords[:, :, None] - coords[:, None, :]             # (2, N, N)
    rel = rel.transpose(1, 2, 0)
    rel = rel.at[..., 0].add(Wh - 1).at[..., 1].add(Ww - 1)
    rel = rel.at[..., 0].multiply(2 * Ww - 1)
    rpi = rel.sum(-1)                                         # (N, N)
    return table, rpi


def build_rel_pos_bias(table, rpi, cpb_w1, cpb_b1, cpb_w2, num_heads, window_size):
    Wh, Ww = window_size
    N = Wh * Ww
    hidden = jax.nn.relu(table @ cpb_w1.T + cpb_b1)           # (1, 2Wh-1, 2Ww-1, 512)
    bias_table = (hidden @ cpb_w2.T).reshape(-1, num_heads)   # ((2Wh-1)(2Ww-1), H)
    rpb = bias_table[rpi.reshape(-1)].reshape(N, N, num_heads).transpose(2, 0, 1)
    return 16.0 * jax.nn.sigmoid(rpb)                         # (H, N, N)


# ----------------------------------------------------------------------------
# Pure-JAX reference (mirrors the PyTorch forward, mask=None path, f32).
# ----------------------------------------------------------------------------
def reference_forward(x, qkv_w_t, qkv_b, logit_scale, rel_bias, proj_w_t, proj_b,
                      num_heads):
    B, N, C = x.shape
    H = num_heads
    hd = C // H
    qkv = x @ qkv_w_t + qkv_b                                  # (B, N, 3C)
    qkv = qkv.reshape(B, N, 3, H, hd).transpose(2, 0, 3, 1, 4)
    q, k, v = qkv[0], qkv[1], qkv[2]
    qn = q / jnp.maximum(jnp.linalg.norm(q, axis=-1, keepdims=True), 1e-12)
    kn = k / jnp.maximum(jnp.linalg.norm(k, axis=-1, keepdims=True), 1e-12)
    attn = jnp.einsum("bhqd,bhkd->bhqk", qn, kn)
    scale = jnp.exp(jnp.minimum(logit_scale, jnp.log(1.0 / 0.01)))  # (H,1,1)
    attn = attn * scale[None] + rel_bias[None]
    attn = jax.nn.softmax(attn, axis=-1)
    out = jnp.einsum("bhqk,bhkd->bhqd", attn, v).transpose(0, 2, 1, 3).reshape(B, N, C)
    return out @ proj_w_t + proj_b


# ----------------------------------------------------------------------------
if __name__ == "__main__":
    dim = 32
    num_heads = 4
    window_size = (4, 4)
    Wh, Ww = window_size
    N = Wh * Ww
    B_ = 16  # number of windows * batch

    key = jax.random.PRNGKey(0)
    ks = jax.random.split(key, 8)

    # parameters (deterministic synthetic init; shapes per nn.Module __init__)
    qkv_w = jax.random.normal(ks[0], (3 * dim, dim), jnp.float32) * 0.1   # nn.Linear(dim, 3*dim)
    q_bias = jax.random.normal(ks[1], (dim,), jnp.float32) * 0.1
    v_bias = jax.random.normal(ks[2], (dim,), jnp.float32) * 0.1
    qkv_b = jnp.concatenate([q_bias, jnp.zeros((dim,), jnp.float32), v_bias])
    logit_scale = jnp.log(10.0 * jnp.ones((num_heads, 1, 1), jnp.float32))
    cpb_w1 = jax.random.normal(ks[3], (512, 2), jnp.float32) * 0.1        # Linear(2, 512)
    cpb_b1 = jax.random.normal(ks[4], (512,), jnp.float32) * 0.1
    cpb_w2 = jax.random.normal(ks[5], (num_heads, 512), jnp.float32) * 0.1  # Linear(512, H, bias=False)
    proj_w = jax.random.normal(ks[6], (dim, dim), jnp.float32) * 0.1      # nn.Linear(dim, dim)
    proj_b = jax.random.normal(ks[7], (dim,), jnp.float32) * 0.1

    # buffers + cpb_mlp table (batch-independent preprocessing, plain JAX glue)
    table, rpi = build_relative_tables(window_size)
    rel_bias = build_rel_pos_bias(table, rpi, cpb_w1, cpb_b1, cpb_w2,
                                  num_heads, window_size)                 # (H, N, N)

    # input
    x = jax.random.normal(jax.random.PRNGKey(0), (B_, N, dim), jnp.float32)

    # TODO(synk): the optional attention `mask` argument and dropout (eval-mode
    # no-ops here) are not implemented; mask=None path only.

    # windows_per_block=8 here just to exercise a multi-step grid at this small
    # demo size; the default packs up to 128 windows per grid step.
    out = window_attention_pallas(
        x, qkv_w.T, qkv_b, logit_scale, rel_bias, proj_w.T, proj_b,
        num_heads=num_heads, windows_per_block=8)
    out = jax.block_until_ready(out)

    ref = reference_forward(x, qkv_w.T, qkv_b, logit_scale, rel_bias,
                            proj_w.T, proj_b, num_heads)
    ref = jax.block_until_ready(ref)

    assert out.shape == (B_, N, dim)
    # Tolerance covers bf16 matmul operands (f32 accumulation) in the kernel.
    np.testing.assert_allclose(np.asarray(out), np.asarray(ref),
                               rtol=3e-2, atol=3e-2)
    print("KERNEL_OK")
</pallas_src>

<mosaic_0001>
module attributes {stable_mosaic.version = 11 : i64} {
  func.func @window_attn_kernel(%arg0: i32, %arg1: memref<128x32xf32, #tpu.memory_space<vmem>>, %arg2: memref<32x96xbf16, #tpu.memory_space<vmem>>, %arg3: memref<1x96xf32, #tpu.memory_space<vmem>>, %arg4: memref<4xf32, #tpu.memory_space<smem>>, %arg5: memref<4x16x16xf32, #tpu.memory_space<vmem>>, %arg6: memref<32x32xbf16, #tpu.memory_space<vmem>>, %arg7: memref<1x32xf32, #tpu.memory_space<vmem>>, %arg8: memref<128x32xf32, #tpu.memory_space<vmem>>) attributes {dimension_semantics = [#tpu.dimension_semantics<parallel>], iteration_bounds = array<i64: 2>, scalar_prefetch = 0 : i64, scratch_operands = 0 : i64, tpu.core_type = #tpu.core_type<tc>, window_params = [{transform_indices = @transform_0, window_bounds = array<i64: 128, 32>}, {pipeline_mode = #tpu.pipeline_mode<synchronous>, transform_indices = @transform_1, window_bounds = array<i64: 32, 96>}, {pipeline_mode = #tpu.pipeline_mode<synchronous>, transform_indices = @transform_2, window_bounds = array<i64: 1, 96>}, {transform_indices = @transform_3, window_bounds = array<i64: 4>}, {pipeline_mode = #tpu.pipeline_mode<synchronous>, transform_indices = @transform_4, window_bounds = array<i64: 4, 16, 16>}, {pipeline_mode = #tpu.pipeline_mode<synchronous>, transform_indices = @transform_5, window_bounds = array<i64: 32, 32>}, {pipeline_mode = #tpu.pipeline_mode<synchronous>, transform_indices = @transform_6, window_bounds = array<i64: 1, 32>}, {transform_indices = @transform_7, window_bounds = array<i64: 128, 32>}]} {
    %c0 = arith.constant 0 : index
    %c0_0 = arith.constant 0 : index
    %0 = vector.load %arg1[%c0, %c0_0] : memref<128x32xf32, #tpu.memory_space<vmem>>, vector<128x32xf32>
    %1 = arith.truncf %0 : vector<128x32xf32> to vector<128x32xbf16>
    %c0_1 = arith.constant 0 : index
    %c0_2 = arith.constant 0 : index
    %2 = vector.load %arg2[%c0_1, %c0_2] : memref<32x96xbf16, #tpu.memory_space<vmem>>, vector<32x96xbf16>
    %cst = arith.constant dense<0.000000e+00> : vector<128x96xf32>
    %3 = tpu.matmul %1, %2, %cst {dimension_numbers = #tpu.dot_dimension_numbers<[1], [0], [0], [1], [0, 0, 1, 1], [], []>} : vector<128x32xbf16>, vector<32x96xbf16>, vector<128x96xf32> -> vector<128x96xf32>
    %c0_3 = arith.constant 0 : index
    %c0_4 = arith.constant 0 : index
    %4 = vector.load %arg3[%c0_3, %c0_4] : memref<1x96xf32, #tpu.memory_space<vmem>>, vector<1x96xf32>
    %5 = vector.broadcast %4 : vector<1x96xf32> to vector<128x96xf32>
    %6 = arith.addf %3, %5 : vector<128x96xf32>
    %7 = vector.shape_cast %6 : vector<128x96xf32> to vector<8x16x96xf32>
    %c0_5 = arith.constant 0 : index
    %c0_6 = arith.constant 0 : index
    %8 = vector.load %arg6[%c0_5, %c0_6] : memref<32x32xbf16, #tpu.memory_space<vmem>>, vector<32x32xbf16>
    %cst_7 = arith.constant 0.000000e+00 : f32
    %9 = vector.broadcast %cst_7 : f32 to vector<128x32xf32>
    %10 = vector.extract_strided_slice %7 {offsets = [0, 0, 0], sizes = [8, 16, 8], strides = [1, 1, 1]} : vector<8x16x96xf32> to vector<8x16x8xf32>
    %11 = vector.extract_strided_slice %7 {offsets = [0, 0, 32], sizes = [8, 16, 8], strides = [1, 1, 1]} : vector<8x16x96xf32> to vector<8x16x8xf32>
    %12 = vector.extract_strided_slice %7 {offsets = [0, 0, 64], sizes = [8, 16, 8], strides = [1, 1, 1]} : vector<8x16x96xf32> to vector<8x16x8xf32>
    %13 = arith.mulf %10, %10 : vector<8x16x8xf32>
    %cst_8 = arith.constant dense<0.000000e+00> : vector<8x16xf32>
    %14 = vector.multi_reduction <add>, %13, %cst_8 [2] : vector<8x16x8xf32> to vector<8x16xf32>
    %15 = vector.shape_cast %14 : vector<8x16xf32> to vector<8x16x1xf32>
    %cst_9 = arith.constant 1.000000e-24 : f32
    %16 = vector.broadcast %cst_9 : f32 to vector<8x16x1xf32>
    %17 = arith.addf %15, %16 : vector<8x16x1xf32>
    %18 = math.rsqrt %17 : vector<8x16x1xf32>
    %c0_10 = arith.constant 0 : index
    %19 = memref.load %arg4[%c0_10] : memref<4xf32, #tpu.memory_space<smem>>
    %20 = vector.broadcast %19 : f32 to vector<8x16x1xf32>
    %21 = arith.mulf %18, %20 : vector<8x16x1xf32>
    %22 = vector.broadcast %21 : vector<8x16x1xf32> to vector<8x16x8xf32>
    %23 = arith.mulf %10, %22 : vector<8x16x8xf32>
    %24 = arith.mulf %11, %11 : vector<8x16x8xf32>
    %cst_11 = arith.constant dense<0.000000e+00> : vector<8x16xf32>
    %25 = vector.multi_reduction <add>, %24, %cst_11 [2] : vector<8x16x8xf32> to vector<8x16xf32>
    %26 = vector.shape_cast %25 : vector<8x16xf32> to vector<8x16x1xf32>
    %cst_12 = arith.constant 1.000000e-24 : f32
    %27 = vector.broadcast %cst_12 : f32 to vector<8x16x1xf32>
    %28 = arith.addf %26, %27 : vector<8x16x1xf32>
    %29 = math.rsqrt %28 : vector<8x16x1xf32>
    %30 = vector.broadcast %29 : vector<8x16x1xf32> to vector<8x16x8xf32>
    %31 = arith.mulf %11, %30 : vector<8x16x8xf32>
    "tpu.trace_start"() <{level = 10 : i32, message = "bnd,bmd->bnm"}> : () -> ()
    %cst_13 = arith.constant dense<0.000000e+00> : vector<8x16x16xf32>
    %32 = tpu.matmul %23, %31, %cst_13 {dimension_numbers = #tpu.dot_dimension_numbers<[2], [2], [1], [1], [0, 0, 0, 1, 1, 1], [0], [0]>} : vector<8x16x8xf32>, vector<8x16x8xf32>, vector<8x16x16xf32> -> vector<8x16x16xf32>
    "tpu.trace_stop"() : () -> ()
    %c0_14 = arith.constant 0 : index
    %c0_15 = arith.constant 0 : index
    %c0_16 = arith.constant 0 : index
    %33 = vector.load %arg5[%c0_14, %c0_15, %c0_16] : memref<4x16x16xf32, #tpu.memory_space<vmem>>, vector<1x16x16xf32>
    %34 = vector.shape_cast %33 : vector<1x16x16xf32> to vector<16x16xf32>
    %35 = vector.shape_cast %34 : vector<16x16xf32> to vector<1x16x16xf32>
    %36 = vector.broadcast %35 : vector<1x16x16xf32> to vector<8x16x16xf32>
    %37 = arith.addf %32, %36 : vector<8x16x16xf32>
    %cst_17 = arith.constant dense<0xFF800000> : vector<8x16xf32>
    %38 = vector.multi_reduction <maximumf>, %37, %cst_17 [2] : vector<8x16x16xf32> to vector<8x16xf32>
    %39 = vector.shape_cast %38 : vector<8x16xf32> to vector<8x16x1xf32>
    %40 = vector.broadcast %39 : vector<8x16x1xf32> to vector<8x16x16xf32>
    %41 = arith.subf %37, %40 : vector<8x16x16xf32>
    %42 = math.exp %41 : vector<8x16x16xf32>
    %cst_18 = arith.constant dense<0.000000e+00> : vector<8x16xf32>
    %43 = vector.multi_reduction <add>, %42, %cst_18 [2] : vector<8x16x16xf32> to vector<8x16xf32>
    %44 = vector.shape_cast %43 : vector<8x16xf32> to vector<8x16x1xf32>
    %45 = tpu.reciprocal %44 {approx = true} : vector<8x16x1xf32> -> vector<8x16x1xf32>
    %46 = vector.broadcast %45 : vector<8x16x1xf32> to vector<8x16x16xf32>
    %47 = arith.mulf %42, %46 : vector<8x16x16xf32>
    "tpu.trace_start"() <{level = 10 : i32, message = "bnm,bmd->bnd"}> : () -> ()
    %cst_19 = arith.constant dense<0.000000e+00> : vector<8x16x8xf32>
    %48 = tpu.matmul %47, %12, %cst_19 {dimension_numbers = #tpu.dot_dimension_numbers<[2], [1], [1], [2], [0, 0, 0, 1, 1, 2], [0], [0]>} : vector<8x16x16xf32>, vector<8x16x8xf32>, vector<8x16x8xf32> -> vector<8x16x8xf32>
    "tpu.trace_stop"() : () -> ()
    %49 = vector.shape_cast %48 : vector<8x16x8xf32> to vector<128x8xf32>
    %50 = arith.truncf %49 : vector<128x8xf32> to vector<128x8xbf16>
    %51 = vector.extract_strided_slice %8 {offsets = [0, 0], sizes = [8, 32], strides = [1, 1]} : vector<32x32xbf16> to vector<8x32xbf16>
    %cst_20 = arith.constant dense<0.000000e+00> : vector<128x32xf32>
    %52 = tpu.matmul %50, %51, %cst_20 {dimension_numbers = #tpu.dot_dimension_numbers<[1], [0], [0], [1], [0, 0, 1, 1], [], []>} : vector<128x8xbf16>, vector<8x32xbf16>, vector<128x32xf32> -> vector<128x32xf32>
    %53 = arith.addf %9, %52 : vector<128x32xf32>
    %54 = vector.extract_strided_slice %7 {offsets = [0, 0, 8], sizes = [8, 16, 8], strides = [1, 1, 1]} : vector<8x16x96xf32> to vector<8x16x8xf32>
    %55 = vector.extract_strided_slice %7 {offsets = [0, 0, 40], sizes = [8, 16, 8], strides = [1, 1, 1]} : vector<8x16x96xf32> to vector<8x16x8xf32>
    %56 = vector.extract_strided_slice %7 {offsets = [0, 0, 72], sizes = [8, 16, 8], strides = [1, 1, 1]} : vector<8x16x96xf32> to vector<8x16x8xf32>
    %57 = arith.mulf %54, %54 : vector<8x16x8xf32>
    %cst_21 = arith.constant dense<0.000000e+00> : vector<8x16xf32>
    %58 = vector.multi_reduction <add>, %57, %cst_21 [2] : vector<8x16x8xf32> to vector<8x16xf32>
    %59 = vector.shape_cast %58 : vector<8x16xf32> to vector<8x16x1xf32>
    %cst_22 = arith.constant 1.000000e-24 : f32
    %60 = vector.broadcast %cst_22 : f32 to vector<8x16x1xf32>
    %61 = arith.addf %59, %60 : vector<8x16x1xf32>
    %62 = math.rsqrt %61 : vector<8x16x1xf32>
    %c1 = arith.constant 1 : index
    %63 = memref.load %arg4[%c1] : memref<4xf32, #tpu.memory_space<smem>>
    %64 = vector.broadcast %63 : f32 to vector<8x16x1xf32>
    %65 = arith.mulf %62, %64 : vector<8x16x1xf32>
    %66 = vector.broadcast %65 : vector<8x16x1xf32> to vector<8x16x8xf32>
    %67 = arith.mulf %54, %66 : vector<8x16x8xf32>
    %68 = arith.mulf %55, %55 : vector<8x16x8xf32>
    %cst_23 = arith.constant dense<0.000000e+00> : vector<8x16xf32>
    %69 = vector.multi_reduction <add>, %68, %cst_23 [2] : vector<8x16x8xf32> to vector<8x16xf32>
    %70 = vector.shape_cast %69 : vector<8x16xf32> to vector<8x16x1xf32>
    %cst_24 = arith.constant 1.000000e-24 : f32
    %71 = vector.broadcast %cst_24 : f32 to vector<8x16x1xf32>
    %72 = arith.addf %70, %71 : vector<8x16x1xf32>
    %73 = math.rsqrt %72 : vector<8x16x1xf32>
    %74 = vector.broadcast %73 : vector<8x16x1xf32> to vector<8x16x8xf32>
    %75 = arith.mulf %55, %74 : vector<8x16x8xf32>
    "tpu.trace_start"() <{level = 10 : i32, message = "bnd,bmd->bnm"}> : () -> ()
    %cst_25 = arith.constant dense<0.000000e+00> : vector<8x16x16xf32>
    %76 = tpu.matmul %67, %75, %cst_25 {dimension_numbers = #tpu.dot_dimension_numbers<[2], [2], [1], [1], [0, 0, 0, 1, 1, 1], [0], [0]>} : vector<8x16x8xf32>, vector<8x16x8xf32>, vector<8x16x16xf32> -> vector<8x16x16xf32>
    "tpu.trace_stop"() : () -> ()
    %c1_26 = arith.constant 1 : index
    %c0_27 = arith.constant 0 : index
    %c0_28 = arith.constant 0 : index
    %77 = vector.load %arg5[%c1_26, %c0_27, %c0_28] : memref<4x16x16xf32, #tpu.memory_space<vmem>>, vector<1x16x16xf32>
    %78 = vector.shape_cast %77 : vector<1x16x16xf32> to vector<16x16xf32>
    %79 = vector.shape_cast %78 : vector<16x16xf32> to vector<1x16x16xf32>
    %80 = vector.broadcast %79 : vector<1x16x16xf32> to vector<8x16x16xf32>
    %81 = arith.addf %76, %80 : vector<8x16x16xf32>
    %cst_29 = arith.constant dense<0xFF800000> : vector<8x16xf32>
    %82 = vector.multi_reduction <maximumf>, %81, %cst_29 [2] : vector<8x16x16xf32> to vector<8x16xf32>
    %83 = vector.shape_cast %82 : vector<8x16xf32> to vector<8x16x1xf32>
    %84 = vector.broadcast %83 : vector<8x16x1xf32> to vector<8x16x16xf32>
    %85 = arith.subf %81, %84 : vector<8x16x16xf32>
    %86 = math.exp %85 : vector<8x16x16xf32>
    %cst_30 = arith.constant dense<0.000000e+00> : vector<8x16xf32>
    %87 = vector.multi_reduction <add>, %86, %cst_30 [2] : vector<8x16x16xf32> to vector<8x16xf32>
    %88 = vector.shape_cast %87 : vector<8x16xf32> to vector<8x16x1xf32>
    %89 = tpu.reciprocal %88 {approx = true} : vector<8x16x1xf32> -> vector<8x16x1xf32>
    %90 = vector.broadcast %89 : vector<8x16x1xf32> to vector<8x16x16xf32>
    %91 = arith.mulf %86, %90 : vector<8x16x16xf32>
    "tpu.trace_start"() <{level = 10 : i32, message = "bnm,bmd->bnd"}> : () -> ()
    %cst_31 = arith.constant dense<0.000000e+00> : vector<8x16x8xf32>
    %92 = tpu.matmul %91, %56, %cst_31 {dimension_numbers = #tpu.dot_dimension_numbers<[2], [1], [1], [2], [0, 0, 0, 1, 1, 2], [0], [0]>} : vector<8x16x16xf32>, vector<8x16x8xf32>, vector<8x16x8xf32> -> vector<8x16x8xf32>
    "tpu.trace_stop"() : () -> ()
    %93 = vector.shape_cast %92 : vector<8x16x8xf32> to vector<128x8xf32>
    %94 = arith.truncf %93 : vector<128x8xf32> to vector<128x8xbf16>
    %95 = vector.extract_strided_slice %8 {offsets = [8, 0], sizes = [8, 32], strides = [1, 1]} : vector<32x32xbf16> to vector<8x32xbf16>
    %cst_32 = arith.constant dense<0.000000e+00> : vector<128x32xf32>
    %96 = tpu.matmul %94, %95, %cst_32 {dimension_numbers = #tpu.dot_dimension_numbers<[1], [0], [0], [1], [0, 0, 1, 1], [], []>} : vector<128x8xbf16>, vector<8x32xbf16>, vector<128x32xf32> -> vector<128x32xf32>
    %97 = arith.addf %53, %96 : vector<128x32xf32>
    %98 = vector.extract_strided_slice %7 {offsets = [0, 0, 16], sizes = [8, 16, 8], strides = [1, 1, 1]} : vector<8x16x96xf32> to vector<8x16x8xf32>
    %99 = vector.extract_strided_slice %7 {offsets = [0, 0, 48], sizes = [8, 16, 8], strides = [1, 1, 1]} : vector<8x16x96xf32> to vector<8x16x8xf32>
    %100 = vector.extract_strided_slice %7 {offsets = [0, 0, 80], sizes = [8, 16, 8], strides = [1, 1, 1]} : vector<8x16x96xf32> to vector<8x16x8xf32>
    %101 = arith.mulf %98, %98 : vector<8x16x8xf32>
    %cst_33 = arith.constant dense<0.000000e+00> : vector<8x16xf32>
    %102 = vector.multi_reduction <add>, %101, %cst_33 [2] : vector<8x16x8xf32> to vector<8x16xf32>
    %103 = vector.shape_cast %102 : vector<8x16xf32> to vector<8x16x1xf32>
    %cst_34 = arith.constant 1.000000e-24 : f32
    %104 = vector.broadcast %cst_34 : f32 to vector<8x16x1xf32>
    %105 = arith.addf %103, %104 : vector<8x16x1xf32>
    %106 = math.rsqrt %105 : vector<8x16x1xf32>
    %c2 = arith.constant 2 : index
    %107 = memref.load %arg4[%c2] : memref<4xf32, #tpu.memory_space<smem>>
    %108 = vector.broadcast %107 : f32 to vector<8x16x1xf32>
    %109 = arith.mulf %106, %108 : vector<8x16x1xf32>
    %110 = vector.broadcast %109 : vector<8x16x1xf32> to vector<8x16x8xf32>
    %111 = arith.mulf %98, %110 : vector<8x16x8xf32>
    %112 = arith.mulf %99, %99 : vector<8x16x8xf32>
    %cst_35 = arith.constant dense<0.000000e+00> : vector<8x16xf32>
    %113 = vector.multi_reduction <add>, %112, %cst_35 [2] : vector<8x16x8xf32> to vector<8x16xf32>
    %114 = vector.shape_cast %113 : vector<8x16xf32> to vector<8x16x1xf32>
    %cst_36 = arith.constant 1.000000e-24 : f32
    %115 = vector.broadcast %cst_36 : f32 to vector<8x16x1xf32>
    %116 = arith.addf %114, %115 : vector<8x16x1xf32>
    %117 = math.rsqrt %116 : vector<8x16x1xf32>
    %118 = vector.broadcast %117 : vector<8x16x1xf32> to vector<8x16x8xf32>
    %119 = arith.mulf %99, %118 : vector<8x16x8xf32>
    "tpu.trace_start"() <{level = 10 : i32, message = "bnd,bmd->bnm"}> : () -> ()
    %cst_37 = arith.constant dense<0.000000e+00> : vector<8x16x16xf32>
    %120 = tpu.matmul %111, %119, %cst_37 {dimension_numbers = #tpu.dot_dimension_numbers<[2], [2], [1], [1], [0, 0, 0, 1, 1, 1], [0], [0]>} : vector<8x16x8xf32>, vector<8x16x8xf32>, vector<8x16x16xf32> -> vector<8x16x16xf32>
    "tpu.trace_stop"() : () -> ()
    %c2_38 = arith.constant 2 : index
    %c0_39 = arith.constant 0 : index
    %c0_40 = arith.constant 0 : index
    %121 = vector.load %arg5[%c2_38, %c0_39, %c0_40] : memref<4x16x16xf32, #tpu.memory_space<vmem>>, vector<1x16x16xf32>
    %122 = vector.shape_cast %121 : vector<1x16x16xf32> to vector<16x16xf32>
    %123 = vector.shape_cast %122 : vector<16x16xf32> to vector<1x16x16xf32>
    %124 = vector.broadcast %123 : vector<1x16x16xf32> to vector<8x16x16xf32>
    %125 = arith.addf %120, %124 : vector<8x16x16xf32>
    %cst_41 = arith.constant dense<0xFF800000> : vector<8x16xf32>
    %126 = vector.multi_reduction <maximumf>, %125, %cst_41 [2] : vector<8x16x16xf32> to vector<8x16xf32>
    %127 = vector.shape_cast %126 : vector<8x16xf32> to vector<8x16x1xf32>
    %128 = vector.broadcast %127 : vector<8x16x1xf32> to vector<8x16x16xf32>
    %129 = arith.subf %125, %128 : vector<8x16x16xf32>
    %130 = math.exp %129 : vector<8x16x16xf32>
    %cst_42 = arith.constant dense<0.000000e+00> : vector<8x16xf32>
    %131 = vector.multi_reduction <add>, %130, %cst_42 [2] : vector<8x16x16xf32> to vector<8x16xf32>
    %132 = vector.shape_cast %131 : vector<8x16xf32> to vector<8x16x1xf32>
    %133 = tpu.reciprocal %132 {approx = true} : vector<8x16x1xf32> -> vector<8x16x1xf32>
    %134 = vector.broadcast %133 : vector<8x16x1xf32> to vector<8x16x16xf32>
    %135 = arith.mulf %130, %134 : vector<8x16x16xf32>
    "tpu.trace_start"() <{level = 10 : i32, message = "bnm,bmd->bnd"}> : () -> ()
    %cst_43 = arith.constant dense<0.000000e+00> : vector<8x16x8xf32>
    %136 = tpu.matmul %135, %100, %cst_43 {dimension_numbers = #tpu.dot_dimension_numbers<[2], [1], [1], [2], [0, 0, 0, 1, 1, 2], [0], [0]>} : vector<8x16x16xf32>, vector<8x16x8xf32>, vector<8x16x8xf32> -> vector<8x16x8xf32>
    "tpu.trace_stop"() : () -> ()
    %137 = vector.shape_cast %136 : vector<8x16x8xf32> to vector<128x8xf32>
    %138 = arith.truncf %137 : vector<128x8xf32> to vector<128x8xbf16>
    %139 = vector.extract_strided_slice %8 {offsets = [16, 0], sizes = [8, 32], strides = [1, 1]} : vector<32x32xbf16> to vector<8x32xbf16>
    %cst_44 = arith.constant dense<0.000000e+00> : vector<128x32xf32>
    %140 = tpu.matmul %138, %139, %cst_44 {dimension_numbers = #tpu.dot_dimension_numbers<[1], [0], [0], [1], [0, 0, 1, 1], [], []>} : vector<128x8xbf16>, vector<8x32xbf16>, vector<128x32xf32> -> vector<128x32xf32>
    %141 = arith.addf %97, %140 : vector<128x32xf32>
    %142 = vector.extract_strided_slice %7 {offsets = [0, 0, 24], sizes = [8, 16, 8], strides = [1, 1, 1]} : vector<8x16x96xf32> to vector<8x16x8xf32>
    %143 = vector.extract_strided_slice %7 {offsets = [0, 0, 56], sizes = [8, 16, 8], strides = [1, 1, 1]} : vector<8x16x96xf32> to vector<8x16x8xf32>
    %144 = vector.extract_strided_slice %7 {offsets = [0, 0, 88], sizes = [8, 16, 8], strides = [1, 1, 1]} : vector<8x16x96xf32> to vector<8x16x8xf32>
    %145 = arith.mulf %142, %142 : vector<8x16x8xf32>
    %cst_45 = arith.constant dense<0.000000e+00> : vector<8x16xf32>
    %146 = vector.multi_reduction <add>, %145, %cst_45 [2] : vector<8x16x8xf32> to vector<8x16xf32>
    %147 = vector.shape_cast %146 : vector<8x16xf32> to vector<8x16x1xf32>
    %cst_46 = arith.constant 1.000000e-24 : f32
    %148 = vector.broadcast %cst_46 : f32 to vector<8x16x1xf32>
    %149 = arith.addf %147, %148 : vector<8x16x1xf32>
    %150 = math.rsqrt %149 : vector<8x16x1xf32>
    %c3 = arith.constant 3 : index
    %151 = memref.load %arg4[%c3] : memref<4xf32, #tpu.memory_space<smem>>
    %152 = vector.broadcast %151 : f32 to vector<8x16x1xf32>
    %153 = arith.mulf %150, %152 : vector<8x16x1xf32>
    %154 = vector.broadcast %153 : vector<8x16x1xf32> to vector<8x16x8xf32>
    %155 = arith.mulf %142, %154 : vector<8x16x8xf32>
    %156 = arith.mulf %143, %143 : vector<8x16x8xf32>
    %cst_47 = arith.constant dense<0.000000e+00> : vector<8x16xf32>
    %157 = vector.multi_reduction <add>, %156, %cst_47 [2] : vector<8x16x8xf32> to vector<8x16xf32>
    %158 = vector.shape_cast %157 : vector<8x16xf32> to vector<8x16x1xf32>
    %cst_48 = arith.constant 1.000000e-24 : f32
    %159 = vector.broadcast %cst_48 : f32 to vector<8x16x1xf32>
    %160 = arith.addf %158, %159 : vector<8x16x1xf32>
    %161 = math.rsqrt %160 : vector<8x16x1xf32>
    %162 = vector.broadcast %161 : vector<8x16x1xf32> to vector<8x16x8xf32>
    %163 = arith.mulf %143, %162 : vector<8x16x8xf32>
    "tpu.trace_start"() <{level = 10 : i32, message = "bnd,bmd->bnm"}> : () -> ()
    %cst_49 = arith.constant dense<0.000000e+00> : vector<8x16x16xf32>
    %164 = tpu.matmul %155, %163, %cst_49 {dimension_numbers = #tpu.dot_dimension_numbers<[2], [2], [1], [1], [0, 0, 0, 1, 1, 1], [0], [0]>} : vector<8x16x8xf32>, vector<8x16x8xf32>, vector<8x16x16xf32> -> vector<8x16x16xf32>
    "tpu.trace_stop"() : () -> ()
    %c3_50 = arith.constant 3 : index
    %c0_51 = arith.constant 0 : index
    %c0_52 = arith.constant 0 : index
    %165 = vector.load %arg5[%c3_50, %c0_51, %c0_52] : memref<4x16x16xf32, #tpu.memory_space<vmem>>, vector<1x16x16xf32>
    %166 = vector.shape_cast %165 : vector<1x16x16xf32> to vector<16x16xf32>
    %167 = vector.shape_cast %166 : vector<16x16xf32> to vector<1x16x16xf32>
    %168 = vector.broadcast %167 : vector<1x16x16xf32> to vector<8x16x16xf32>
    %169 = arith.addf %164, %168 : vector<8x16x16xf32>
    %cst_53 = arith.constant dense<0xFF800000> : vector<8x16xf32>
    %170 = vector.multi_reduction <maximumf>, %169, %cst_53 [2] : vector<8x16x16xf32> to vector<8x16xf32>
    %171 = vector.shape_cast %170 : vector<8x16xf32> to vector<8x16x1xf32>
    %172 = vector.broadcast %171 : vector<8x16x1xf32> to vector<8x16x16xf32>
    %173 = arith.subf %169, %172 : vector<8x16x16xf32>
    %174 = math.exp %173 : vector<8x16x16xf32>
    %cst_54 = arith.constant dense<0.000000e+00> : vector<8x16xf32>
    %175 = vector.multi_reduction <add>, %174, %cst_54 [2] : vector<8x16x16xf32> to vector<8x16xf32>
    %176 = vector.shape_cast %175 : vector<8x16xf32> to vector<8x16x1xf32>
    %177 = tpu.reciprocal %176 {approx = true} : vector<8x16x1xf32> -> vector<8x16x1xf32>
    %178 = vector.broadcast %177 : vector<8x16x1xf32> to vector<8x16x16xf32>
    %179 = arith.mulf %174, %178 : vector<8x16x16xf32>
    "tpu.trace_start"() <{level = 10 : i32, message = "bnm,bmd->bnd"}> : () -> ()
    %cst_55 = arith.constant dense<0.000000e+00> : vector<8x16x8xf32>
    %180 = tpu.matmul %179, %144, %cst_55 {dimension_numbers = #tpu.dot_dimension_numbers<[2], [1], [1], [2], [0, 0, 0, 1, 1, 2], [0], [0]>} : vector<8x16x16xf32>, vector<8x16x8xf32>, vector<8x16x8xf32> -> vector<8x16x8xf32>
    "tpu.trace_stop"() : () -> ()
    %181 = vector.shape_cast %180 : vector<8x16x8xf32> to vector<128x8xf32>
    %182 = arith.truncf %181 : vector<128x8xf32> to vector<128x8xbf16>
    %183 = vector.extract_strided_slice %8 {offsets = [24, 0], sizes = [8, 32], strides = [1, 1]} : vector<32x32xbf16> to vector<8x32xbf16>
    %cst_56 = arith.constant dense<0.000000e+00> : vector<128x32xf32>
    %184 = tpu.matmul %182, %183, %cst_56 {dimension_numbers = #tpu.dot_dimension_numbers<[1], [0], [0], [1], [0, 0, 1, 1], [], []>} : vector<128x8xbf16>, vector<8x32xbf16>, vector<128x32xf32> -> vector<128x32xf32>
    %185 = arith.addf %141, %184 : vector<128x32xf32>
    %c0_57 = arith.constant 0 : index
    %c0_58 = arith.constant 0 : index
    %186 = vector.load %arg7[%c0_57, %c0_58] : memref<1x32xf32, #tpu.memory_space<vmem>>, vector<1x32xf32>
    %187 = vector.broadcast %186 : vector<1x32xf32> to vector<128x32xf32>
    %188 = arith.addf %185, %187 : vector<128x32xf32>
    %c0_59 = arith.constant 0 : index
    %c0_60 = arith.constant 0 : index
    %189 = vector.load %arg8[%c0_59, %c0_60] : memref<128x32xf32, #tpu.memory_space<vmem>>, vector<128x32xf32>
    tpu.vector_store %arg8[%c0_59, %c0_60], %188 {strides = array<i32>} : memref<128x32xf32, #tpu.memory_space<vmem>>, vector<128x32xf32>,
    return
  }
  func.func @transform_0(%arg0: i32) -> (i32, i32) {
    %c0_i32 = arith.constant 0 : i32
    %c0_i32_0 = arith.constant 0 : i32
    return %arg0, %c0_i32 : i32, i32
  }
  func.func @transform_1(%arg0: i32) -> (i32, i32) {
    %c0_i32 = arith.constant 0 : i32
    %c0_i32_0 = arith.constant 0 : i32
    %c0_i32_1 = arith.constant 0 : i32
    return %c0_i32, %c0_i32_0 : i32, i32
  }
  func.func @transform_2(%arg0: i32) -> (i32, i32) {
    %c0_i32 = arith.constant 0 : i32
    %c0_i32_0 = arith.constant 0 : i32
    %c0_i32_1 = arith.constant 0 : i32
    return %c0_i32, %c0_i32_0 : i32, i32
  }
  func.func @transform_3(%arg0: i32) -> i32 {
    %c0_i32 = arith.constant 0 : i32
    %c0_i32_0 = arith.constant 0 : i32
    return %c0_i32 : i32
  }
  func.func @transform_4(%arg0: i32) -> (i32, i32, i32) {
    %c0_i32 = arith.constant 0 : i32
    %c0_i32_0 = arith.constant 0 : i32
    %c0_i32_1 = arith.constant 0 : i32
    %c0_i32_2 = arith.constant 0 : i32
    return %c0_i32, %c0_i32_0, %c0_i32_1 : i32, i32, i32
  }
  func.func @transform_5(%arg0: i32) -> (i32, i32) {
    %c0_i32 = arith.constant 0 : i32
    %c0_i32_0 = arith.constant 0 : i32
    %c0_i32_1 = arith.constant 0 : i32
    return %c0_i32, %c0_i32_0 : i32, i32
  }
  func.func @transform_6(%arg0: i32) -> (i32, i32) {
    %c0_i32 = arith.constant 0 : i32
    %c0_i32_0 = arith.constant 0 : i32
    %c0_i32_1 = arith.constant 0 : i32
    return %c0_i32, %c0_i32_0 : i32, i32
  }
  func.func @transform_7(%arg0: i32) -> (i32, i32) {
    %c0_i32 = arith.constant 0 : i32
    %c0_i32_0 = arith.constant 0 : i32
    return %arg0, %c0_i32 : i32, i32
  }
}

</mosaic_0001>

<bundles_post_ra>
// kernel: tpu_custom_call.1
= control target key start
LH: loop header
LB: loop body
LE: loop exit
PB: predicated region body
PF: predicated region fallthrough
CT: control target
= control target key end

     0   :  { %12 = vsyncpa [#allocation3], 0  ;;  %s11290_s24 = smov 0   ;;  %s13791_s0 = inlined_call_operand.vmem [shape: f32[256,32], index: 0, kind: input, shape index: {}]   ;;  %s13792_s1 = inlined_call_operand.vmem [shape: bf16[32,96], index: 1, kind: input, shape index: {}]   ;;  %s13793_s2 = inlined_call_operand.vmem [shape: f32[1,96], index: 2, kind: input, shape index: {}]   ;;  %s13794_s3 = inlined_call_operand.vmem [shape: f32[4], index: 3, kind: input, shape index: {}]   ;;  %s13795_s4 = inlined_call_operand.vmem [shape: f32[4,16,16], index: 4, kind: input, shape index: {}]   ;;  %s13796_s5 = inlined_call_operand.vmem [shape: bf16[32,32], index: 5, kind: input, shape index: {}]   ;;  %s13797_s6 = inlined_call_operand.vmem [shape: f32[1,32], index: 6, kind: input, shape index: {}]   ;;  %s13798_s7 = inlined_call_operand.vmem [shape: f32[256,32], index: 7, kind: output, shape index: {}]  }
   0x1 LB: > { %s8871_s25 = sadd.s32 4294967295, %s11236_s24   ;;  %p8873_p0 = scmp.ge.s32.totalorder %s11236_s24, 1  ;;  %s11236_s24 = sphi %s11290_s24, %s18_s24  }
   0x2   : > { %p201_p1 = scmp.lt.s32.totalorder %s11236_s24, 3  ;;  %s220_s28 = sshll.u32 %s13794_s3, 4  ;;  %s221_s28 = int_to_ptr.vmem [resolvable:$true] %s220_s28 }
   0x3   : > { %p11305_p3 = scmp.eq.s32.totalorder %s8871_s25, 0  ;;  %s11211_s8 = scalar_lea.vmem %s221_s28, 16 }
   0x4   : > { %p11301_p2 = pnand %p8873_p0, %p201_p1  ;;  %p11212_p6 = scmp.ne.s32.totalorder %s221_s28, %s11211_s8 }
   0x5   : > { %p11219_p10 = scmp.lt.s32.totalorder %s221_s28, %s221_s28  ;;  %p11220_p11 = scmp.lt.s32.totalorder %s11211_s8, %s11211_s8 }
   0x6   : > { %p10351_p4 = pneg %p11301_p2 }
   0x7   : > { %p11221_p12 = por %p11220_p11, %p11219_p10 }
   0x8   : > { %p10352_p5 = pnand %p11305_p3, %p10351_p4 }
   0xa   : > { %p11213_p7 = pneg %p10352_p5 }
   0xc   : > { %p11214_p8 = pnand %p11213_p7, %p11212_p6 }
   0xe   : > { %p11215_p9 = pneg %p11214_p8 }
  0x10   : > { %p11222_p13 = pnand %p11221_p12, %p11215_p9 }
  0x12   : > { %11225 = shalt.err (!%p11222_p13)
}
  0x13   : > { %s11238_s9 = smov [#allocation2]   ;;  %251 = sbr.rel (%p11301_p2) target bundleno = 4474 (0x117a), region = 48 }
  0x14   : > { %10354 = dma.vmem_to_smem (!%p10352_p5), %s221_s28, 16, %s11238_s9, [#allocation3]  }
  0x1a   : > { %11231 = dma.done.wait (%p11305_p3), [#allocation3], 16  }
  0x1b   : > { %11233 = vsyncadd (%p11305_p3), [#allocation3], 4294967280 }
  0x1c   : > { %257 = sfence }
  0x1d   : > { %v10697_v0 = vld [vmem:[%s13792_s1] sm:$0xff]   ;;  %s8878_s12 = sshll.u32 %s8871_s25, 4  ;;  %v10698_v1 = vld [vmem:[%s13792_s1 + $0x8] sm:$0xff]   ;;  %vm344_vm0 = vcmask 261120   ;;  %s11239_s21 = smov 96   ;;  %vm486_vm1 = vcmask 64512  }
  0x1e   : > { %p285_p0 = scmp.lt.s32.totalorder %s8878_s12, 31  ;;  %9431 = vmatprep.subr.bf16.mxu0 %v10697_v0  ;;  %10291 = vmatprep.subr.bf16.mxu1 %v10697_v0  ;;  %v8882_v26 = vld [vmem:[%s13793_s2] ss:$0 sm:$0xff]  ;;  %s11240_s22 = smov 88   ;;  %vm11859_vm2 = vmpackc.low %vm486_vm1, %vm486_vm1  ;;  %vm1491_vm3 = vcmask 130048   ;;  %vm4361_vm4 = vcmask 1043456  }
  0x1f   : > { %9432 = vmatpush3.bf16.msra.mxu0 %v10697_v0  ;;  %10293 = vmatpush3.bf16.msra.mxu1 %v10697_v0  ;;  %s11241_s23 = smov 120   ;;  %s567_s25 = sld [smem:[#allocation2]] }
  0x20   : > { %s14103_s12 = smov (!%p285_p0, %s8878_s12), 31  ;;  %9433 = vmatprep.subr.bf16.mxu0 %v10698_v1  ;;  %10292 = vmatprep.subr.bf16.mxu1 %v10698_v1  ;;  %s11242_s26 = smov 64  }
  0x21   : > { %s8879_s15 = sshll.u32 %s14103_s12, 3  ;;  %s8941_s27 = sld [smem:[#allocation2 + $0x1]] }
  0x22   : > { %s288_s18 = scalar_lea.vmem %s13791_s0, %s8879_s15  ;;  %s11243_s9 = smov 80  }
  0x23   : > { %9434 = vmatpush3.bf16.msra.mxu0 %v10698_v1  ;;  %10294 = vmatpush3.bf16.msra.mxu1 %v10698_v1  ;;  %v297_v2 = vld [vmem:[%s288_s18] sm:$0xff]  ;;  %v298_v3 = vld [vmem:[%s288_s18 + $0x8] sm:$0xff]  ;;  %v299_v7 = vld [vmem:[%s288_s18 + $0x10] sm:$0xff]  ;;  %s11244_s10 = smov 112   ;;  %s11245_s11 = smov 56  }
  0x24   : > { %v305_v4 = vld [vmem:[%s288_s18 + $0x40] sm:$0xff]  ;;  %v313_v5 = vpack.c.bf16 %v298_v3, %v297_v2  ;;  %v306_v6 = vld [vmem:[%s288_s18 + $0x48] sm:$0xff]  ;;  %v300_v8 = vld [vmem:[%s288_s18 + $0x18] sm:$0xff]  ;;  %s9008_s13 = sld [smem:[#allocation2 + $0x2]]  ;;  %s11246_s19 = smov 48  }
  0x25   : > { %v317_v9 = vpack.c.bf16 %v306_v6, %v305_v4  ;;  %v314_v10 = vpack.c.bf16 %v300_v8, %v299_v7  ;;  %v307_v11 = vld [vmem:[%s288_s18 + $0x50] sm:$0xff]  ;;  %v308_v12 = vld [vmem:[%s288_s18 + $0x58] sm:$0xff]  ;;  %v301_v13 = vld [vmem:[%s288_s18 + $0x20] sm:$0xff]  ;;  %s11247_s29 = smov 72   ;;  %s11248_s30 = smov 104  }
  0x26   : > { %9435 = vmatprep.mubr.msk.bf16.mxu0 %vm344_vm0, %v313_v5  ;;  %v318_v14 = vpack.c.bf16 %v308_v12, %v307_v11  ;;  %v302_v15 = vld [vmem:[%s288_s18 + $0x28] sm:$0xff]  ;;  %v309_v17 = vld [vmem:[%s288_s18 + $0x60] sm:$0xff]  ;;  %v303_v19 = vld [vmem:[%s288_s18 + $0x30] sm:$0xff]  ;;  %s11249_s17 = smov 40  }
  0x27   : > { %9443 = vmatprep.mubr.msk.bf16.mxu1 %vm344_vm0, %v317_v9  ;;  %9436 = vmatmul.mubr.msk.bf16.vlgmr.msra.gmra.mrb[0].mxu0 %vm344_vm0, %v314_v10  ;;  %v315_v16 = vpack.c.bf16 %v302_v15, %v301_v13  ;;  %v310_v18 = vld [vmem:[%s288_s18 + $0x68] sm:$0xff]  ;;  %v304_v20 = vld [vmem:[%s288_s18 + $0x38] sm:$0xff]  ;;  %v311_v22 = vld [vmem:[%s288_s18 + $0x70] sm:$0xff] }
  0x28   : > { %9444 = vmatmul.mubr.msk.bf16.vlgmr.msra.gmra.mrb[0].mxu1 %vm344_vm0, %v318_v14  ;;  %v319_v21 = vpack.c.bf16 %v310_v18, %v309_v17  ;;  %v312_v23 = vld [vmem:[%s288_s18 + $0x78] sm:$0xff]  ;;  %v316_v24 = vpack.c.bf16 %v304_v20, %v303_v19 }
  0x29   : > { %9439 = vmatprep.mubr.msk.bf16.mxu0 %vm344_vm0, %v315_v16  ;;  %v320_v25 = vpack.c.bf16 %v312_v23, %v311_v22 }
  0x2a   : > { %9447 = vmatprep.mubr.msk.bf16.mxu1 %vm344_vm0, %v319_v21 }
  0x2f   : > { %9440 = vmatmul.mubr.msk.bf16.gmra.mrb[4].mxu0 %vm344_vm0, %v316_v24 }
  0x30   : > { %9448 = vmatmul.mubr.msk.bf16.gmra.mrb[4].mxu1 %vm344_vm0, %v320_v25 }
  0xfa   : > { %v9437_v27 = vpop.f32.mrb[0].mxu0 }
  0xfb   : > { %v11344_v28 = vadd.f32 %v9437_v27, %v8882_v26  ;;  %v9445_v29 = vpop.f32.mrb[0].mxu1  ;;  %v403_v30 = vpop.f32.mrb[1].mxu0 }
  0xfc   : > { %v11346_v31 = vadd.f32 %v9445_v29, %v8882_v26  ;;  %v435_v32 = vpop.f32.mrb[1].mxu1  ;;  %v9438_v33 = vpop.f32.mrb[2].mxu0  ;;  %v11376_v52 = vadd.f32 %v8882_v26, %v403_v30 }
  0xfd   : > { %13926 = vst [vmem:[#allocation5_spill] sm:$0xff] %v11344_v28  ;;  %v11348_v34 = vadd.f32 %v8882_v26, %v435_v32  ;;  %v9446_v35 = vpop.f32.mrb[2].mxu1  ;;  %v406_v36 = vpop.f32.mrb[3].mxu0  ;;  %v11352_v37 = vmul.f32 %v11344_v28, %v11344_v28  ;;  %v11410_v62 = vadd.f32 %v9438_v33, %v8882_v26 }
  0xfe   : > { %13927 = vst [vmem:[#allocation6_spill] sm:$0xff] %v11346_v31  ;;  %v438_v38 = vpop.f32.mrb[3].mxu1  ;;  %v11356_v39 = vmul.f32 %v11346_v31, %v11346_v31  ;;  %13936 = vst [vmem:[#allocation15_spill] sm:$0xff] %v11376_v52  ;;  %v11388_v57 = vadd.f32 %v9446_v35, %v8882_v26  ;;  %v11392_v58 = vmul.f32 %v11376_v52, %v11376_v52 }
  0xff   : > { %13928 = vst [vmem:[#allocation7_spill] sm:$0xff] %v11348_v34  ;;  %13929 = vst [vmem:[#allocation8_spill] sm:$0xff] %v11352_v37  ;;  %621 = vrot.lane.b32.xlu1 %v11352_v37, %s11239_s21  ;;  %v11396_v59 = vadd.f32 %v8882_v26, %v406_v36  ;;  %v493_v63 = vsel %vm486_vm1, %v11352_v37, 0.0  ;;  %v11418_v1 = vmul.f32 %v11410_v62, %v11410_v62 }
 0x100   : > { %13930 = vst [vmem:[#allocation9_spill] sm:$0xff] %v11356_v39  ;;  %637 = vrot.lane.b32.xlu0 %v11356_v39, %s11239_s21  ;;  %13940 = vst [vmem:[#allocation19_spill] sm:$0xff] %v11388_v57  ;;  %v11400_v60 = vmul.f32 %v11388_v57, %v11388_v57  ;;  %v517_v0 = vsel %vm486_vm1, %v11356_v39, 0.0  ;;  %v11422_v3 = vadd.f32 %v8882_v26, %v438_v38  ;;  %v487_v12 = vsel %vm486_vm1, %v11392_v58, 0.0 }
 0x101   : > { %13941 = vst [vmem:[#allocation20_spill] sm:$0xff] %v11392_v58  ;;  %13942 = vst [vmem:[#allocation21_spill] sm:$0xff] %v11396_v59  ;;  %v11406_v61 = vmul.f32 %v11396_v59, %v11396_v59  ;;  %v496_v2 = vsel %vm486_vm1, %v11418_v1, 0.0  ;;  %v11436_v8 = vmul.f32 %v11348_v34, %v11348_v34 }
 0x102   : > { %v9441_v40 = vpop.f32.mrb[4].mxu0  ;;  %13943 = vst [vmem:[#allocation22_spill] sm:$0xff] %v11400_v60  ;;  %13945 = vst [vmem:[#allocation24_spill] sm:$0xff] %v11410_v62  ;;  %v520_v4 = vsel %vm486_vm1, %v11400_v60, 0.0  ;;  %v11430_v6 = vmul.f32 %v11422_v3, %v11422_v3 }
 0x103   : > { %2554 = vrot.lane.b32.xlu1 %v11352_v37, %s11240_s22  ;;  %v11364_v41 = vadd.f32 %v9441_v40, %v8882_v26  ;;  %v419_v42 = vpop.f32.mrb[5].mxu0  ;;  %v9449_v43 = vpop.f32.mrb[4].mxu1  ;;  %13944 = vst [vmem:[#allocation23_spill] sm:$0xff] %v11406_v61  ;;  %13946 = vst [vmem:[#allocation25_spill] sm:$0xff] %v11418_v1  ;;  %v490_v5 = vsel %vm486_vm1, %v11406_v61, 0.0  ;;  %v511_v13 = vsel %vm486_vm1, %v11436_v8, 0.0 }
 0x104   : > { %2392 = vrot.lane.b32.xlu0 %v11352_v37, %s11241_s23  ;;  %v11368_v44 = vadd.f32 %v8882_v26, %v419_v42  ;;  %v9442_v45 = vpop.f32.mrb[6].mxu0  ;;  %v11370_v46 = vadd.f32 %v9449_v43, %v8882_v26  ;;  %v451_v47 = vpop.f32.mrb[5].mxu1  ;;  %13947 = vst [vmem:[#allocation26_spill] sm:$0xff] %v11422_v3  ;;  %13948 = vst [vmem:[#allocation27_spill] sm:$0xff] %v11430_v6  ;;  %v514_v7 = vsel %vm486_vm1, %v11430_v6, 0.0 }
 0x105   : > { %13931 = vst [vmem:[#allocation10_spill] sm:$0xff] %v11364_v41  ;;  %v11372_v48 = vadd.f32 %v9442_v45, %v8882_v26  ;;  %v422_v49 = vpop.f32.mrb[7].mxu0  ;;  %v11374_v50 = vadd.f32 %v8882_v26, %v451_v47  ;;  %v9450_v51 = vpop.f32.mrb[6].mxu1  ;;  %13949 = vst [vmem:[#allocation28_spill] sm:$0xff] %v11436_v8  ;;  %v11446_v9 = vmul.f32 %v11364_v41, %v11364_v41 }
 0x106   : > { %13932 = vst [vmem:[#allocation11_spill] sm:$0xff] %v11368_v44  ;;  %13933 = vst [vmem:[#allocation12_spill] sm:$0xff] %v11370_v46  ;;  %v11378_v53 = vadd.f32 %v8882_v26, %v422_v49  ;;  %v11380_v54 = vadd.f32 %v9450_v51, %v8882_v26  ;;  %v454_v55 = vpop.f32.mrb[7].mxu1  ;;  %v11452_v10 = vmul.f32 %v11370_v46, %v11370_v46 }
 0x107   : > { %13934 = vst [vmem:[#allocation13_spill] sm:$0xff] %v11372_v48  ;;  %13935 = vst [vmem:[#allocation14_spill] sm:$0xff] %v11374_v50  ;;  %2570 = vrot.lane.b32.xlu1 %v11356_v39, %s11240_s22  ;;  %v11384_v56 = vadd.f32 %v8882_v26, %v454_v55  ;;  %v11462_v11 = vmul.f32 %v11368_v44, %v11368_v44  ;;  %v505_v14 = vsel %vm486_vm1, %v11446_v9, 0.0 }
 0x108   : > { %13937 = vst [vmem:[#allocation16_spill] sm:$0xff] %v11378_v53  ;;  %13938 = vst [vmem:[#allocation17_spill] sm:$0xff] %v11380_v54  ;;  %2408 = vrot.lane.b32.xlu0 %v11356_v39, %s11241_s23  ;;  %v529_v15 = vsel %vm486_vm1, %v11452_v10, 0.0  ;;  %v11488_v16 = vmul.f32 %v11374_v50, %v11374_v50  ;;  %v11494_v17 = vmul.f32 %v11372_v48, %v11372_v48 }
 0x109   : > { %13939 = vst [vmem:[#allocation18_spill] sm:$0xff] %v11384_v56  ;;  %13950 = vst [vmem:[#allocation29_spill] sm:$0xff] %v11446_v9  ;;  %v11502_v18 = vmul.f32 %v11380_v54, %v11380_v54  ;;  %v499_v23 = vsel %vm486_vm1, %v11462_v11, 0.0  ;;  %v11518_v24 = vmul.f32 %v11378_v53, %v11378_v53  ;;  %v11526_v30 = vmul.f32 %v11384_v56, %v11384_v56 }
 0x10a   : > { %13951 = vst [vmem:[#allocation30_spill] sm:$0xff] %v11452_v10  ;;  %13952 = vst [vmem:[#allocation31_spill] sm:$0xff] %v11462_v11  ;;  %v508_v20 = vsel %vm486_vm1, %v11494_v17, 0.0  ;;  %v523_v29 = vsel %vm486_vm1, %v11488_v16, 0.0 }
 0x10b   : > { %13953 = vst [vmem:[#allocation32_spill] sm:$0xff] %v11488_v16  ;;  %13954 = vst [vmem:[#allocation33_spill] sm:$0xff] %v11494_v17  ;;  %v532_v22 = vsel %vm486_vm1, %v11502_v18, 0.0  ;;  %v502_v27 = vsel %vm486_vm1, %v11518_v24, 0.0  ;;  %v526_v33 = vsel %vm486_vm1, %v11526_v30, 0.0 }
 0x10c   : > { %617 = vrot.lane.b32.xlu0 %v11392_v58, %s11239_s21  ;;  %13955 = vst [vmem:[#allocation34_spill] sm:$0xff] %v11502_v18  ;;  %13956 = vst [vmem:[#allocation35_spill] sm:$0xff] %v11518_v24 }
 0x10d   : > { %13957 = vst [vmem:[#allocation36_spill] sm:$0xff] %v11526_v30 }
 0x110   : > { %2410 = vrot.lane.b32.xlu0 %v11400_v60, %s11241_s23 }
 0x114   : > { %619 = vrot.lane.b32.xlu0 %v11406_v61, %s11239_s21 }
 0x12b   : > { %494 = vadd.xlane.f32.xlu1 %v493_v63 }
 0x12f   : > { %518 = vadd.xlane.f32.xlu1 %v517_v0 }
 0x133   : > { %497 = vadd.xlane.f32.xlu0 %v496_v2 }
 0x137   : > { %521 = vadd.xlane.f32.xlu0 %v520_v4 }
 0x13b   : > { %491 = vadd.xlane.f32.xlu0 %v490_v5 }
 0x13f   : > { %515 = vadd.xlane.f32.xlu0 %v514_v7 }
 0x140   : > { %633 = vrot.lane.b32.xlu1 %v11436_v8, %s11239_s21 }
 0x144   : > { %623 = vrot.lane.b32.xlu1 %v11418_v1, %s11239_s21 }
 0x148   : > { %639 = vrot.lane.b32.xlu1 %v11400_v60, %s11239_s21 }
 0x155   : > { %629 = vrot.lane.b32.xlu0 %v11446_v9, %s11239_s21 }
 0x159   : > { %645 = vrot.lane.b32.xlu0 %v11452_v10, %s11239_s21 }
 0x15d   : > { %2578 = vrot.lane.b32.xlu0 %v11452_v10, %s11240_s22 }
 0x161   : > { %2416 = vrot.lane.b32.xlu0 %v11452_v10, %s11241_s23 }
 0x165   : > { %625 = vrot.lane.b32.xlu0 %v11462_v11, %s11239_s21 }
 0x16c   : > { %488 = vadd.xlane.f32.xlu1 %v487_v12 }
 0x170   : > { %512 = vadd.xlane.f32.xlu1 %v511_v13 }
 0x171   : > { %v622_v21 = vpop.permute.xlu1 %621 }
 0x172   : > { %v11508_v19 = vpop.permute.xlu0 %637  ;;  %v671_v36 = vsel %vm486_vm1, %v622_v21, 0.0 }
 0x175   : > { %v2555_v26 = vpop.permute.xlu1 %2554 }
 0x176   : > { %v2393_v25 = vpop.permute.xlu0 %2392  ;;  %v2604_v42 = vsel %vm486_vm1, %v2555_v26, 0.0 }
 0x177   : > { %v2442_v47 = vsel %vm486_vm1, %v2393_v25, 0.0 }
 0x179   : > { %v2571_v35 = vpop.permute.xlu1 %2570 }
 0x17a   : > { %v11528_v32 = vpop.permute.xlu0 %2408  ;;  %v2628_v49 = vsel %vm486_vm1, %v2571_v35, 0.0 }
 0x17e   : > { %v618_v38 = vpop.permute.xlu0 %617 }
 0x17f   : > { %v665_v63 = vsel %vm486_vm1, %v618_v38, 0.0  ;;  %v11563_v38 = vstv %s567_s25  ;;  %s13754_s25 = scalar_lea.vmem %s13798_s7, %s8879_s15 }
 0x181   : > { %2556 = vrot.lane.b32.xlu1 %v11418_v1, %s11240_s22 }
 0x182   : > { %v11536_v43 = vpop.permute.xlu0 %2410 }
 0x184   : > { %506 = vadd.xlane.f32.xlu0 %v505_v14 }
 0x185   : > { %2394 = vrot.lane.b32.xlu1 %v11418_v1, %s11241_s23 }
 0x186   : > { %v620_v51 = vpop.permute.xlu0 %619 }
 0x188   : > { %530 = vadd.xlane.f32.xlu0 %v529_v15 }
 0x189   : > { %2572 = vrot.lane.b32.xlu1 %v11400_v60, %s11240_s22 }
 0x18d   : > { %635 = vrot.lane.b32.xlu1 %v11430_v6, %s11239_s21 }
 0x191   : > { %2562 = vrot.lane.b32.xlu1 %v11446_v9, %s11240_s22 }
 0x195   : > { %2400 = vrot.lane.b32.xlu1 %v11446_v9, %s11241_s23 }
 0x199   : > { %641 = vrot.lane.b32.xlu1 %v11488_v16, %s11239_s21 }
 0x19d   : > { %631 = vrot.lane.b32.xlu1 %v11494_v17, %s11239_s21 }
 0x19e   : > { %2564 = vrot.lane.b32.xlu0 %v11494_v17, %s11240_s22 }
 0x1a1   : > { %647 = vrot.lane.b32.xlu1 %v11502_v18, %s11239_s21 }
 0x1a2   : > { %2402 = vrot.lane.b32.xlu0 %v11494_v17, %s11241_s23 }
 0x1b8   : > { %v11533_v40 = vpop.xlane.xlu1 %494 }
 0x1bc   : > { %v11538_v45 = vpop.xlane.xlu1 %518 }
 0x1bd   : > { %13958 = vst [vmem:[#allocation37_spill] sm:$0xff] %v11538_v45 }
 0x1c0   : > { %v634_v55 = vpop.permute.xlu1 %633  ;;  %v11547_v0 = vpop.xlane.xlu0 %497 }
 0x1c1   : > { %509 = vadd.xlane.f32.xlu0 %v508_v20  ;;  %v689_v4 = vsel %vm486_vm1, %v634_v55, 0.0  ;;  %v695_v55 = vsel %vm486_vm1, %v11508_v19, 0.0 }
 0x1c4   : > { %v624_v2 = vpop.permute.xlu1 %623  ;;  %v11554_v5 = vpop.xlane.xlu0 %521 }
 0x1c5   : > { %533 = vadd.xlane.f32.xlu0 %v532_v22  ;;  %500 = vadd.xlane.f32.xlu1 %v499_v23  ;;  %13959 = vst [vmem:[#allocation38_spill] sm:$0xff] %v11554_v5  ;;  %v674_v7 = vsel %vm486_vm1, %v624_v2, 0.0 }
 0x1c8   : > { %v640_v12 = vpop.permute.xlu1 %639  ;;  %v11558_v14 = vpop.xlane.xlu0 %491 }
 0x1c9   : > { %503 = vadd.xlane.f32.xlu0 %v502_v27  ;;  %524 = vadd.xlane.f32.xlu1 %v523_v29  ;;  %v698_v13 = vsel %vm486_vm1, %v640_v12, 0.0 }
 0x1cc   : > { %v11560_v15 = vpop.xlane.xlu0 %515 }
 0x1cd   : > { %527 = vadd.xlane.f32.xlu0 %v526_v33 }
 0x1d0   : > { %v630_v20 = vpop.permute.xlu0 %629 }
 0x1d1   : > { %672 = vadd.xlane.f32.xlu0 %v671_v36 }
 0x1d4   : > { %v646_v26 = vpop.permute.xlu0 %645 }
 0x1d5   : > { %2605 = vadd.xlane.f32.xlu0 %v2604_v42 }
 0x1d8   : > { %v2579_v33 = vpop.permute.xlu0 %2578 }
 0x1d9   : > { %2443 = vadd.xlane.f32.xlu0 %v2442_v47 }
 0x1da   : > { %2580 = vrot.lane.b32.xlu1 %v11502_v18, %s11240_s22 }
 0x1dd   : > { %2629 = vadd.xlane.f32.xlu0 %v2628_v49 }
 0x1de   : > { %2418 = vrot.lane.b32.xlu1 %v11502_v18, %s11241_s23 }
 0x1e1   : > { %666 = vadd.xlane.f32.xlu0 %v665_v63 }
 0x1e2   : > { %627 = vrot.lane.b32.xlu1 %v11518_v24, %s11239_s21 }
 0x1e5   : > { %690 = vadd.xlane.f32.xlu0 %v689_v4  ;;  %v2417_v4 = vpop.permute.xlu0 %2416 }
 0x1e6   : > { %643 = vrot.lane.b32.xlu1 %v11526_v30, %s11239_s21 }
 0x1e9   : > { %675 = vadd.xlane.f32.xlu0 %v674_v7 }
 0x1ed   : > { %699 = vadd.xlane.f32.xlu0 %v698_v13  ;;  %v2466_v13 = vsel %vm486_vm1, %v11528_v32, 0.0 }
 0x1f9   : > { %v489_v21 = vpop.xlane.xlu1 %488 }
 0x1fa   : > { %v535_v22 = vadd.f32 1e-24, %v489_v21 }
 0x1fc   : > { %10699 = vrsqrt.f32 %v535_v22  ;;  %v626_v22 = vpop.permute.xlu0 %625 }
 0x1fd   : > { %v513_v23 = vpop.xlane.xlu1 %512 }
 0x1fe   : > { %v543_v25 = vadd.f32 1e-24, %v513_v23 }
 0x200   : > { %10701 = vrsqrt.f32 %v543_v25 }
 0x201   : > { %v2557_v27 = vpop.permute.xlu1 %2556 }
 0x202   : > { %v2607_v29 = vsel %vm486_vm1, %v2557_v27, 0.0 }
 0x203   : > { %2608 = vadd.xlane.f32.xlu0 %v2607_v29 }
 0x205   : > { %v2395_v35 = vpop.permute.xlu1 %2394 }
 0x206   : > { %v10700_v36 = vpop.eup %10699  ;;  %v2445_v42 = vsel %vm486_vm1, %v2395_v35, 0.0  ;;  %v668_v35 = vsel %vm486_vm1, %v620_v51, 0.0  ;;  %v707_v51 = vsel %vm486_vm1, %v646_v26, 0.0  ;;  %v2478_v26 = vsel %vm486_vm1, %v2417_v4, 0.0 }
 0x207   : > { %2446 = vadd.xlane.f32.xlu0 %v2445_v42  ;;  %v569_v47 = vmul.f32 %v10700_v36, %v11563_v38 }
 0x209   : > { %v2573_v49 = vpop.permute.xlu1 %2572  ;;  %v585_v63 = vmul.f32 %v569_v47, %v11376_v52 }
 0x20a   : > { %v10702_v2 = vpop.eup %10701  ;;  %696 = vadd.xlane.f32.xlu1 %v695_v55  ;;  %v2631_v23 = vsel %vm486_vm1, %v2573_v49, 0.0  ;;  %v683_v55 = vsel %vm486_vm1, %v630_v20, 0.0  ;;  %v677_v20 = vsel %vm486_vm1, %v626_v22, 0.0  ;;  %v11603_v22 = vpack.i.bf16 %v11388_v57, %v11346_v31 }
 0x20b   : > { %9455 = vmatprep.mubr.msk.f32.mxu1 %vm486_vm1, %v585_v63  ;;  %v577_v7 = vmul.f32 %v10702_v2, %v11563_v38 }
 0x20c   : > { %13962 = vst [vmem:[#allocation41_spill] sm:$0xff] %v11603_v22 }
 0x20d   : > { %v636_v12 = vpop.permute.xlu1 %635  ;;  %v593_v21 = vmul.f32 %v577_v7, %v11348_v34 }
 0x20e   : > { %2467 = vadd.xlane.f32.xlu1 %v2466_v13  ;;  %v692_v36 = vsel %vm486_vm1, %v636_v12, 0.0 }
 0x20f   : > { %9483 = vmatprep.mubr.msk.f32.mxu0 %vm486_vm1, %v593_v21 }
 0x211   : > { %v2563_v19 = vpop.permute.xlu1 %2562  ;;  %v11578_v27 = vpop.xlane.xlu0 %506 }
 0x212   : > { %2632 = vadd.xlane.f32.xlu1 %v2631_v23  ;;  %v2616_v25 = vsel %vm486_vm1, %v2563_v19, 0.0 }
 0x213   : > { %2617 = vadd.xlane.f32.xlu0 %v2616_v25  ;;  %v2640_v25 = vsel %vm486_vm1, %v2579_v33, 0.0  ;;  %v11609_v33 = vpack.i.bf16 %v11380_v54, %v11370_v46 }
 0x215   : > { %v2401_v29 = vpop.permute.xlu1 %2400  ;;  %v11583_v47 = vpop.xlane.xlu0 %530  ;;  %13963 = vst [vmem:[#allocation42_spill] sm:$0xff] %v11609_v33 }
 0x216   : > { %669 = vadd.xlane.f32.xlu1 %v668_v35  ;;  %13960 = vst [vmem:[#allocation39_spill] sm:$0xff] %v11583_v47  ;;  %v2454_v13 = vsel %vm486_vm1, %v2401_v29, 0.0  ;;  %v11597_v29 = vpack.i.bf16 %v11410_v62, %v11344_v28 }
 0x218   : > { %13961 = vst [vmem:[#allocation40_spill] sm:$0xff] %v11597_v29 }
 0x219   : > { %v642_v32 = vpop.permute.xlu1 %641  ;;  %v2565_v2 = vpop.permute.xlu0 %2564 }
 0x21a   : > { %693 = vadd.xlane.f32.xlu1 %v692_v36  ;;  %v701_v42 = vsel %vm486_vm1, %v642_v32, 0.0  ;;  %v2619_v21 = vsel %vm486_vm1, %v2565_v2, 0.0 }
 0x21b   : > { %702 = vadd.xlane.f32.xlu0 %v701_v42 }
 0x21d   : > { %v632_v49 = vpop.permute.xlu1 %631  ;;  %v2403_v19 = vpop.permute.xlu0 %2402 }
 0x21e   : > { %684 = vadd.xlane.f32.xlu1 %v683_v55  ;;  %v686_v63 = vsel %vm486_vm1, %v632_v49, 0.0  ;;  %v2457_v23 = vsel %vm486_vm1, %v2403_v19, 0.0 }
 0x21f   : > { %687 = vadd.xlane.f32.xlu0 %v686_v63 }
 0x221   : > { %v648_v7 = vpop.permute.xlu1 %647 }
 0x222   : > { %708 = vadd.xlane.f32.xlu1 %v707_v51  ;;  %v710_v12 = vsel %vm486_vm1, %v648_v7, 0.0 }
 0x223   : > { %711 = vadd.xlane.f32.xlu0 %v710_v12 }
 0x226   : > { %2455 = vadd.xlane.f32.xlu1 %v2454_v13 }
 0x227   : > { %2620 = vadd.xlane.f32.xlu0 %v2619_v21  ;;  %v2469_v21 = vsel %vm486_vm1, %v11536_v43, 0.0 }
 0x22a   : > { %678 = vadd.xlane.f32.xlu1 %v677_v20 }
 0x22b   : > { %2458 = vadd.xlane.f32.xlu0 %v2457_v23 }
 0x22e   : > { %2641 = vadd.xlane.f32.xlu1 %v2640_v25 }
 0x232   : > { %2479 = vadd.xlane.f32.xlu1 %v2478_v26 }
 0x243   : > { %10383 = vrot.lane.b32.xlu1 %v11597_v29, %s11242_s26 }
 0x247   : > { %10393 = vrot.lane.b32.xlu1 %v11603_v22, %s11242_s26 }
 0x24b   : > { %10398 = vrot.lane.b32.xlu1 %v11609_v33, %s11242_s26 }
 0x24e   : > { %v11613_v4 = vpop.xlane.xlu0 %509 }
 0x24f   : > { %13964 = vst [vmem:[#allocation43_spill] sm:$0xff] %v11613_v4  ;;  %2552 = vrot.lane.b32.xlu1 %v11406_v61, %s11240_s22 }
 0x252   : > { %v11617_v35 = vpop.xlane.xlu0 %533  ;;  %v11619_v32 = vpop.xlane.xlu1 %500 }
 0x253   : > { %13965 = vst [vmem:[#allocation44_spill] sm:$0xff] %v11617_v35  ;;  %2558 = vrot.lane.b32.xlu1 %v11462_v11, %s11240_s22 }
 0x256   : > { %v11623_v36 = vpop.xlane.xlu0 %503  ;;  %v11625_v42 = vpop.xlane.xlu1 %524 }
 0x257   : > { %2404 = vrot.lane.b32.xlu1 %v11436_v8, %s11241_s23 }
 0x25a   : > { %v11629_v49 = vpop.xlane.xlu0 %527  ;;  %v2581_v55 = vpop.permute.xlu1 %2580 }
 0x25b   : > { %13966 = vst [vmem:[#allocation45_spill] sm:$0xff] %v11629_v49  ;;  %2574 = vrot.lane.b32.xlu1 %v11488_v16, %s11240_s22  ;;  %v2643_v20 = vsel %vm486_vm1, %v2581_v55, 0.0 }
 0x25e   : > { %v673_v63 = vpop.xlane.xlu0 %672  ;;  %v2419_v2 = vpop.permute.xlu1 %2418 }
 0x25f   : > { %2576 = vrot.lane.b32.xlu1 %v11526_v30, %s11240_s22 }
 0x262   : > { %v11635_v7 = vpop.xlane.xlu0 %2605  ;;  %v628_v51 = vpop.permute.xlu1 %627 }
 0x263   : > { %v680_v12 = vsel %vm486_vm1, %v628_v51, 0.0  ;;  %v715_v51 = vadd.f32 1e-24, %v673_v63 }
 0x264   : > { %681 = vadd.xlane.f32.xlu0 %v680_v12 }
 0x265   : > { %10703 = vrsqrt.f32 %v715_v51 }
 0x266   : > { %v11638_v13 = vpop.xlane.xlu0 %2443  ;;  %v644_v23 = vpop.permute.xlu1 %643 }
 0x267   : > { %v704_v26 = vsel %vm486_vm1, %v644_v23, 0.0 }
 0x268   : > { %2470 = vadd.xlane.f32.xlu0 %v2469_v21 }
 0x26a   : > { %v11642_v19 = vpop.xlane.xlu0 %2629 }
 0x26c   : > { %2644 = vadd.xlane.f32.xlu0 %v2643_v20  ;;  %v2481_v20 = vsel %vm486_vm1, %v2419_v2, 0.0 }
 0x26e   : > { %v11645_v25 = vpop.xlane.xlu0 %666 }
 0x26f   : > { %v10704_v43 = vpop.eup %10703 }
 0x270   : > { %705 = vadd.xlane.f32.xlu0 %v704_v26  ;;  %v747_v29 = vmul.f32 %v10704_v43, %v11344_v28 }
 0x272   : > { %v11648_v33 = vpop.xlane.xlu0 %690 }
 0x276   : > { %v676_v12 = vpop.xlane.xlu0 %675 }
 0x277   : > { %v716_v22 = vadd.f32 1e-24, %v676_v12 }
 0x279   : > { %10705 = vrsqrt.f32 %v716_v22  ;;  %v11656_v22 = vpack.i.bf16 %v11372_v48, %v11364_v41 }
 0x27a   : > { %v700_v26 = vpop.xlane.xlu0 %699 }
 0x27b   : > { %v724_v63 = vadd.f32 1e-24, %v700_v26  ;;  %13967 = vst [vmem:[#allocation46_spill] sm:$0xff] %v11656_v22 }
 0x283   : > { %v10706_v21 = vpop.eup %10705 }
 0x284   : > { %v748_v55 = vmul.f32 %v10706_v21, %v11410_v62 }
 0x286   : > { %v10377_v18 = vpack.i.bf16 %v748_v55, %v747_v29 }
 0x288   : > { %10378 = vrot.lane.b32.xlu0 %v10377_v18, %s11239_s21 }
 0x297   : > { %v697_v23 = vpop.xlane.xlu1 %696 }
 0x298   : > { %v723_v10 = vadd.f32 1e-24, %v697_v23 }
 0x29a   : > { %10707 = vrsqrt.f32 %v723_v10 }
 0x29b   : > { %10709 = vrsqrt.f32 %v724_v63  ;;  %v2468_v51 = vpop.xlane.xlu1 %2467 }
 0x29f   : > { %v11661_v2 = vpop.xlane.xlu1 %2632 }
 0x2a3   : > { %v670_v21 = vpop.xlane.xlu1 %669 }
 0x2a4   : > { %v10708_v12 = vpop.eup %10707 }
 0x2a5   : > { %v10710_v29 = vpop.eup %10709  ;;  %v755_v18 = vmul.f32 %v10708_v12, %v11346_v31 }
 0x2a6   : > { %v756_v10 = vmul.f32 %v10710_v29, %v11388_v57  ;;  %v2609_v29 = vpop.xlane.xlu0 %2608 }
 0x2a7   : > { %2482 = vadd.xlane.f32.xlu0 %v2481_v20  ;;  %v694_v55 = vpop.xlane.xlu1 %693 }
 0x2a8   : > { %v10402_v43 = vpack.i.bf16 %v756_v10, %v755_v18 }
 0x2aa   : > { %v2447_v10 = vpop.xlane.xlu0 %2446 }
 0x2ab   : > { %v11673_v20 = vpop.xlane.xlu1 %684 }
 0x2af   : > { %v11677_v23 = vpop.xlane.xlu1 %708 }
 0x2b3   : > { %v11683_v26 = vpop.xlane.xlu1 %2455 }
 0x2b7   : > { %v11687_v63 = vpop.xlane.xlu1 %678 }
 0x2bb   : > { %v11693_v12 = vpop.xlane.xlu1 %2641 }
 0x2bd   : > { %10388 = vrot.lane.b32.xlu0 %v11656_v22, %s11242_s26  ;;  %v11701_v22 = vpop.xlane.xlu0 %2617 }
 0x2bf   : > { %v11697_v18 = vpop.xlane.xlu1 %2479 }
 0x2c1   : > { %2550 = vrot.lane.b32.xlu0 %v11392_v58, %s11240_s22  ;;  %v11703_v60 = vpop.xlane.xlu0 %702 }
 0x2c5   : > { %10403 = vrot.lane.b32.xlu0 %v10402_v43, %s11239_s21  ;;  %v11699_v43 = vpop.permute.xlu1 %10383 }
 0x2c6   : > { %13968 = vst [vmem:[#allocation47_spill] sm:$0xff] %v11699_v43 }
 0x2c9   : > { %2388 = vrot.lane.b32.xlu0 %v11392_v58, %s11241_s23  ;;  %v11705_v39 = vpop.permute.xlu1 %10393 }
 0x2ca   : > { %13969 = vst [vmem:[#allocation48_spill] sm:$0xff] %v11705_v39 }
 0x2cd   : > { %2390 = vrot.lane.b32.xlu0 %v11406_v61, %s11241_s23 }
 0x2d1   : > { %2560 = vrot.lane.b32.xlu0 %v11518_v24, %s11240_s22 }
 0x2d5   : > { %2396 = vrot.lane.b32.xlu0 %v11462_v11, %s11241_s23 }
 0x2d9   : > { %2398 = vrot.lane.b32.xlu0 %v11518_v24, %s11241_s23 }
 0x2dd   : > { %2566 = vrot.lane.b32.xlu0 %v11436_v8, %s11240_s22 }
 0x2e1   : > { %2568 = vrot.lane.b32.xlu0 %v11430_v6, %s11240_s22 }
 0x2e5   : > { %2406 = vrot.lane.b32.xlu0 %v11430_v6, %s11241_s23  ;;  %v11707_v6 = vpop.xlane.xlu0 %687 }
 0x2e9   : > { %2412 = vrot.lane.b32.xlu0 %v11488_v16, %s11241_s23  ;;  %v11709_v16 = vpop.permute.xlu1 %10398  ;;  %v11711_v8 = vpop.xlane.xlu0 %711 }
 0x2ea   : > { %13970 = vst [vmem:[#allocation49_spill] sm:$0xff] %v11709_v16 }
 0x2ed   : > { %2414 = vrot.lane.b32.xlu0 %v11526_v30, %s11241_s23  ;;  %v2553_v17 = vpop.permute.xlu1 %2552  ;;  %v11714_v9 = vpop.xlane.xlu0 %2620 }
 0x2ee   : > { %v2601_v30 = vsel %vm486_vm1, %v2553_v17, 0.0 }
 0x2f1   : > { %v11716_v24 = vpop.xlane.xlu0 %2458  ;;  %v2559_v35 = vpop.permute.xlu1 %2558 }
 0x2f2   : > { %13971 = vst [vmem:[#allocation50_spill] sm:$0xff] %v11716_v24  ;;  %v2610_v45 = vsel %vm486_vm1, %v2559_v35, 0.0  ;;  %v2649_v35 = vadd.f32 1e-24, %v2609_v29 }
 0x2f5   : > { %v11718_v1 = vpop.xlane.xlu0 %681 }
 0x2f9   : > { %v2471_v11 = vpop.xlane.xlu0 %2470 }
 0x2fd   : > { %v2645_v37 = vpop.xlane.xlu0 %2644 }
 0x301   : > { %v11720_v61 = vpop.xlane.xlu0 %705 }
 0x305   : > { %v11722_v39 = vpop.permute.xlu0 %10378 }
 0x30c   : > { %2602 = vadd.xlane.f32.xlu0 %v2601_v30 }
 0x334   : > { %v11724_v58 = vpop.xlane.xlu0 %2482 }
 0x335   : > { %13972 = vst [vmem:[#allocation51_spill] sm:$0xff] %v11724_v58  ;;  %v2494_v58 = vadd.f32 1e-24, %v2468_v51  ;;  %v2495_v51 = vadd.f32 1e-24, %v2471_v11 }
 0x337   : > { %10711 = vrsqrt.f32 %v2494_v58  ;;  %v2648_v58 = vadd.f32 1e-24, %v11635_v7  ;;  %v2656_v7 = vadd.f32 1e-24, %v11642_v19  ;;  %v2660_v19 = vadd.f32 1e-24, %v11693_v12 }
 0x338   : > { %v11726_v16 = vpop.permute.xlu0 %10388 }
 0x339   : > { %13973 = vst [vmem:[#allocation52_spill] sm:$0xff] %v11726_v16 }
 0x33c   : > { %v2551_v49 = vpop.permute.xlu0 %2550 }
 0x33d   : > { %v2598_v17 = vsel %vm486_vm1, %v2551_v49, 0.0  ;;  %v714_v49 = vadd.f32 1e-24, %v670_v21  ;;  %v11741_v21 = vstv %s8941_s27 }
 0x33e   : > { %2599 = vadd.xlane.f32.xlu1 %v2598_v17 }
 0x33f   : > { %10713 = vrsqrt.f32 %v714_v49  ;;  %v2661_v49 = vadd.f32 1e-24, %v2645_v37  ;;  %v728_v37 = vadd.f32 1e-24, %v11711_v8 }
 0x340   : > { %v11729_v30 = vpop.permute.xlu0 %10403 }
 0x341   : > { %13974 = vst [vmem:[#allocation53_spill] sm:$0xff] %v11729_v30 }
 0x344   : > { %v2389_v43 = vpop.permute.xlu0 %2388 }
 0x345   : > { %v2436_v24 = vsel %vm486_vm1, %v2389_v43, 0.0  ;;  %v713_v43 = vadd.f32 1e-24, %v11645_v25  ;;  %v10712_v25 = vpop.eup %10711 }
 0x346   : > { %2437 = vadd.xlane.f32.xlu1 %v2436_v24  ;;  %v722_v24 = vadd.f32 1e-24, %v694_v55  ;;  %v2657_v55 = vadd.f32 1e-24, %v11661_v2  ;;  %v727_v2 = vadd.f32 1e-24, %v11677_v23 }
 0x347   : > { %10715 = vrsqrt.f32 %v713_v43 }
 0x348   : > { %v2391_v47 = vpop.permute.xlu0 %2390  ;;  %10717 = vrsqrt.f32 %v722_v24 }
 0x349   : > { %v2439_v5 = vsel %vm486_vm1, %v2391_v47, 0.0  ;;  %10719 = vrsqrt.f32 %v2649_v35  ;;  %v10714_v29 = vpop.eup %10713 }
 0x34a   : > { %2440 = vadd.xlane.f32.xlu0 %v2439_v5  ;;  %2611 = vadd.xlane.f32.xlu1 %v2610_v45  ;;  %v721_v5 = vadd.f32 1e-24, %v11648_v33  ;;  %v2528_v33 = vmul.f32 %v10712_v25, %v11741_v21 }
 0x34c   : > { %v2561_v16 = vpop.permute.xlu0 %2560  ;;  %10721 = vrsqrt.f32 %v721_v5  ;;  %v2544_v11 = vmul.f32 %v2528_v33, %v11346_v31 }
 0x34d   : > { %v2613_v4 = vsel %vm486_vm1, %v2561_v16, 0.0  ;;  %v2487_v16 = vadd.f32 1e-24, %v2447_v10  ;;  %10723 = vrsqrt.f32 %v2648_v58  ;;  %v719_v10 = vadd.f32 1e-24, %v11673_v20 }
 0x34e   : > { %2614 = vadd.xlane.f32.xlu0 %v2613_v4  ;;  %v2486_v4 = vadd.f32 1e-24, %v11638_v13  ;;  %v720_v13 = vadd.f32 1e-24, %v11707_v6 }
 0x34f   : > { %10725 = vrsqrt.f32 %v2487_v16  ;;  %v2653_v16 = vadd.f32 1e-24, %v11714_v9 }
 0x350   : > { %v2397_v17 = vpop.permute.xlu0 %2396  ;;  %10727 = vrsqrt.f32 %v2486_v4 }
 0x351   : > { %v2448_v30 = vsel %vm486_vm1, %v2397_v17, 0.0  ;;  %10729 = vrsqrt.f32 %v2495_v51  ;;  %v746_v17 = vmul.f32 %v10714_v29, %v11396_v59 }
 0x352   : > { %2449 = vadd.xlane.f32.xlu1 %v2448_v30  ;;  %v10716_v30 = vpop.eup %10715  ;;  %10731 = vrsqrt.f32 %v2657_v55  ;;  %v2652_v55 = vadd.f32 1e-24, %v11701_v22 }
 0x353   : > { %v10718_v43 = vpop.eup %10717  ;;  %10733 = vrsqrt.f32 %v2656_v7  ;;  %v745_v20 = vmul.f32 %v10716_v30, %v11376_v52  ;;  %v2490_v30 = vadd.f32 1e-24, %v11683_v26  ;;  %v2498_v26 = vadd.f32 1e-24, %v11697_v18 }
 0x354   : > { %v2399_v47 = vpop.permute.xlu0 %2398  ;;  %v10720_v24 = vpop.eup %10719  ;;  %10735 = vrsqrt.f32 %v719_v10  ;;  %v718_v18 = vadd.f32 1e-24, %v11718_v1 }
 0x355   : > { %v2451_v45 = vsel %vm486_vm1, %v2399_v47, 0.0  ;;  %10737 = vrsqrt.f32 %v720_v13  ;;  %v10417_v35 = vpack.i.bf16 %v746_v17, %v745_v20  ;;  %v2681_v23 = vmul.f32 %v10720_v24, %v11410_v62 }
 0x356   : > { %2452 = vadd.xlane.f32.xlu0 %v2451_v45  ;;  %v10722_v6 = vpop.eup %10721  ;;  %10739 = vrsqrt.f32 %v2661_v49  ;;  %v754_v45 = vmul.f32 %v10718_v43, %v11422_v3 }
 0x357   : > { %v10724_v47 = vpop.eup %10723  ;;  %10741 = vrsqrt.f32 %v727_v2  ;;  %v753_v12 = vmul.f32 %v10722_v6, %v11348_v34 }
 0x358   : > { %10743 = vrsqrt.f32 %v2660_v19  ;;  %v2680_v8 = vmul.f32 %v10724_v47, %v11344_v28 }
 0x359   : > { %v10726_v5 = vpop.eup %10725  ;;  %10745 = vrsqrt.f32 %v728_v37  ;;  %v10422_v4 = vpack.i.bf16 %v754_v45, %v753_v12 }
 0x35a   : > { %v10728_v58 = vpop.eup %10727  ;;  %v2521_v25 = vmul.f32 %v10726_v5, %v11741_v21  ;;  %v10407_v33 = vpack.i.bf16 %v2681_v23, %v2680_v8  ;;  %10747 = vrsqrt.f32 %v2653_v16  ;;  %v717_v8 = vadd.f32 1e-24, %v11687_v63 }
 0x35b   : > { %v10730_v51 = vpop.eup %10729  ;;  %v2520_v29 = vmul.f32 %v10728_v58, %v11741_v21  ;;  %10749 = vrsqrt.f32 %v2652_v55 }
 0x35c   : > { %v10732_v7 = vpop.eup %10731  ;;  %v2537_v13 = vmul.f32 %v2521_v25, %v11410_v62  ;;  %v2529_v49 = vmul.f32 %v10730_v51, %v11741_v21  ;;  %10751 = vrsqrt.f32 %v2490_v30 }
 0x35d   : > { %v10734_v10 = vpop.eup %10733  ;;  %v2536_v22 = vmul.f32 %v2520_v29, %v11344_v28  ;;  %v2689_v17 = vmul.f32 %v10732_v7, %v11388_v57  ;;  %10753 = vrsqrt.f32 %v2498_v26  ;;  %v2405_v26 = vpop.permute.xlu1 %2404 }
 0x35e   : > { %v10736_v9 = vpop.eup %10735  ;;  %v2688_v24 = vmul.f32 %v10734_v10, %v11346_v31  ;;  %v2545_v20 = vmul.f32 %v2529_v49, %v11388_v57  ;;  %10755 = vrsqrt.f32 %v718_v18  ;;  %v726_v18 = vadd.f32 1e-24, %v11720_v61 }
 0x35f   : > { %v751_v6 = vmul.f32 %v10736_v9, %v11364_v41  ;;  %10757 = vrsqrt.f32 %v717_v8  ;;  %v2460_v8 = vsel %vm486_vm1, %v2405_v26, 0.0 }
 0x360   : > { %10759 = vrsqrt.f32 %v726_v18 }
 0x363   : > { %3174 = vrot.lane.b32.xlu1 %v2544_v11, %s11241_s23  ;;  %v10738_v11 = vpop.eup %10737 }
 0x364   : > { %v10740_v43 = vpop.eup %10739  ;;  %v752_v37 = vmul.f32 %v10738_v11, %v11372_v48 }
 0x365   : > { %v10742_v2 = vpop.eup %10741  ;;  %v2693_v45 = vmul.f32 %v10740_v43, %v11380_v54 }
 0x366   : > { %v10744_v19 = vpop.eup %10743  ;;  %v10427_v23 = vpack.i.bf16 %v752_v37, %v751_v6  ;;  %v759_v58 = vmul.f32 %v10742_v2, %v11370_v46 }
 0x367   : > { %10418 = vrot.lane.b32.xlu1 %v10417_v35, %s11239_s21  ;;  %v10746_v47 = vpop.eup %10745  ;;  %v10412_v35 = vpack.i.bf16 %v2689_v17, %v2688_v24  ;;  %v2692_v5 = vmul.f32 %v10744_v19, %v11370_v46  ;;  %v2575_v19 = vpop.permute.xlu1 %2574 }
 0x368   : > { %v760_v12 = vmul.f32 %v10746_v47, %v11380_v54  ;;  %v10748_v16 = vpop.eup %10747  ;;  %v2634_v61 = vsel %vm486_vm1, %v2575_v19, 0.0 }
 0x369   : > { %v10750_v25 = vpop.eup %10749  ;;  %v2685_v51 = vmul.f32 %v10748_v16, %v11372_v48 }
 0x36a   : > { %v10432_v1 = vpack.i.bf16 %v760_v12, %v759_v58  ;;  %v10752_v55 = vpop.eup %10751 }
 0x36b   : > { %10423 = vrot.lane.b32.xlu1 %v10422_v4, %s11239_s21  ;;  %v10442_v4 = vpack.i.bf16 %v2693_v45, %v2692_v5  ;;  %v2524_v7 = vmul.f32 %v10752_v55, %v11741_v21  ;;  %v10754_v63 = vpop.eup %10753  ;;  %v2577_v47 = vpop.permute.xlu1 %2576 }
 0x36c   : > { %10408 = vrot.lane.b32.xlu0 %v10407_v33, %s11240_s22  ;;  %v2684_v33 = vmul.f32 %v10750_v25, %v11364_v41  ;;  %v2532_v30 = vmul.f32 %v10754_v63, %v11741_v21  ;;  %v10756_v9 = vpop.eup %10755 }
 0x36d   : > { %v2540_v10 = vmul.f32 %v2524_v7, %v11364_v41  ;;  %v750_v11 = vmul.f32 %v10756_v9, %v11378_v53 }
 0x36e   : > { %v10437_v29 = vpack.i.bf16 %v2685_v51, %v2684_v33  ;;  %v2548_v49 = vmul.f32 %v2532_v30, %v11370_v46  ;;  %v11816_v51 = vpack.i.bf16 %v11378_v53, %v11368_v44  ;;  %v11834_v30 = vpack.i.bf16 %v11384_v56, %v11374_v50 }
 0x36f   : > { %2796 = vrot.lane.b32.xlu1 %v2537_v13, %s11241_s23  ;;  %v10758_v13 = vpop.eup %10757 }
 0x370   : > { %2794 = vrot.lane.b32.xlu0 %v2536_v22, %s11241_s23  ;;  %v2567_v22 = vpop.permute.xlu0 %2566  ;;  %v749_v17 = vmul.f32 %v10758_v13, %v11368_v44  ;;  %v10760_v12 = vpop.eup %10759  ;;  %13975 = vst [vmem:[#allocation54_spill] sm:$0xff] %v11816_v51  ;;  %13978 = vst [vmem:[#allocation57_spill] sm:$0xff] %v11834_v30 }
 0x371   : > { %v2622_v58 = vsel %vm486_vm1, %v2567_v22, 0.0 }
 0x372   : > { %v10447_v43 = vpack.i.bf16 %v750_v11, %v749_v17 }
 0x373   : > { %3176 = vrot.lane.b32.xlu1 %v2545_v20, %s11241_s23 }
 0x374   : > { %10413 = vrot.lane.b32.xlu0 %v10412_v35, %s11240_s22  ;;  %v2569_v2 = vpop.permute.xlu0 %2568  ;;  %v2637_v35 = vsel %vm486_vm1, %v2577_v47, 0.0  ;;  %v536_v47 = vadd.f32 1e-24, %v11558_v14 }
 0x375   : > { %v2625_v20 = vsel %vm486_vm1, %v2569_v2, 0.0 }
 0x377   : > { %10428 = vrot.lane.b32.xlu1 %v10427_v23, %s11239_s21  ;;  %v725_v23 = vadd.f32 1e-24, %v11703_v60 }
 0x378   : > { %10443 = vrot.lane.b32.xlu0 %v10442_v4, %s11240_s22  ;;  %v2407_v24 = vpop.permute.xlu0 %2406  ;;  %v758_v4 = vmul.f32 %v10760_v12, %v11384_v56 }
 0x379   : > { %v2463_v37 = vsel %vm486_vm1, %v2407_v24, 0.0  ;;  %10761 = vrsqrt.f32 %v725_v23 }
 0x37b   : > { %10433 = vrot.lane.b32.xlu1 %v10432_v1, %s11239_s21 }
 0x37c   : > { %v2413_v6 = vpop.permute.xlu0 %2412 }
 0x37d   : > { %v2472_v60 = vsel %vm486_vm1, %v2413_v6, 0.0  ;;  %v537_v6 = vadd.f32 1e-24, %v11533_v40 }
 0x37f   : > { %10438 = vrot.lane.b32.xlu1 %v10437_v29, %s11240_s22  ;;  %v11822_v29 = vpack.i.bf16 %v11396_v59, %v11376_v52 }
 0x380   : > { %v2415_v45 = vpop.permute.xlu0 %2414 }
 0x381   : > { %v2475_v5 = vsel %vm486_vm1, %v2415_v45, 0.0  ;;  %13976 = vst [vmem:[#allocation55_spill] sm:$0xff] %v11822_v29 }
 0x383   : > { %2984 = vrot.lane.b32.xlu1 %v2540_v10, %s11241_s23  ;;  %v10762_v16 = vpop.eup %10761  ;;  %v11828_v10 = vpack.i.bf16 %v11422_v3, %v11348_v34 }
 0x384   : > { %v757_v25 = vmul.f32 %v10762_v16, %v11374_v50  ;;  %v538_v16 = vadd.f32 1e-24, %v11547_v0  ;;  %v9068_v0 = vld [vmem:[%s13795_s4 + $0x30] sm:$0xff] }
 0x385   : > { %13977 = vst [vmem:[#allocation56_spill] sm:$0xff] %v11828_v10 }
 0x386   : > { %v10457_v1 = vpack.i.bf16 %v758_v4, %v757_v25 }
 0x387   : > { %3364 = vrot.lane.b32.xlu1 %v2548_v49, %s11241_s23 }
 0x38b   : > { %10448 = vrot.lane.b32.xlu1 %v10447_v43, %s11239_s21 }
 0x397   : > { %2626 = vadd.xlane.f32.xlu0 %v2625_v20 }
 0x399   : > { %v2603_v55 = vpop.xlane.xlu0 %2602 }
 0x39a   : > { %v2647_v33 = vadd.f32 1e-24, %v2603_v55 }
 0x39b   : > { %2464 = vadd.xlane.f32.xlu0 %v2463_v37 }
 0x39c   : > { %10763 = vrsqrt.f32 %v2647_v33 }
 0x39f   : > { %2638 = vadd.xlane.f32.xlu0 %v2637_v35 }
 0x3a3   : > { %2476 = vadd.xlane.f32.xlu0 %v2475_v5  ;;  %v544_v5 = vadd.f32 1e-24, %v11560_v15  ;;  %v539_v15 = vadd.f32 1e-24, %v11619_v32 }
 0x3a6   : > { %v10764_v49 = vpop.eup %10763 }
 0x3a7   : > { %v2679_v24 = vmul.f32 %v10764_v49, %v11396_v59 }
 0x3af   : > { %2623 = vadd.xlane.f32.xlu1 %v2622_v58  ;;  %v547_v58 = vadd.f32 1e-24, %v11625_v42 }
 0x3b3   : > { %2461 = vadd.xlane.f32.xlu1 %v2460_v8 }
 0x3b7   : > { %2635 = vadd.xlane.f32.xlu1 %v2634_v61 }
 0x3b9   : > { %10458 = vrot.lane.b32.xlu0 %v10457_v1, %s11239_s21  ;;  %v10381_v1 = vunpack.i.h.bf16 %v11722_v39 }
 0x3bb   : > { %2473 = vadd.xlane.f32.xlu1 %v2472_v60  ;;  %v10380_v60 = vunpack.i.l.bf16 %v11722_v39 }
 0x3bd   : > { %10463 = vrot.lane.b32.xlu0 %v11816_v51, %s11242_s26 }
 0x3cb   : > { %v2600_v7 = vpop.xlane.xlu1 %2599 }
 0x3cc   : > { %v2646_v63 = vadd.f32 1e-24, %v2600_v7  ;;  %10453 = vrot.lane.b32.xlu1 %v11822_v29, %s11242_s26 }
 0x3ce   : > { %10765 = vrsqrt.f32 %v2646_v63 }
 0x3d0   : > { %10468 = vrot.lane.b32.xlu1 %v11828_v10, %s11242_s26 }
 0x3d3   : > { %v2438_v9 = vpop.xlane.xlu1 %2437 }
 0x3d4   : > { %v2484_v13 = vadd.f32 1e-24, %v2438_v9  ;;  %10473 = vrot.lane.b32.xlu1 %v11834_v30, %s11242_s26 }
 0x3d6   : > { %10767 = vrsqrt.f32 %v2484_v13 }
 0x3d7   : > { %v2441_v11 = vpop.xlane.xlu0 %2440  ;;  %v2612_v22 = vpop.xlane.xlu1 %2611 }
 0x3d8   : > { %v10766_v17 = vpop.eup %10765  ;;  %v2485_v43 = vadd.f32 1e-24, %v2441_v11  ;;  %v2650_v2 = vadd.f32 1e-24, %v2612_v22  ;;  %v9977_v22 = vpack.c.bf16 %v10381_v1, %v10380_v60  ;;  %v540_v60 = vadd.f32 1e-24, %v11623_v36 }
 0x3d9   : > { %v2678_v26 = vmul.f32 %v10766_v17, %v11376_v52 }
 0x3da   : > { %10769 = vrsqrt.f32 %v2485_v43 }
 0x3db   : > { %v2615_v19 = vpop.xlane.xlu0 %2614  ;;  %v10477_v20 = vpack.i.bf16 %v2679_v24, %v2678_v26  ;;  %10771 = vrsqrt.f32 %v2650_v2 }
 0x3dc   : > { %v2651_v37 = vadd.f32 1e-24, %v2615_v19 }
 0x3dd   : > { %10478 = vrot.lane.b32.xlu0 %v10477_v20, %s11240_s22 }
 0x3de   : > { %10773 = vrsqrt.f32 %v2651_v37 }
 0x3df   : > { %v2450_v35 = vpop.xlane.xlu1 %2449  ;;  %10775 = vrsqrt.f32 %v537_v6 }
 0x3e0   : > { %v10768_v45 = vpop.eup %10767  ;;  %v2488_v18 = vadd.f32 1e-24, %v2450_v35  ;;  %10777 = vrsqrt.f32 %v536_v47 }
 0x3e1   : > { %v2518_v23 = vmul.f32 %v10768_v45, %v11741_v21 }
 0x3e2   : > { %10779 = vrsqrt.f32 %v2488_v18 }
 0x3e3   : > { %v11846_v40 = vpop.permute.xlu1 %3174  ;;  %v2534_v12 = vmul.f32 %v2518_v23, %v11376_v52  ;;  %10781 = vrsqrt.f32 %v544_v5 }
 0x3e4   : > { %v10770_v14 = vpop.eup %10769  ;;  %10783 = vrsqrt.f32 %v547_v58 }
 0x3e5   : > { %2699 = vrot.lane.b32.xlu0 %v2534_v12, %s11241_s23  ;;  %v2519_v8 = vmul.f32 %v10770_v14, %v11741_v21  ;;  %v10772_v4 = vpop.eup %10771  ;;  %10785 = vrsqrt.f32 %v538_v16 }
 0x3e6   : > { %v2682_v32 = vmul.f32 %v10772_v4, %v11368_v44  ;;  %10787 = vrsqrt.f32 %v539_v15 }
 0x3e7   : > { %v10419_v25 = vpop.permute.xlu1 %10418  ;;  %v2535_v42 = vmul.f32 %v2519_v8, %v11396_v59  ;;  %10789 = vrsqrt.f32 %v540_v60 }
 0x3e8   : > { %v10774_v61 = vpop.eup %10773  ;;  %v10421_v55 = vunpack.i.h.bf16 %v10419_v25  ;;  %v10420_v33 = vunpack.i.l.bf16 %v10419_v25 }
 0x3e9   : > { %2701 = vrot.lane.b32.xlu1 %v2535_v42, %s11241_s23  ;;  %v2683_v7 = vmul.f32 %v10774_v61, %v11378_v53  ;;  %v10776_v63 = vpop.eup %10775 }
 0x3ea   : > { %v9971_v9 = vpack.c.bf16 %v10421_v55, %v10420_v33  ;;  %v10778_v13 = vpop.eup %10777  ;;  %v571_v37 = vmul.f32 %v10776_v63, %v11563_v38  ;;  %v541_v55 = vadd.f32 1e-24, %v11578_v27  ;;  %v13981_v63 = vld [vmem:[#allocation43_spill] sm:$0xff] }
 0x3eb   : > { %v10424_v39 = vpop.permute.xlu1 %10423  ;;  %v10487_v49 = vpack.i.bf16 %v2683_v7, %v2682_v32  ;;  %v570_v26 = vmul.f32 %v10778_v13, %v11563_v38  ;;  %v11911_v7 = vpop.xlane.xlu0 %2452  ;;  %v13982_v13 = vld [vmem:[#allocation37_spill] sm:$0xff] }
 0x3ec   : > { %v10780_v11 = vpop.eup %10779  ;;  %v10426_v17 = vunpack.i.h.bf16 %v10424_v39  ;;  %v10425_v43 = vunpack.i.l.bf16 %v10424_v39  ;;  %9973 = vmatprep.subr.msk.bf16.mxu1 %vm11859_vm2, %v9971_v9  ;;  %v587_v23 = vmul.f32 %v571_v37, %v11344_v28  ;;  %10791 = vrsqrt.f32 %v541_v55  ;;  %v13984_v37 = vld [vmem:[#allocation39_spill] sm:$0xff] }
 0x3ed   : > { %10488 = vrot.lane.b32.xlu1 %v10487_v49, %s11240_s22  ;;  %9976 = vmatpush3.bf16.xpose.msk.msra.mxu1 %vm11859_vm2, %v9971_v9  ;;  %v2522_v2 = vmul.f32 %v10780_v11, %v11741_v21  ;;  %v10782_v19 = vpop.eup %10781  ;;  %v586_v35 = vmul.f32 %v570_v26, %v11396_v59  ;;  %v542_v9 = vadd.f32 1e-24, %v13981_v63  ;;  %v545_v39 = vadd.f32 1e-24, %v13982_v13 }
 0x3ee   : > { %v9995_v24 = vpack.c.bf16 %v10426_v17, %v10425_v43  ;;  %9979 = vmatprep.subr.msk.bf16.mxu1 %vm11859_vm2, %v9977_v22  ;;  %v10784_v47 = vpop.eup %10783  ;;  %v578_v45 = vmul.f32 %v10782_v19, %v11563_v38  ;;  %v13983_v19 = vld [vmem:[#allocation38_spill] sm:$0xff] }
 0x3ef   : > { %v11874_v20 = vpop.permute.xlu1 %2796  ;;  %v2538_v6 = vmul.f32 %v2522_v2, %v11368_v44  ;;  %v10786_v18 = vpop.eup %10785  ;;  %v581_v58 = vmul.f32 %v10784_v47, %v11563_v38  ;;  %10793 = vrsqrt.f32 %v542_v9  ;;  %v549_v47 = vadd.f32 1e-24, %v13984_v37 }
 0x3f0   : > { %9997 = vmatprep.subr.msk.bf16.mxu0 %vm11859_vm2, %v9995_v24  ;;  %v10788_v12 = vpop.eup %10787  ;;  %v572_v14 = vmul.f32 %v10786_v18, %v11563_v38  ;;  %v594_v16 = vmul.f32 %v578_v45, %v11422_v3  ;;  %10795 = vrsqrt.f32 %v545_v39  ;;  %v11915_v27 = vpop.permute.xlu0 %10408  ;;  %v13985_v18 = vld [vmem:[#allocation53_spill] sm:$0xff] }
 0x3f1   : > { %2889 = vrot.lane.b32.xlu1 %v2538_v6, %s11241_s23  ;;  %10000 = vmatpush3.bf16.xpose.msk.msra.mxu0 %vm11859_vm2, %v9995_v24  ;;  %v597_v4 = vmul.f32 %v581_v58, %v11374_v50  ;;  %v573_v15 = vmul.f32 %v10788_v12, %v11563_v38  ;;  %v10790_v2 = vpop.eup %10789  ;;  %v546_v6 = vadd.f32 1e-24, %v13983_v19  ;;  %v10405_v58 = vunpack.i.l.bf16 %v13985_v18 }
 0x3f2   : > { %v588_v25 = vmul.f32 %v572_v14, %v11410_v62 }
 0x3f3   : > { %v11885_v5 = vpop.permute.xlu1 %3176  ;;  %v589_v61 = vmul.f32 %v573_v15, %v11368_v44  ;;  %10797 = vrsqrt.f32 %v546_v6 }
 0x3f4   : > { %9456 = vmatmul.mubr.msk.f32.vlgmr.msra.gmra.mrb[8].mxu1 %vm486_vm1, %v586_v35  ;;  %v574_v35 = vmul.f32 %v10790_v2, %v11563_v38  ;;  %v11929_v12 = vpop.permute.xlu0 %2794  ;;  %10799 = vrsqrt.f32 %v549_v47  ;;  %v13987_v2 = vld [vmem:[#allocation47_spill] sm:$0xff] }
 0x3f5   : > { %9982 = vmatpush3.bf16.xpose.msk.msra.mxu1 %vm11859_vm2, %v9977_v22  ;;  %9462 = vmatprep.mubr.msk.f32.mxu1 %vm486_vm1, %v587_v23  ;;  %v10406_v23 = vunpack.i.h.bf16 %v13985_v18 }
 0x3f6   : > { %v10792_v26 = vpop.eup %10791  ;;  %v590_v14 = vmul.f32 %v574_v35, %v11378_v53 }
 0x3f7   : > { %v10429_v8 = vpop.permute.xlu1 %10428  ;;  %v575_v45 = vmul.f32 %v10792_v26, %v11563_v38  ;;  %v10001_v15 = vpack.c.bf16 %v10406_v23, %v10405_v58  ;;  %v10386_v26 = vunpack.i.h.bf16 %v13987_v2  ;;  %v13988_v23 = vld [vmem:[#allocation45_spill] sm:$0xff] }
 0x3f8   : > { %9484 = vmatmul.mubr.msk.f32.vlgmr.msra.gmra.mrb[8].mxu0 %vm486_vm1, %v594_v16  ;;  %v10431_v11 = vunpack.i.h.bf16 %v10429_v8  ;;  %v10430_v22 = vunpack.i.l.bf16 %v10429_v8  ;;  %v11939_v55 = vpop.permute.xlu0 %10413  ;;  %v548_v58 = vadd.f32 1e-24, %v13988_v23 }
 0x3f9   : > { %9497 = vmatprep.mubr.msk.f32.mxu0 %vm486_vm1, %v597_v4  ;;  %v10794_v16 = vpop.eup %10793  ;;  %v591_v8 = vmul.f32 %v575_v45, %v11364_v41 }
 0x3fa   : > { %v9989_v24 = vpack.c.bf16 %v10431_v11, %v10430_v22  ;;  %v10796_v4 = vpop.eup %10795  ;;  %v576_v60 = vmul.f32 %v10794_v16, %v11563_v38 }
 0x3fb   : > { %v10434_v42 = vpop.permute.xlu1 %10433  ;;  %v579_v63 = vmul.f32 %v10796_v4, %v11563_v38 }
 0x3fc   : > { %9463 = vmatmul.mubr.msk.f32.vlgmr.msra.gmra.mrb[10].mxu1 %vm486_vm1, %v588_v25  ;;  %v13986_v25 = vld [vmem:[#allocation44_spill] sm:$0xff]  ;;  %v10436_v9 = vunpack.i.h.bf16 %v10434_v42  ;;  %v10435_v13 = vunpack.i.l.bf16 %v10434_v42  ;;  %v592_v39 = vmul.f32 %v576_v60, %v11372_v48 }
 0x3fd   : > { %9469 = vmatprep.mubr.msk.f32.mxu1 %vm486_vm1, %v589_v61  ;;  %v550_v61 = vadd.f32 1e-24, %v13986_v25  ;;  %v595_v11 = vmul.f32 %v579_v63, %v11346_v31 }
 0x3ff   : > { %v11903_v1 = vpop.permute.xlu1 %10438  ;;  %10801 = vrsqrt.f32 %v550_v61 }
 0x400   : > { %10803 = vrsqrt.f32 %v548_v58 }
 0x403   : > { %v11907_v33 = vpop.permute.xlu1 %2984 }
 0x407   : > { %v11909_v32 = vpop.permute.xlu1 %3364 }
 0x40b   : > { %v10449_v49 = vpop.permute.xlu1 %10448 }
 0x40c   : > { %v10451_v17 = vunpack.i.h.bf16 %v10449_v49  ;;  %v10450_v43 = vunpack.i.l.bf16 %v10449_v49  ;;  %v10798_v49 = vpop.eup %10797 }
 0x40d   : > { %v10800_v22 = vpop.eup %10799 }
 0x40e   : > { %v9983_v36 = vpack.c.bf16 %v10451_v17, %v10450_v43  ;;  %v11946_v17 = vpop.permute.xlu0 %10443  ;;  %v10013_v43 = vpack.c.bf16 %v10436_v9, %v10435_v13  ;;  %v583_v42 = vmul.f32 %v10800_v22, %v11563_v38  ;;  %v10802_v37 = vpop.eup %10801 }
 0x40f   : > { %v584_v18 = vmul.f32 %v10802_v37, %v11563_v38 }
 0x410   : > { %9985 = vmatprep.subr.msk.bf16.mxu1 %vm11859_vm2, %v9983_v36  ;;  %v599_v47 = vmul.f32 %v583_v42, %v11370_v46 }
 0x411   : > { %9988 = vmatpush3.bf16.xpose.msk.msra.mxu1 %vm11859_vm2, %v9983_v36  ;;  %v580_v36 = vmul.f32 %v10798_v49, %v11563_v38 }
 0x412   : > { %9991 = vmatprep.subr.msk.bf16.mxu1 %vm11859_vm2, %v9989_v24 }
 0x413   : > { %v596_v6 = vmul.f32 %v580_v36, %v11388_v57 }
 0x418   : > { %9470 = vmatmul.mubr.msk.f32.vlgmr.msra.gmra.mrb[12].mxu1 %vm486_vm1, %v590_v14  ;;  %v13989_v14 = vld [vmem:[#allocation52_spill] sm:$0xff] }
 0x419   : > { %9994 = vmatpush3.bf16.xpose.msk.msra.mxu1 %vm11859_vm2, %v9989_v24  ;;  %9476 = vmatprep.mubr.msk.f32.mxu1 %vm486_vm1, %v591_v8  ;;  %v10385_v24 = vunpack.i.l.bf16 %v13987_v2  ;;  %v10391_v16 = vunpack.i.h.bf16 %v13989_v14  ;;  %v10390_v8 = vunpack.i.l.bf16 %v13989_v14  ;;  %v2489_v2 = vadd.f32 1e-24, %v11911_v7 }
 0x41a   : > { %10003 = vmatprep.subr.msk.bf16.mxu1 %vm11859_vm2, %v10001_v15 }
 0x41b   : > { %v10023_v45 = vpack.c.bf16 %v10386_v26, %v10385_v24  ;;  %v11970_v61 = vpack.c.bf16 %v10391_v16, %v10390_v8  ;;  %v13991_v24 = vld [vmem:[#allocation51_spill] sm:$0xff] }
 0x420   : > { %9477 = vmatmul.mubr.msk.f32.vlgmr.msra.gmra.mrb[14].mxu1 %vm486_vm1, %v592_v39  ;;  %v10804_v39 = vpop.eup %10803 }
 0x421   : > { %10006 = vmatpush3.bf16.xpose.msk.msra.mxu1 %vm11859_vm2, %v10001_v15  ;;  %9490 = vmatprep.mubr.msk.f32.mxu1 %vm486_vm1, %v595_v11  ;;  %v600_v15 = vmul.f32 %v584_v18, %v11380_v54  ;;  %v13990_v11 = vld [vmem:[#allocation50_spill] sm:$0xff] }
 0x422   : > { %10015 = vmatprep.subr.msk.bf16.mxu1 %vm11859_vm2, %v10013_v43  ;;  %v2491_v22 = vadd.f32 1e-24, %v13990_v11 }
 0x424   : > { %v2627_v19 = vpop.xlane.xlu0 %2626 }
 0x425   : > { %v2655_v49 = vadd.f32 1e-24, %v2627_v19  ;;  %v2499_v19 = vadd.f32 1e-24, %v13991_v24 }
 0x427   : > { %10805 = vrsqrt.f32 %v2655_v49 }
 0x428   : > { %v2465_v35 = vpop.xlane.xlu0 %2464  ;;  %9491 = vmatmul.mubr.msk.f32.vlgmr.msra.gmra.mrb[16].mxu1 %vm486_vm1, %v596_v6  ;;  %10807 = vrsqrt.f32 %v2491_v22 }
 0x429   : > { %10018 = vmatpush3.bf16.xpose.msk.msra.mxu1 %vm11859_vm2, %v10013_v43  ;;  %9504 = vmatprep.mubr.msk.f32.mxu1 %vm486_vm1, %v599_v47  ;;  %v582_v43 = vmul.f32 %v10804_v39, %v11563_v38  ;;  %v2493_v18 = vadd.f32 1e-24, %v2465_v35 }
 0x42a   : > { %10024 = vmatprep.subr.bf16.mxu1 %v10023_v45 }
 0x42b   : > { %v598_v26 = vmul.f32 %v582_v43, %v11384_v56 }
 0x42c   : > { %v2639_v4 = vpop.xlane.xlu0 %2638 }
 0x42d   : > { %v2659_v37 = vadd.f32 1e-24, %v2639_v4 }
 0x430   : > { %v2477_v25 = vpop.xlane.xlu0 %2476  ;;  %9505 = vmatmul.mubr.msk.f32.vlgmr.msra.gmra.mrb[18].mxu1 %vm486_vm1, %v600_v15 }
 0x431   : > { %10026 = vmatpush3.bf16.msra.mxu1 %v10023_v45  ;;  %v10806_v23 = vpop.eup %10805 }
 0x432   : > { %10032 = vmatprep.subr.bf16.mxu1 %v11970_v61  ;;  %v10808_v7 = vpop.eup %10807  ;;  %v2687_v15 = vmul.f32 %v10806_v23, %v11422_v3 }
 0x434   : > { %v10459_v60 = vpop.permute.xlu0 %10458 }
 0x435   : > { %v10461_v63 = vunpack.i.h.bf16 %v10459_v60  ;;  %v10460_v9 = vunpack.i.l.bf16 %v10459_v60  ;;  %v2497_v60 = vadd.f32 1e-24, %v2477_v25 }
 0x437   : > { %v10007_v13 = vpack.c.bf16 %v10461_v63, %v10460_v9 }
 0x438   : > { %v10464_v8 = vpop.permute.xlu0 %10463 }
 0x439   : > { %10009 = vmatprep.subr.msk.bf16.mxu0 %vm11859_vm2, %v10007_v13  ;;  %v10466_v39 = vunpack.i.h.bf16 %v10464_v8  ;;  %v10465_v49 = vunpack.i.l.bf16 %v10464_v8 }
 0x43a   : > { %10012 = vmatpush3.bf16.xpose.msk.msra.mxu0 %vm11859_vm2, %v10007_v13  ;;  %v2525_v13 = vmul.f32 %v10808_v7, %v11741_v21 }
 0x43c   : > { %v2624_v36 = vpop.xlane.xlu1 %2623 }
 0x43d   : > { %v2654_v42 = vadd.f32 1e-24, %v2624_v36 }
 0x43f   : > { %10809 = vrsqrt.f32 %v2654_v42 }
 0x440   : > { %v2462_v6 = vpop.xlane.xlu1 %2461  ;;  %10811 = vrsqrt.f32 %v2489_v2 }
 0x441   : > { %9498 = vmatmul.mubr.msk.f32.vlgmr.msra.gmra.mrb[10].mxu0 %vm486_vm1, %v598_v26  ;;  %v2492_v47 = vadd.f32 1e-24, %v2462_v6  ;;  %10813 = vrsqrt.f32 %v2499_v19  ;;  %v2541_v26 = vmul.f32 %v2525_v13, %v11372_v48  ;;  %v11989_v19 = vpack.c.bf16 %v10466_v39, %v10465_v49  ;;  %v12016_v13 = vld [vmem:[%s13795_s4 + $0x8] sm:$0xff] }
 0x442   : > { %10815 = vrsqrt.f32 %v2659_v37 }
 0x443   : > { %10817 = vrsqrt.f32 %v2492_v47 }
 0x444   : > { %v2636_v45 = vpop.xlane.xlu1 %2635 }
 0x445   : > { %v2658_v38 = vadd.f32 1e-24, %v2636_v45 }
 0x447   : > { %10819 = vrsqrt.f32 %v2658_v38 }
 0x448   : > { %v2474_v58 = vpop.xlane.xlu1 %2473  ;;  %10821 = vrsqrt.f32 %v2493_v18 }
 0x449   : > { %v10810_v14 = vpop.eup %10809  ;;  %v2496_v16 = vadd.f32 1e-24, %v2474_v58 }
 0x44a   : > { %v2686_v4 = vmul.f32 %v10810_v14, %v11348_v34  ;;  %v10812_v35 = vpop.eup %10811 }
 0x44b   : > { %10823 = vrsqrt.f32 %v2496_v16  ;;  %v10814_v43 = vpop.eup %10813  ;;  %v2523_v25 = vmul.f32 %v10812_v35, %v11741_v21 }
 0x44c   : > { %v10454_v63 = vpop.permute.xlu1 %10453  ;;  %v10482_v9 = vpack.i.bf16 %v2687_v15, %v2686_v4  ;;  %v10816_v36 = vpop.eup %10815  ;;  %10825 = vrsqrt.f32 %v2497_v60  ;;  %v2533_v23 = vmul.f32 %v10814_v43, %v11741_v21 }
 0x44d   : > { %v10456_v11 = vunpack.i.h.bf16 %v10454_v63  ;;  %v10455_v22 = vunpack.i.l.bf16 %v10454_v63  ;;  %v10818_v2 = vpop.eup %10817  ;;  %v2691_v37 = vmul.f32 %v10816_v36, %v11384_v56  ;;  %v2539_v45 = vmul.f32 %v2523_v25, %v11378_v53 }
 0x44e   : > { %10483 = vrot.lane.b32.xlu0 %v10482_v9, %s11240_s22  ;;  %v2526_v18 = vmul.f32 %v10818_v2, %v11741_v21  ;;  %v2549_v14 = vmul.f32 %v2533_v23, %v11380_v54 }
 0x44f   : > { %v10019_v42 = vpack.c.bf16 %v10456_v11, %v10455_v22  ;;  %v761_v11 = vld [vmem:[%s13795_s4] sm:$0xff] }
 0x450   : > { %v2542_v58 = vmul.f32 %v2526_v18, %v11348_v34 }
 0x451   : > { %v10820_v24 = vpop.eup %10819  ;;  %10020 = vmatprep.subr.bf16.mxu0 %v10019_v42 }
 0x452   : > { %2986 = vrot.lane.b32.xlu0 %v2541_v26, %s11241_s23  ;;  %10022 = vmatpush3.bf16.msra.mxu0 %v10019_v42  ;;  %v2690_v6 = vmul.f32 %v10820_v24, %v11374_v50  ;;  %v10822_v47 = vpop.eup %10821 }
 0x453   : > { %10028 = vmatprep.subr.bf16.mxu0 %v11989_v19  ;;  %v2527_v16 = vmul.f32 %v10822_v47, %v11741_v21 }
 0x454   : > { %v10492_v38 = vpack.i.bf16 %v2691_v37, %v2690_v6 }
 0x455   : > { %v10824_v7 = vpop.eup %10823  ;;  %v2543_v15 = vmul.f32 %v2527_v16, %v11422_v3 }
 0x456   : > { %2891 = vrot.lane.b32.xlu0 %v2539_v45, %s11241_s23  ;;  %10493 = vrot.lane.b32.xlu1 %v10492_v38, %s11240_s22  ;;  %v2530_v8 = vmul.f32 %v10824_v7, %v11741_v21  ;;  %v10826_v4 = vpop.eup %10825 }
 0x457   : > { %v2531_v63 = vmul.f32 %v10826_v4, %v11741_v21 }
 0x458   : > { %v2546_v60 = vmul.f32 %v2530_v8, %v11374_v50 }
 0x459   : > { %v2547_v9 = vmul.f32 %v2531_v63, %v11384_v56 }
 0x45a   : > { %3079 = vrot.lane.b32.xlu0 %v2542_v58, %s11241_s23  ;;  %3366 = vrot.lane.b32.xlu1 %v2549_v14, %s11241_s23 }
 0x45e   : > { %3081 = vrot.lane.b32.xlu1 %v2543_v15, %s11241_s23  ;;  %3269 = vrot.lane.b32.xlu0 %v2546_v60, %s11241_s23 }
 0x462   : > { %3271 = vrot.lane.b32.xlu1 %v2547_v9, %s11241_s23 }
 0x4c7   : > { %v9457_v35 = vpop.f32.mrb[8].mxu1 }
 0x4c8   : > { %v12019_v39 = vadd.f32 %v9457_v35, %v12016_v13  ;;  %v845_v49 = vpop.f32.mrb[9].mxu1 }
 0x4c9   : > { %v12029_v42 = vadd.f32 %v845_v49, %v761_v11 }
 0x4ca   : > { %v1495_v21 = vsel %vm1491_vm3, %v12019_v39, -inf }
 0x4cb   : > { %v9485_v22 = vpop.f32.mrb[8].mxu0  ;;  %1496 = vmax.xlane.f32.xlu0 %v1495_v21  ;;  %v1492_v45 = vsel %vm1491_vm3, %v12029_v42, -inf }
 0x4cc   : > { %v12027_v43 = vadd.f32 %v9485_v22, %v12016_v13  ;;  %v1209_v36 = vpop.f32.mrb[9].mxu0 }
 0x4cd   : > { %v12031_v2 = vadd.f32 %v1209_v36, %v761_v11 }
 0x4ce   : > { %v1519_v26 = vsel %vm1491_vm3, %v12027_v43, -inf }
 0x4cf   : > { %1520 = vmax.xlane.f32.xlu1 %v1519_v26  ;;  %v9464_v25 = vpop.f32.mrb[10].mxu1  ;;  %v1516_v24 = vsel %vm1491_vm3, %v12031_v2, -inf }
 0x4d0   : > { %1517 = vmax.xlane.f32.xlu0 %v1516_v24  ;;  %v936_v6 = vpop.f32.mrb[11].mxu1  ;;  %v12038_v37 = vadd.f32 %v9464_v25, %v12016_v13 }
 0x4d1   : > { %v12040_v47 = vadd.f32 %v936_v6, %v761_v11 }
 0x4d2   : > { %v1501_v18 = vsel %vm1491_vm3, %v12038_v37, -inf }
 0x4d3   : > { %1493 = vmax.xlane.f32.xlu1 %v1492_v45  ;;  %v1498_v38 = vsel %vm1491_vm3, %v12040_v47, -inf }
 0x4d4   : > { %1499 = vmax.xlane.f32.xlu0 %v1498_v38 }
 0x4d7   : > { %1502 = vmax.xlane.f32.xlu1 %v1501_v18 }
 0x4eb   : > { %v9471_v23 = vpop.f32.mrb[12].mxu1 }
 0x4ec   : > { %v1027_v7 = vpop.f32.mrb[13].mxu1  ;;  %v12054_v49 = vadd.f32 %v9471_v23, %v12016_v13 }
 0x4ed   : > { %v12062_v26 = vadd.f32 %v1027_v7, %v761_v11 }
 0x4ee   : > { %v1507_v25 = vsel %vm1491_vm3, %v12054_v49, -inf }
 0x4ef   : > { %v1504_v45 = vsel %vm1491_vm3, %v12062_v26, -inf }
 0x4f3   : > { %v9478_v58 = vpop.f32.mrb[14].mxu1 }
 0x4f4   : > { %v1118_v14 = vpop.f32.mrb[15].mxu1  ;;  %v12069_v6 = vadd.f32 %v9478_v58, %v12016_v13 }
 0x4f5   : > { %v12073_v38 = vadd.f32 %v1118_v14, %v761_v11 }
 0x4f6   : > { %v1513_v18 = vsel %vm1491_vm3, %v12069_v6, -inf }
 0x4f7   : > { %v1510_v7 = vsel %vm1491_vm3, %v12073_v38, -inf }
 0x4fb   : > { %v9492_v16 = vpop.f32.mrb[16].mxu1 }
 0x4fc   : > { %v1300_v8 = vpop.f32.mrb[17].mxu1  ;;  %v12078_v23 = vadd.f32 %v9492_v16, %v12016_v13 }
 0x4fe   : > { %v1525_v58 = vsel %vm1491_vm3, %v12078_v23, -inf }
 0x503   : > { %v9506_v4 = vpop.f32.mrb[18].mxu1 }
 0x504   : > { %v1482_v15 = vpop.f32.mrb[19].mxu1  ;;  %v12089_v14 = vadd.f32 %v9506_v4, %v12016_v13 }
 0x505   : > { %v12058_v22 = vadd.f32 %v1482_v15, %v761_v11  ;;  %v12082_v15 = vadd.f32 %v1300_v8, %v761_v11  ;;  %v12099_v8 = vpop.permute.xlu0 %10478 }
 0x507   : > { %v1534_v24 = vsel %vm1491_vm3, %v12058_v22, -inf }
 0x514   : > { %v9499_v60 = vpop.f32.mrb[10].mxu0 }
 0x515   : > { %v12049_v63 = vadd.f32 %v9499_v60, %v12016_v13  ;;  %v1391_v9 = vpop.f32.mrb[11].mxu0  ;;  %v12086_v60 = vpop.permute.xlu1 %10468 }
 0x516   : > { %v12051_v35 = vadd.f32 %v1391_v9, %v761_v11  ;;  %v1522_v9 = vsel %vm1491_vm3, %v12082_v15, -inf  ;;  %v1537_v11 = vsel %vm1491_vm3, %v12089_v14, -inf  ;;  %v12103_v13 = vpop.permute.xlu0 %2699 }
 0x517   : > { %v1531_v21 = vsel %vm1491_vm3, %v12049_v63, -inf }
 0x518   : > { %1532 = vmax.xlane.f32.xlu1 %v1531_v21  ;;  %v1528_v36 = vsel %vm1491_vm3, %v12051_v35, -inf  ;;  %v13992_v21 = vld [vmem:[#allocation20_spill] sm:$0xff] }
 0x519   : > { %1529 = vmax.xlane.f32.xlu0 %v1528_v36  ;;  %v12093_v16 = vpop.permute.xlu1 %10473 }
 0x51c   : > { %1508 = vmax.xlane.f32.xlu1 %v1507_v25  ;;  %v12107_v25 = vpop.permute.xlu0 %10483 }
 0x51d   : > { %1535 = vmax.xlane.f32.xlu0 %v1534_v24  ;;  %v12101_v36 = vpop.permute.xlu1 %2701 }
 0x520   : > { %1505 = vmax.xlane.f32.xlu1 %v1504_v45  ;;  %v12111_v45 = vpop.permute.xlu0 %2986 }
 0x521   : > { %v12105_v4 = vpop.permute.xlu1 %10488 }
 0x524   : > { %1514 = vmax.xlane.f32.xlu1 %v1513_v18  ;;  %v13993_v18 = vld [vmem:[#allocation23_spill] sm:$0xff] }
 0x525   : > { %v12109_v24 = vpop.permute.xlu1 %2889 }
 0x528   : > { %1511 = vmax.xlane.f32.xlu1 %v1510_v7 }
 0x529   : > { %v12115_v7 = vpop.permute.xlu1 %10493 }
 0x52c   : > { %1526 = vmax.xlane.f32.xlu1 %v1525_v58  ;;  %v12117_v58 = vpop.permute.xlu0 %2891 }
 0x530   : > { %1523 = vmax.xlane.f32.xlu1 %v1522_v9  ;;  %v12119_v9 = vpop.permute.xlu1 %3366 }
 0x533   : > { %4748 = vrot.lane.b32.xlu0 %v13992_v21, %s11243_s9 }
 0x534   : > { %1538 = vmax.xlane.f32.xlu1 %v1537_v11  ;;  %v12121_v11 = vpop.permute.xlu0 %3079  ;;  %v12123_v51 = vpop.permute.xlu1 %3081 }
 0x538   : > { %v12125_v30 = vpop.permute.xlu0 %3269  ;;  %v12127_v10 = vpop.permute.xlu1 %3271 }
 0x545   : > { %4750 = vrot.lane.b32.xlu1 %v13993_v18, %s11243_s9 }
 0x558   : > { %v1497_v29 = vpop.xlane.xlu0 %1496 }
 0x559   : > { %v1541_v46 = vsub.f32 %v12019_v39, %v1497_v29 }
 0x55b   : > { %v1558_v54 = vmul.f32 1.442695, %v1541_v46 }
 0x55c   : > { %v1521_v50 = vpop.xlane.xlu1 %1520 }
 0x55d   : > { %10827 = vpow2.f32 %v1558_v54  ;;  %v1549_v56 = vsub.f32 %v12027_v43, %v1521_v50  ;;  %v1518_v31 = vpop.xlane.xlu0 %1517 }
 0x55e   : > { %v1548_v3 = vsub.f32 %v12031_v2, %v1518_v31 }
 0x55f   : > { %v1574_v57 = vmul.f32 1.442695, %v1549_v56 }
 0x560   : > { %v1494_v34 = vpop.xlane.xlu1 %1493  ;;  %v1572_v53 = vmul.f32 1.442695, %v1548_v3 }
 0x561   : > { %10829 = vpow2.f32 %v1574_v57  ;;  %v1540_v48 = vsub.f32 %v12029_v42, %v1494_v34  ;;  %v1500_v41 = vpop.xlane.xlu0 %1499 }
 0x562   : > { %v1542_v62 = vsub.f32 %v12040_v47, %v1500_v41 }
 0x563   : > { %v1556_v44 = vmul.f32 1.442695, %v1540_v48 }
 0x564   : > { %v1503_v28 = vpop.xlane.xlu1 %1502  ;;  %v1560_v50 = vmul.f32 1.442695, %v1542_v62 }
 0x565   : > { %10831 = vpow2.f32 %v1556_v44  ;;  %v1543_v46 = vsub.f32 %v12038_v37, %v1503_v28 }
 0x566   : > { %10833 = vpow2.f32 %v1572_v53 }
 0x567   : > { %v12135_v54 = vpop.eup %10827  ;;  %v1562_v56 = vmul.f32 1.442695, %v1543_v46 }
 0x568   : > { %v1591_v31 = vsel %vm1491_vm3, %v12135_v54, 0.0 }
 0x569   : > { %10835 = vpow2.f32 %v1562_v56  ;;  %1592 = vadd.xlane.f32.xlu0 %v1591_v31 }
 0x56a   : > { %10837 = vpow2.f32 %v1560_v50 }
 0x56b   : > { %v12139_v34 = vpop.eup %10829 }
 0x56c   : > { %v1615_v41 = vsel %vm1491_vm3, %v12139_v34, 0.0 }
 0x56d   : > { %1616 = vadd.xlane.f32.xlu0 %v1615_v41 }
 0x56f   : > { %v12143_v44 = vpop.eup %10831 }
 0x570   : > { %v1588_v28 = vsel %vm1491_vm3, %v12143_v44, 0.0  ;;  %v12147_v48 = vpop.eup %10833 }
 0x571   : > { %1589 = vadd.xlane.f32.xlu1 %v1588_v28  ;;  %v1612_v57 = vsel %vm1491_vm3, %v12147_v48, 0.0 }
 0x573   : > { %v12149_v53 = vpop.eup %10835 }
 0x574   : > { %v1597_v62 = vsel %vm1491_vm3, %v12149_v53, 0.0  ;;  %v12155_v3 = vpop.eup %10837 }
 0x575   : > { %1613 = vadd.xlane.f32.xlu1 %v1612_v57  ;;  %1598 = vadd.xlane.f32.xlu0 %v1597_v62  ;;  %v1594_v29 = vsel %vm1491_vm3, %v12155_v3, 0.0 }
 0x579   : > { %1595 = vadd.xlane.f32.xlu1 %v1594_v29 }
 0x5a5   : > { %v1533_v39 = vpop.xlane.xlu1 %1532 }
 0x5a6   : > { %v1553_v43 = vsub.f32 %v12049_v63, %v1533_v39  ;;  %v1530_v42 = vpop.xlane.xlu0 %1529 }
 0x5a7   : > { %v1552_v2 = vsub.f32 %v12051_v35, %v1530_v42 }
 0x5a8   : > { %v1582_v37 = vmul.f32 1.442695, %v1553_v43 }
 0x5a9   : > { %v1580_v47 = vmul.f32 1.442695, %v1552_v2  ;;  %v1509_v46 = vpop.xlane.xlu1 %1508 }
 0x5aa   : > { %10839 = vpow2.f32 %v1582_v37  ;;  %v1545_v50 = vsub.f32 %v12054_v49, %v1509_v46 }
 0x5ab   : > { %10841 = vpow2.f32 %v1580_v47 }
 0x5ac   : > { %v1566_v56 = vmul.f32 1.442695, %v1545_v50 }
 0x5ad   : > { %v1506_v31 = vpop.xlane.xlu1 %1505 }
 0x5ae   : > { %10843 = vpow2.f32 %v1566_v56  ;;  %v1544_v41 = vsub.f32 %v12062_v26, %v1506_v31 }
 0x5b0   : > { %v1564_v28 = vmul.f32 1.442695, %v1544_v41 }
 0x5b1   : > { %v1515_v57 = vpop.xlane.xlu1 %1514 }
 0x5b2   : > { %10845 = vpow2.f32 %v1564_v28  ;;  %v1547_v63 = vsub.f32 %v12069_v6, %v1515_v57 }
 0x5b4   : > { %v12164_v62 = vpop.eup %10839  ;;  %v1570_v35 = vmul.f32 1.442695, %v1547_v63  ;;  %v13994_v63 = vld [vmem:[#allocation8_spill] sm:$0xff] }
 0x5b5   : > { %v12166_v29 = vpop.eup %10841  ;;  %v1512_v39 = vpop.xlane.xlu1 %1511  ;;  %v1627_v49 = vsel %vm1491_vm3, %v12164_v62, 0.0 }
 0x5b6   : > { %10847 = vpow2.f32 %v1570_v35  ;;  %v1546_v43 = vsub.f32 %v12073_v38, %v1512_v39  ;;  %1628 = vadd.xlane.f32.xlu0 %v1627_v49  ;;  %v1624_v26 = vsel %vm1491_vm3, %v12166_v29, 0.0 }
 0x5b7   : > { %1625 = vadd.xlane.f32.xlu1 %v1624_v26 }
 0x5b8   : > { %v12173_v42 = vpop.eup %10843  ;;  %v1568_v6 = vmul.f32 1.442695, %v1546_v43 }
 0x5b9   : > { %v1527_v2 = vpop.xlane.xlu1 %1526  ;;  %v1603_v37 = vsel %vm1491_vm3, %v12173_v42, 0.0 }
 0x5ba   : > { %10849 = vpow2.f32 %v1568_v6  ;;  %v1551_v47 = vsub.f32 %v12078_v23, %v1527_v2  ;;  %1604 = vadd.xlane.f32.xlu0 %v1603_v37  ;;  %v12200_v2 = vpop.xlane.xlu0 %1535 }
 0x5bc   : > { %v12178_v46 = vpop.eup %10845  ;;  %v1578_v50 = vmul.f32 1.442695, %v1551_v47 }
 0x5bd   : > { %v1600_v38 = vsel %vm1491_vm3, %v12178_v46, 0.0  ;;  %v1524_v35 = vpop.xlane.xlu1 %1523 }
 0x5be   : > { %10851 = vpow2.f32 %v1578_v50  ;;  %1601 = vadd.xlane.f32.xlu1 %v1600_v38  ;;  %v1550_v39 = vsub.f32 %v12082_v15, %v1524_v35  ;;  %v12202_v37 = vpop.permute.xlu0 %4748 }
 0x5c0   : > { %v12182_v56 = vpop.eup %10847  ;;  %v1576_v43 = vmul.f32 1.442695, %v1550_v39 }
 0x5c1   : > { %v1609_v31 = vsel %vm1491_vm3, %v12182_v56, 0.0  ;;  %v1539_v49 = vpop.xlane.xlu1 %1538 }
 0x5c2   : > { %1610 = vadd.xlane.f32.xlu0 %v1609_v31  ;;  %v1555_v26 = vsub.f32 %v12089_v14, %v1539_v49  ;;  %10853 = vpow2.f32 %v1576_v43 }
 0x5c4   : > { %v12186_v41 = vpop.eup %10849  ;;  %v1586_v6 = vmul.f32 1.442695, %v1555_v26 }
 0x5c5   : > { %v1606_v23 = vsel %vm1491_vm3, %v12186_v41, 0.0  ;;  %v12206_v38 = vpop.permute.xlu1 %4750 }
 0x5c6   : > { %1607 = vadd.xlane.f32.xlu1 %v1606_v23  ;;  %10855 = vpow2.f32 %v1586_v6  ;;  %v10471_v6 = vunpack.i.h.bf16 %v12086_v60 }
 0x5c8   : > { %v12190_v28 = vpop.eup %10851 }
 0x5c9   : > { %v1621_v57 = vsel %vm1491_vm3, %v12190_v28, 0.0 }
 0x5ca   : > { %1622 = vadd.xlane.f32.xlu0 %v1621_v57 }
 0x5cc   : > { %v12204_v47 = vpop.eup %10853 }
 0x5cd   : > { %v1618_v31 = vsel %vm1491_vm3, %v12204_v47, 0.0 }
 0x5d0   : > { %v12210_v15 = vpop.eup %10855 }
 0x5d1   : > { %v1633_v23 = vsel %vm1491_vm3, %v12210_v15, 0.0 }
 0x5d7   : > { %4752 = vrot.lane.b32.xlu1 %v13994_v63, %s11243_s9 }
 0x5e0   : > { %4586 = vrot.lane.b32.xlu0 %v13992_v21, %s11244_s10 }
 0x5f6   : > { %v1593_v50 = vpop.xlane.xlu0 %1592 }
 0x5f7   : > { %10857 = vrcp.f32 %v1593_v50 }
 0x5fa   : > { %v12214_v57 = vpop.xlane.xlu0 %1616 }
 0x5fb   : > { %1619 = vadd.xlane.f32.xlu1 %v1618_v31  ;;  %v10470_v31 = vunpack.i.l.bf16 %v12086_v60 }
 0x5fe   : > { %v1590_v14 = vpop.xlane.xlu1 %1589 }
 0x5ff   : > { %10859 = vrcp.f32 %v1590_v14  ;;  %1634 = vadd.xlane.f32.xlu0 %v1633_v23  ;;  %v12224_v14 = vpack.c.bf16 %v10471_v6, %v10470_v31  ;;  %v14001_v6 = vld [vmem:[#allocation28_spill] sm:$0xff]  ;;  %v14002_v31 = vld [vmem:[#allocation9_spill] sm:$0xff] }
 0x601   : > { %v10858_v43 = vpop.eup %10857 }
 0x602   : > { %v1614_v35 = vpop.xlane.xlu1 %1613  ;;  %v1599_v39 = vpop.xlane.xlu0 %1598  ;;  %v1653_v21 = vmul.f32 %v10858_v43, %v12135_v54 }
 0x603   : > { %10861 = vrcp.f32 %v1599_v39 }
 0x606   : > { %v1596_v49 = vpop.xlane.xlu1 %1595 }
 0x607   : > { %10863 = vrcp.f32 %v1596_v49 }
 0x609   : > { %v10860_v26 = vpop.eup %10859 }
 0x60a   : > { %v1652_v50 = vmul.f32 %v10860_v26, %v12143_v44  ;;  %v13995_v44 = vld [vmem:[#allocation48_spill] sm:$0xff] }
 0x60b   : > { %v10396_v54 = vunpack.i.h.bf16 %v13995_v44  ;;  %v10395_v39 = vunpack.i.l.bf16 %v13995_v44  ;;  %v1554_v44 = vsub.f32 %v12058_v22, %v12200_v2  ;;  %v14008_v22 = vld [vmem:[#allocation34_spill] sm:$0xff] }
 0x60c   : > { %4588 = vrot.lane.b32.xlu1 %v13993_v18, %s11244_s10  ;;  %9511 = vmatprep.mubr.msk.f32.mxu0 %vm1491_vm3, %v1652_v50  ;;  %v14003_v50 = vld [vmem:[#allocation27_spill] sm:$0xff] }
 0x60d   : > { %9512 = vmatmul.mubr.msk.f32.vlgmr.msra.gmra.mrb[12].mxu0 %vm1491_vm3, %v1653_v21  ;;  %v10862_v23 = vpop.eup %10861  ;;  %v13996_v21 = vld [vmem:[#allocation31_spill] sm:$0xff]  ;;  %v12240_v26 = vpack.c.bf16 %v10396_v54, %v10395_v39  ;;  %v14006_v54 = vld [vmem:[#allocation32_spill] sm:$0xff]  ;;  %v1584_v39 = vmul.f32 1.442695, %v1554_v44 }
 0x60e   : > { %10030 = vmatpush3.bf16.msra.mxu0 %v11989_v19  ;;  %v1655_v43 = vmul.f32 %v10862_v23, %v12149_v53  ;;  %v13997_v19 = vld [vmem:[#allocation25_spill] sm:$0xff]  ;;  %v14004_v23 = vld [vmem:[#allocation22_spill] sm:$0xff] }
 0x60f   : > { %10036 = vmatprep.subr.bf16.mxu0 %v12224_v14  ;;  %v13999_v53 = vld [vmem:[#allocation29_spill] sm:$0xff]  ;;  %10865 = vpow2.f32 %v1584_v39 }
 0x610   : > { %4590 = vrot.lane.b32.xlu1 %v13994_v63, %s11244_s10  ;;  %10867 = vrcp.f32 %v1614_v35 }
 0x611   : > { %v10864_v60 = vpop.eup %10863 }
 0x612   : > { %v1654_v49 = vmul.f32 %v10864_v60, %v12155_v3  ;;  %v13998_v3 = vld [vmem:[#allocation35_spill] sm:$0xff]  ;;  %v14005_v60 = vld [vmem:[#allocation30_spill] sm:$0xff] }
 0x614   : > { %4756 = vrot.lane.b32.xlu1 %v13996_v21, %s11243_s9  ;;  %9518 = vmatprep.mubr.msk.f32.mxu1 %vm1491_vm3, %v1654_v49 }
 0x615   : > { %4754 = vrot.lane.b32.xlu0 %v13997_v19, %s11243_s9  ;;  %9519 = vmatmul.mubr.msk.f32.vlgmr.msra.gmra.mrb[20].mxu1 %vm1491_vm3, %v1655_v43  ;;  %v14007_v43 = vld [vmem:[#allocation36_spill] sm:$0xff] }
 0x616   : > { %10034 = vmatpush3.bf16.msra.mxu1 %v11970_v61  ;;  %v14000_v61 = vld [vmem:[#allocation33_spill] sm:$0xff] }
 0x617   : > { %10040 = vmatprep.subr.bf16.mxu1 %v12240_v26 }
 0x618   : > { %4758 = vrot.lane.b32.xlu1 %v13998_v3, %s11243_s9 }
 0x619   : > { %4592 = vrot.lane.b32.xlu0 %v13997_v19, %s11244_s10  ;;  %v12289_v2 = vpop.eup %10865 }
 0x61c   : > { %4594 = vrot.lane.b32.xlu1 %v13996_v21, %s11244_s10 }
 0x61d   : > { %4596 = vrot.lane.b32.xlu0 %v13998_v3, %s11244_s10 }
 0x620   : > { %4760 = vrot.lane.b32.xlu1 %v13999_v53, %s11243_s9 }
 0x621   : > { %4598 = vrot.lane.b32.xlu0 %v13999_v53, %s11244_s10  ;;  %v10481_v53 = vunpack.i.h.bf16 %v12099_v8 }
 0x624   : > { %4762 = vrot.lane.b32.xlu1 %v14000_v61, %s11243_s9 }
 0x625   : > { %4764 = vrot.lane.b32.xlu0 %v14001_v6, %s11243_s9 }
 0x628   : > { %4768 = vrot.lane.b32.xlu1 %v14002_v31, %s11243_s9 }
 0x629   : > { %4766 = vrot.lane.b32.xlu0 %v14003_v50, %s11243_s9 }
 0x62c   : > { %4608 = vrot.lane.b32.xlu1 %v14004_v23, %s11244_s10 }
 0x62d   : > { %4600 = vrot.lane.b32.xlu0 %v14000_v61, %s11244_s10 }
 0x630   : > { %4776 = vrot.lane.b32.xlu1 %v14005_v60, %s11243_s9 }
 0x631   : > { %4602 = vrot.lane.b32.xlu0 %v14001_v6, %s11244_s10  ;;  %v10475_v6 = vunpack.i.l.bf16 %v12093_v16 }
 0x635   : > { %4770 = vrot.lane.b32.xlu0 %v14004_v23, %s11243_s9 }
 0x639   : > { %4604 = vrot.lane.b32.xlu0 %v14003_v50, %s11244_s10  ;;  %v1630_v50 = vsel %vm1491_vm3, %v12289_v2, 0.0 }
 0x63d   : > { %4606 = vrot.lane.b32.xlu0 %v14002_v31, %s11244_s10 }
 0x641   : > { %4772 = vrot.lane.b32.xlu0 %v14006_v54, %s11243_s9 }
 0x643   : > { %v1629_v49 = vpop.xlane.xlu0 %1628 }
 0x644   : > { %v1626_v61 = vpop.xlane.xlu1 %1625 }
 0x645   : > { %4774 = vrot.lane.b32.xlu0 %v14007_v43, %s11243_s9 }
 0x647   : > { %v1605_v23 = vpop.xlane.xlu0 %1604 }
 0x648   : > { %10869 = vrcp.f32 %v1605_v23  ;;  %v10476_v23 = vunpack.i.h.bf16 %v12093_v16 }
 0x649   : > { %4610 = vrot.lane.b32.xlu0 %v14006_v54, %s11244_s10  ;;  %v10868_v54 = vpop.eup %10867 }
 0x64b   : > { %v1602_v31 = vpop.xlane.xlu1 %1601 }
 0x64c   : > { %10871 = vrcp.f32 %v1602_v31 }
 0x64d   : > { %4778 = vrot.lane.b32.xlu0 %v14008_v22, %s11243_s9  ;;  %10873 = vrcp.f32 %v12214_v57 }
 0x64e   : > { %10875 = vrcp.f32 %v1626_v61 }
 0x64f   : > { %v1611_v44 = vpop.xlane.xlu0 %1610  ;;  %10877 = vrcp.f32 %v1629_v49  ;;  %v1660_v49 = vmul.f32 %v10868_v54, %v12147_v48  ;;  %v14009_v54 = vld [vmem:[#allocation49_spill] sm:$0xff] }
 0x650   : > { %10879 = vrcp.f32 %v1611_v44 }
 0x652   : > { %v10870_v35 = vpop.eup %10869 }
 0x653   : > { %v1608_v39 = vpop.xlane.xlu1 %1607  ;;  %v1657_v61 = vmul.f32 %v10870_v35, %v12173_v42 }
 0x654   : > { %10881 = vrcp.f32 %v1608_v39  ;;  %1631 = vadd.xlane.f32.xlu1 %v1630_v50  ;;  %v10480_v50 = vunpack.i.l.bf16 %v12099_v8  ;;  %v10043_v39 = vpack.c.bf16 %v10476_v23, %v10475_v6  ;;  %v10490_v6 = vunpack.i.l.bf16 %v12105_v4 }
 0x656   : > { %v10872_v31 = vpop.eup %10871  ;;  %v10051_v8 = vpack.c.bf16 %v10481_v53, %v10480_v50  ;;  %v10491_v53 = vunpack.i.h.bf16 %v12105_v4  ;;  %v10485_v4 = vunpack.i.l.bf16 %v12107_v25 }
 0x657   : > { %v1656_v57 = vmul.f32 %v10872_v31, %v12178_v46  ;;  %v10874_v3 = vpop.eup %10873  ;;  %v10401_v31 = vunpack.i.h.bf16 %v14009_v54 }
 0x658   : > { %v10876_v44 = vpop.eup %10875  ;;  %v1661_v42 = vmul.f32 %v10874_v3, %v12139_v34 }
 0x659   : > { %9525 = vmatprep.mubr.msk.f32.mxu0 %vm1491_vm3, %v1656_v57  ;;  %v10878_v16 = vpop.eup %10877  ;;  %v1664_v35 = vmul.f32 %v10876_v44, %v12166_v29  ;;  %v10400_v57 = vunpack.i.l.bf16 %v14009_v54  ;;  %v10410_v44 = vunpack.i.l.bf16 %v11915_v27 }
 0x65a   : > { %9526 = vmatmul.mubr.msk.f32.vlgmr.msra.gmra.mrb[14].mxu0 %vm1491_vm3, %v1657_v61  ;;  %v10880_v46 = vpop.eup %10879  ;;  %v1665_v29 = vmul.f32 %v10878_v16, %v12164_v62  ;;  %v10063_v62 = vpack.c.bf16 %v10491_v53, %v10490_v6 }
 0x65b   : > { %10038 = vmatpush3.bf16.msra.mxu0 %v12224_v14  ;;  %9539 = vmatprep.mubr.msk.f32.mxu0 %vm1491_vm3, %v1660_v49  ;;  %v1659_v34 = vmul.f32 %v10880_v46, %v12182_v56  ;;  %v10047_v3 = vpack.c.bf16 %v10401_v31, %v10400_v57  ;;  %v10486_v56 = vunpack.i.h.bf16 %v12107_v25  ;;  %v10495_v25 = vunpack.i.l.bf16 %v12115_v7 }
 0x65c   : > { %10044 = vmatprep.subr.bf16.mxu0 %v10043_v39  ;;  %v10411_v49 = vunpack.i.h.bf16 %v11915_v27 }
 0x65e   : > { %v10882_v48 = vpop.eup %10881  ;;  %9540 = vmatmul.mubr.msk.f32.vlgmr.msra.gmra.mrb[16].mxu0 %vm1491_vm3, %v1661_v42 }
 0x65f   : > { %10046 = vmatpush3.bf16.msra.mxu0 %v10043_v39  ;;  %9553 = vmatprep.mubr.msk.f32.mxu0 %vm1491_vm3, %v1664_v35  ;;  %v1658_v14 = vmul.f32 %v10882_v48, %v12186_v41  ;;  %v4796_v41 = vsel %vm486_vm1, %v12202_v37, 0.0 }
 0x660   : > { %10053 = vmatprep.subr.msk.bf16.mxu0 %vm11859_vm2, %v10051_v8 }
 0x661   : > { %9532 = vmatprep.mubr.msk.f32.mxu1 %vm1491_vm3, %v1658_v14 }
 0x662   : > { %9533 = vmatmul.mubr.msk.f32.vlgmr.msra.gmra.mrb[22].mxu1 %vm1491_vm3, %v1659_v34  ;;  %9554 = vmatmul.mubr.msk.f32.vlgmr.msra.gmra.mrb[18].mxu0 %vm1491_vm3, %v1665_v29 }
 0x663   : > { %10042 = vmatpush3.bf16.msra.mxu1 %v12240_v26  ;;  %9567 = vmatprep.mubr.msk.f32.mxu0 %vm486_vm1, %v12103_v13  ;;  %v10075_v13 = vpack.c.bf16 %v10486_v56, %v10485_v4  ;;  %v10496_v26 = vunpack.i.h.bf16 %v12115_v7 }
 0x664   : > { %10048 = vmatprep.subr.bf16.mxu1 %v10047_v3 }
 0x665   : > { %4612 = vrot.lane.b32.xlu1 %v14007_v43, %s11244_s10  ;;  %v10087_v23 = vpack.c.bf16 %v10496_v26, %v10495_v25 }
 0x668   : > { %10056 = vmatpush3.bf16.xpose.msk.msra.mxu0 %vm11859_vm2, %v10051_v8 }
 0x669   : > { %10065 = vmatprep.subr.msk.bf16.mxu0 %vm11859_vm2, %v10063_v62 }
 0x66c   : > { %4797 = vadd.xlane.f32.xlu0 %v4796_v41 }
 0x66f   : > { %9568 = vmatmul.mubr.msk.f32.vlgmr.msra.gmra.mrb[20].mxu0 %vm486_vm1, %v12101_v36  ;;  %v1623_v36 = vpop.xlane.xlu0 %1622 }
 0x670   : > { %10068 = vmatpush3.bf16.xpose.msk.msra.mxu0 %vm11859_vm2, %v10063_v62  ;;  %9581 = vmatprep.mubr.msk.f32.mxu0 %vm486_vm1, %v12109_v24  ;;  %v4753_v24 = vpop.permute.xlu1 %4752  ;;  %10883 = vrcp.f32 %v1623_v36 }
 0x671   : > { %10077 = vmatprep.subr.msk.bf16.mxu0 %vm11859_vm2, %v10075_v13  ;;  %v4802_v26 = vsel %vm486_vm1, %v4753_v24, 0.0 }
 0x673   : > { %v4587_v7 = vpop.permute.xlu0 %4586 }
 0x677   : > { %9582 = vmatmul.mubr.msk.f32.vlgmr.msra.gmra.mrb[22].mxu0 %vm486_vm1, %v12117_v58 }
 0x678   : > { %10080 = vmatpush3.bf16.xpose.msk.msra.mxu0 %vm11859_vm2, %v10075_v13  ;;  %9595 = vmatprep.mubr.msk.f32.mxu0 %vm486_vm1, %v12121_v11 }
 0x679   : > { %10089 = vmatprep.subr.msk.bf16.mxu0 %vm11859_vm2, %v10087_v23 }
 0x67f   : > { %9596 = vmatmul.mubr.msk.f32.vlgmr.msra.gmra.mrb[24].mxu0 %vm486_vm1, %v12123_v51  ;;  %v4799_v51 = vsel %vm486_vm1, %v12206_v38, 0.0  ;;  %v12370_v38 = vpack.c.bf16 %v10411_v49, %v10410_v44 }
 0x680   : > { %10092 = vmatpush3.bf16.xpose.msk.msra.mxu0 %vm11859_vm2, %v10087_v23  ;;  %9609 = vmatprep.mubr.msk.f32.mxu0 %vm486_vm1, %v12125_v30  ;;  %v10884_v30 = vpop.eup %10883 }
 0x681   : > { %v1663_v16 = vmul.f32 %v10884_v30, %v12190_v28  ;;  %v4634_v28 = vsel %vm486_vm1, %v4587_v7, 0.0 }
 0x682   : > { %4614 = vrot.lane.b32.xlu0 %v14005_v60, %s11244_s10 }
 0x687   : > { %9610 = vmatmul.mubr.msk.f32.vlgmr.msra.gmra.mrb[26].mxu0 %vm486_vm1, %v12127_v10 }
 0x688   : > { %v1620_v58 = vpop.xlane.xlu1 %1619 }
 0x689   : > { %10885 = vrcp.f32 %v1620_v58  ;;  %4800 = vadd.xlane.f32.xlu1 %v4799_v51 }
 0x68c   : > { %v12363_v11 = vpop.xlane.xlu0 %1634  ;;  %v4589_v50 = vpop.permute.xlu1 %4588 }
 0x68d   : > { %v4637_v57 = vsel %vm486_vm1, %v4589_v50, 0.0  ;;  %10887 = vrcp.f32 %v12363_v11 }
 0x690   : > { %v4755_v37 = vpop.permute.xlu0 %4754  ;;  %v4591_v46 = vpop.permute.xlu1 %4590 }
 0x691   : > { %v4805_v48 = vsel %vm486_vm1, %v4755_v37, 0.0  ;;  %v4640_v36 = vsel %vm486_vm1, %v4591_v46, 0.0 }
 0x693   : > { %v10886_v61 = vpop.eup %10885 }
 0x694   : > { %v4593_v39 = vpop.permute.xlu0 %4592  ;;  %v1662_v10 = vmul.f32 %v10886_v61, %v12204_v47  ;;  %v4757_v47 = vpop.permute.xlu1 %4756 }
 0x695   : > { %v4808_v34 = vsel %vm486_vm1, %v4757_v47, 0.0  ;;  %v4643_v29 = vsel %vm486_vm1, %v4593_v39, 0.0 }
 0x696   : > { %9546 = vmatprep.mubr.msk.f32.mxu1 %vm1491_vm3, %v1662_v10 }
 0x697   : > { %9547 = vmatmul.mubr.msk.f32.vlgmr.msra.gmra.mrb[24].mxu1 %vm1491_vm3, %v1663_v16 }
 0x698   : > { %10050 = vmatpush3.bf16.msra.mxu1 %v10047_v3  ;;  %v4597_v42 = vpop.permute.xlu0 %4596  ;;  %v4759_v54 = vpop.permute.xlu1 %4758 }
 0x699   : > { %10059 = vmatprep.subr.msk.bf16.mxu1 %vm11859_vm2, %v12370_v38  ;;  %v4649_v56 = vsel %vm486_vm1, %v4597_v42, 0.0  ;;  %v4811_v51 = vsel %vm486_vm1, %v4759_v54, 0.0 }
 0x69a   : > { %4616 = vrot.lane.b32.xlu1 %v14008_v22, %s11244_s10 }
 0x69c   : > { %v4599_v27 = vpop.permute.xlu0 %4598  ;;  %v4595_v8 = vpop.permute.xlu1 %4594 }
 0x69d   : > { %v4646_v24 = vsel %vm486_vm1, %v4595_v8, 0.0  ;;  %v4652_v10 = vsel %vm486_vm1, %v4599_v27, 0.0 }
 0x6a0   : > { %v4765_v35 = vpop.permute.xlu0 %4764  ;;  %v4761_v3 = vpop.permute.xlu1 %4760 }
 0x6a1   : > { %4635 = vadd.xlane.f32.xlu0 %v4634_v28  ;;  %v4814_v6 = vsel %vm486_vm1, %v4761_v3, 0.0  ;;  %v4820_v41 = vsel %vm486_vm1, %v4765_v35, 0.0 }
 0x6a4   : > { %v4767_v31 = vpop.permute.xlu0 %4766  ;;  %v4763_v4 = vpop.permute.xlu1 %4762 }
 0x6a5   : > { %4806 = vadd.xlane.f32.xlu0 %v4805_v48  ;;  %v4817_v50 = vsel %vm486_vm1, %v4763_v4, 0.0  ;;  %v4823_v16 = vsel %vm486_vm1, %v4767_v31, 0.0 }
 0x6a8   : > { %v4601_v14 = vpop.permute.xlu0 %4600  ;;  %v4769_v23 = vpop.permute.xlu1 %4768 }
 0x6a9   : > { %4638 = vadd.xlane.f32.xlu0 %v4637_v57  ;;  %v4655_v25 = vsel %vm486_vm1, %v4601_v14, 0.0  ;;  %v4826_v58 = vsel %vm486_vm1, %v4769_v23, 0.0 }
 0x6ac   : > { %v4603_v53 = vpop.permute.xlu0 %4602  ;;  %v4609_v37 = vpop.permute.xlu1 %4608 }
 0x6ad   : > { %4809 = vadd.xlane.f32.xlu0 %v4808_v34  ;;  %v4658_v42 = vsel %vm486_vm1, %v4603_v53, 0.0  ;;  %v10888_v53 = vpop.eup %10887 }
 0x6b0   : > { %v4771_v62 = vpop.permute.xlu0 %4770  ;;  %v4777_v44 = vpop.permute.xlu1 %4776 }
 0x6b1   : > { %4644 = vadd.xlane.f32.xlu0 %v4643_v29  ;;  %v4838_v39 = vsel %vm486_vm1, %v4777_v44, 0.0  ;;  %v4829_v46 = vsel %vm486_vm1, %v4771_v62, 0.0  ;;  %v4667_v29 = vsel %vm486_vm1, %v4609_v37, 0.0  ;;  %v10441_v62 = vunpack.i.h.bf16 %v11903_v1  ;;  %v12587_v44 = vld [vmem:[%s13795_s4 + $0x18] sm:$0xff] }
 0x6b4   : > { %v4605_v13 = vpop.permute.xlu0 %4604 }
 0x6b5   : > { %4815 = vadd.xlane.f32.xlu0 %v4814_v6  ;;  %v4661_v30 = vsel %vm486_vm1, %v4605_v13, 0.0 }
 0x6b8   : > { %v4607_v7 = vpop.permute.xlu0 %4606 }
 0x6b9   : > { %4650 = vadd.xlane.f32.xlu0 %v4649_v56  ;;  %v4664_v48 = vsel %vm486_vm1, %v4607_v7, 0.0  ;;  %v10440_v56 = vunpack.i.l.bf16 %v11903_v1 }
 0x6bc   : > { %v4773_v61 = vpop.permute.xlu0 %4772 }
 0x6bd   : > { %4821 = vadd.xlane.f32.xlu0 %v4820_v41  ;;  %v4832_v49 = vsel %vm486_vm1, %v4773_v61, 0.0 }
 0x6be   : > { %4803 = vadd.xlane.f32.xlu1 %v4802_v26  ;;  %v1667_v26 = vmul.f32 %v10888_v53, %v12210_v15  ;;  %v10416_v15 = vunpack.i.h.bf16 %v11939_v55  ;;  %v12497_v53 = vstv %s9008_s13 }
 0x6c0   : > { %v4775_v27 = vpop.permute.xlu0 %4774 }
 0x6c1   : > { %4656 = vadd.xlane.f32.xlu0 %v4655_v25  ;;  %v4835_v57 = vsel %vm486_vm1, %v4775_v27, 0.0  ;;  %v10069_v25 = vpack.c.bf16 %v10441_v62, %v10440_v56 }
 0x6c2   : > { %4641 = vadd.xlane.f32.xlu1 %v4640_v36  ;;  %v10445_v36 = vunpack.i.l.bf16 %v11946_v17 }
 0x6c4   : > { %v4611_v14 = vpop.permute.xlu0 %4610 }
 0x6c5   : > { %4827 = vadd.xlane.f32.xlu0 %v4826_v58  ;;  %v4670_v4 = vsel %vm486_vm1, %v4611_v14, 0.0 }
 0x6c6   : > { %4812 = vadd.xlane.f32.xlu1 %v4811_v51 }
 0x6c8   : > { %v4779_v13 = vpop.permute.xlu0 %4778 }
 0x6c9   : > { %4662 = vadd.xlane.f32.xlu0 %v4661_v30  ;;  %v4841_v1 = vsel %vm486_vm1, %v4779_v13, 0.0 }
 0x6ca   : > { %4647 = vadd.xlane.f32.xlu1 %v4646_v24 }
 0x6cd   : > { %4833 = vadd.xlane.f32.xlu0 %v4832_v49 }
 0x6ce   : > { %4818 = vadd.xlane.f32.xlu1 %v4817_v50 }
 0x6d1   : > { %4839 = vadd.xlane.f32.xlu0 %v4838_v39 }
 0x6d2   : > { %4653 = vadd.xlane.f32.xlu1 %v4652_v10 }
 0x6d6   : > { %4824 = vadd.xlane.f32.xlu1 %v4823_v16  ;;  %v14021_v16 = vld [vmem:[#allocation46_spill] sm:$0xff] }
 0x6da   : > { %4659 = vadd.xlane.f32.xlu1 %v4658_v42 }
 0x6de   : > { %4830 = vadd.xlane.f32.xlu1 %v4829_v46 }
 0x6e0   : > { %v12400_v47 = vpop.f32.mrb[12].mxu0 }
 0x6e1   : > { %14010 = vst [vmem:[#allocation43_spill] sm:$0xff] %v12400_v47  ;;  %v12403_v35 = vpop.f32.mrb[13].mxu0  ;;  %v1632_v28 = vpop.xlane.xlu1 %1631 }
 0x6e2   : > { %14011 = vst [vmem:[#allocation37_spill] sm:$0xff] %v12403_v35  ;;  %10889 = vrcp.f32 %v1632_v28  ;;  %4665 = vadd.xlane.f32.xlu1 %v4664_v48 }
 0x6e5   : > { %v4613_v31 = vpop.permute.xlu1 %4612 }
 0x6e6   : > { %4836 = vadd.xlane.f32.xlu1 %v4835_v57  ;;  %v4673_v8 = vsel %vm486_vm1, %v4613_v31, 0.0 }
 0x6e7   : > { %4674 = vadd.xlane.f32.xlu0 %v4673_v8 }
 0x6e8   : > { %v12410_v11 = vpop.f32.mrb[20].mxu1 }
 0x6e9   : > { %14012 = vst [vmem:[#allocation38_spill] sm:$0xff] %v12410_v11  ;;  %v12412_v34 = vpop.f32.mrb[21].mxu1 }
 0x6ea   : > { %14013 = vst [vmem:[#allocation39_spill] sm:$0xff] %v12412_v34  ;;  %4668 = vadd.xlane.f32.xlu1 %v4667_v29 }
 0x6ec   : > { %v10890_v6 = vpop.eup %10889 }
 0x6ed   : > { %v1666_v41 = vmul.f32 %v10890_v6, %v12289_v2  ;;  %v10415_v2 = vunpack.i.l.bf16 %v11939_v55 }
 0x6ee   : > { %4671 = vadd.xlane.f32.xlu1 %v4670_v4 }
 0x6ef   : > { %9560 = vmatprep.mubr.msk.f32.mxu1 %vm1491_vm3, %v1666_v41  ;;  %v10081_v23 = vpack.c.bf16 %v10416_v15, %v10415_v2 }
 0x6f0   : > { %9561 = vmatmul.mubr.msk.f32.vlgmr.msra.gmra.mrb[26].mxu1 %vm1491_vm3, %v1667_v26 }
 0x6f1   : > { %10062 = vmatpush3.bf16.xpose.msk.msra.mxu1 %vm11859_vm2, %v12370_v38  ;;  %9574 = vmatprep.mubr.msk.f32.mxu1 %vm486_vm1, %v11929_v12  ;;  %v10446_v38 = vunpack.i.h.bf16 %v11946_v17  ;;  %v14016_v17 = vld [vmem:[#allocation42_spill] sm:$0xff] }
 0x6f2   : > { %10071 = vmatprep.subr.msk.bf16.mxu1 %vm11859_vm2, %v10069_v25  ;;  %4842 = vadd.xlane.f32.xlu1 %v4841_v1 }
 0x6f3   : > { %v10093_v58 = vpack.c.bf16 %v10446_v38, %v10445_v36 }
 0x6f8   : > { %9575 = vmatmul.mubr.msk.f32.vlgmr.msra.gmra.mrb[28].mxu1 %vm486_vm1, %v11874_v20  ;;  %v14014_v20 = vld [vmem:[#allocation40_spill] sm:$0xff] }
 0x6f9   : > { %10074 = vmatpush3.bf16.xpose.msk.msra.mxu1 %vm11859_vm2, %v10069_v25  ;;  %9588 = vmatprep.mubr.msk.f32.mxu1 %vm486_vm1, %v11907_v33  ;;  %v4798_v12 = vpop.xlane.xlu0 %4797 }
 0x6fa   : > { %10083 = vmatprep.subr.msk.bf16.mxu1 %vm11859_vm2, %v10081_v23 }
 0x6fd   : > { %v4615_v7 = vpop.permute.xlu0 %4614 }
 0x6fe   : > { %v4676_v55 = vsel %vm486_vm1, %v4615_v7, 0.0 }
 0x6ff   : > { %4677 = vadd.xlane.f32.xlu1 %v4676_v55 }
 0x700   : > { %9589 = vmatmul.mubr.msk.f32.vlgmr.msra.gmra.mrb[30].mxu1 %vm486_vm1, %v12111_v45 }
 0x701   : > { %10086 = vmatpush3.bf16.xpose.msk.msra.mxu1 %vm11859_vm2, %v10081_v23  ;;  %9602 = vmatprep.mubr.msk.f32.mxu1 %vm486_vm1, %v11846_v40  ;;  %v14015_v40 = vld [vmem:[#allocation41_spill] sm:$0xff] }
 0x702   : > { %10095 = vmatprep.subr.msk.bf16.mxu1 %vm11859_vm2, %v10093_v58 }
 0x708   : > { %9603 = vmatmul.mubr.msk.f32.vlgmr.msra.gmra.mrb[32].mxu1 %vm486_vm1, %v11885_v5 }
 0x709   : > { %10098 = vmatpush3.bf16.xpose.msk.msra.mxu1 %vm11859_vm2, %v10093_v58  ;;  %9616 = vmatprep.mubr.msk.f32.mxu1 %vm486_vm1, %v11909_v32  ;;  %v4844_v32 = vadd.f32 1e-24, %v4798_v12 }
 0x710   : > { %9617 = vmatmul.mubr.msk.f32.vlgmr.msra.gmra.mrb[34].mxu1 %vm486_vm1, %v12119_v9  ;;  %10498 = vrot.lane.b32.xlu1 %v14014_v20, %s11245_s11 }
 0x714   : > { %10508 = vrot.lane.b32.xlu1 %v14015_v40, %s11245_s11 }
 0x716   : > { %v4801_v33 = vpop.xlane.xlu1 %4800 }
 0x717   : > { %v4845_v51 = vadd.f32 1e-24, %v4801_v33 }
 0x718   : > { %10513 = vrot.lane.b32.xlu1 %v14016_v17, %s11245_s11 }
 0x719   : > { %10891 = vrsqrt.f32 %v4845_v51 }
 0x71a   : > { %v4617_v5 = vpop.permute.xlu1 %4616  ;;  %10893 = vrsqrt.f32 %v4844_v32 }
 0x71b   : > { %v4679_v45 = vsel %vm486_vm1, %v4617_v5, 0.0 }
 0x71c   : > { %4680 = vadd.xlane.f32.xlu0 %v4679_v45 }
 0x723   : > { %v10892_v9 = vpop.eup %10891 }
 0x724   : > { %v10894_v24 = vpop.eup %10893  ;;  %v4877_v50 = vmul.f32 %v10892_v9, %v11396_v59 }
 0x725   : > { %v4876_v42 = vmul.f32 %v10894_v24, %v11376_v52 }
 0x727   : > { %v10517_v48 = vpack.i.bf16 %v4877_v50, %v4876_v42 }
 0x72d   : > { %v12468_v37 = vpop.f32.mrb[14].mxu0 }
 0x72e   : > { %14017 = vst [vmem:[#allocation53_spill] sm:$0xff] %v12468_v37  ;;  %v4636_v30 = vpop.xlane.xlu0 %4635  ;;  %v12470_v61 = vpop.f32.mrb[15].mxu0 }
 0x72f   : > { %14018 = vst [vmem:[#allocation44_spill] sm:$0xff] %v12470_v61  ;;  %v4682_v49 = vadd.f32 1e-24, %v4636_v30 }
 0x731   : > { %10895 = vrsqrt.f32 %v4682_v49  ;;  %v12475_v39 = vpop.f32.mrb[16].mxu0 }
 0x732   : > { %14019 = vst [vmem:[#allocation47_spill] sm:$0xff] %v12475_v39  ;;  %v12477_v10 = vpop.f32.mrb[17].mxu0  ;;  %10503 = vrot.lane.b32.xlu0 %v14021_v16, %s11245_s11  ;;  %v4807_v28 = vpop.xlane.xlu0 %4806 }
 0x733   : > { %14020 = vst [vmem:[#allocation45_spill] sm:$0xff] %v12477_v10  ;;  %v4847_v1 = vadd.f32 1e-24, %v4807_v28 }
 0x735   : > { %v12484_v27 = vpop.f32.mrb[22].mxu1  ;;  %v12486_v31 = vpop.f32.mrb[18].mxu0  ;;  %10897 = vrsqrt.f32 %v4847_v1 }
 0x736   : > { %14022 = vst [vmem:[#allocation52_spill] sm:$0xff] %v12484_v27  ;;  %14023 = vst [vmem:[#allocation50_spill] sm:$0xff] %v12486_v31  ;;  %v12488_v57 = vpop.f32.mrb[19].mxu0  ;;  %10518 = vrot.lane.b32.xlu0 %v10517_v48, %s11243_s9  ;;  %v12493_v14 = vpop.f32.mrb[23].mxu1 }
 0x737   : > { %14024 = vst [vmem:[#allocation51_spill] sm:$0xff] %v12488_v57  ;;  %14025 = vst [vmem:[#allocation48_spill] sm:$0xff] %v12493_v14  ;;  %v4639_v6 = vpop.xlane.xlu0 %4638 }
 0x738   : > { %v4683_v15 = vadd.f32 1e-24, %v4639_v6 }
 0x73a   : > { %10899 = vrsqrt.f32 %v4683_v15 }
 0x73b   : > { %v10896_v62 = vpop.eup %10895  ;;  %v4810_v41 = vpop.xlane.xlu0 %4809 }
 0x73c   : > { %v4716_v56 = vmul.f32 %v10896_v62, %v12497_v53  ;;  %v4848_v55 = vadd.f32 1e-24, %v4810_v41  ;;  %v14026_v62 = vld [vmem:[#allocation5_spill] sm:$0xff] }
 0x73e   : > { %v4732_v4 = vmul.f32 %v4716_v56, %v11376_v52 }
 0x73f   : > { %v4645_v25 = vpop.xlane.xlu0 %4644  ;;  %v10898_v30 = vpop.eup %10897 }
 0x740   : > { %4897 = vrot.lane.b32.xlu0 %v4732_v4, %s11244_s10  ;;  %v4685_v33 = vadd.f32 1e-24, %v4645_v25  ;;  %v14027_v4 = vld [vmem:[#allocation24_spill] sm:$0xff] }
 0x741   : > { %v4879_v41 = vmul.f32 %v10898_v30, %v14027_v4 }
 0x742   : > { %v12502_v13 = vpop.f32.mrb[20].mxu0 }
 0x743   : > { %v12504_v26 = vpop.f32.mrb[21].mxu0  ;;  %v4816_v38 = vpop.xlane.xlu0 %4815 }
 0x744   : > { %v10900_v24 = vpop.eup %10899  ;;  %v4850_v42 = vadd.f32 1e-24, %v4816_v38 }
 0x747   : > { %v4651_v5 = vpop.xlane.xlu0 %4650 }
 0x748   : > { %v4687_v6 = vadd.f32 1e-24, %v4651_v5 }
 0x74a   : > { %v12506_v2 = vpop.f32.mrb[22].mxu0 }
 0x74b   : > { %v12508_v23 = vpop.f32.mrb[23].mxu0  ;;  %v4804_v12 = vpop.xlane.xlu1 %4803 }
 0x74c   : > { %v4846_v36 = vadd.f32 1e-24, %v4804_v12  ;;  %v4822_v28 = vpop.xlane.xlu0 %4821 }
 0x74e   : > { %10901 = vrsqrt.f32 %v4846_v36  ;;  %v4717_v36 = vmul.f32 %v10900_v24, %v12497_v53  ;;  %v14028_v24 = vld [vmem:[#allocation11_spill] sm:$0xff] }
 0x74f   : > { %v4642_v7 = vpop.xlane.xlu1 %4641 }
 0x750   : > { %v4684_v58 = vadd.f32 1e-24, %v4642_v7 }
 0x752   : > { %10903 = vrsqrt.f32 %v4684_v58  ;;  %v12510_v45 = vpop.f32.mrb[24].mxu0  ;;  %v4657_v58 = vpop.xlane.xlu0 %4656 }
 0x753   : > { %v12512_v51 = vpop.f32.mrb[25].mxu0  ;;  %v4813_v32 = vpop.xlane.xlu1 %4812  ;;  %10905 = vrsqrt.f32 %v4848_v55 }
 0x754   : > { %v4849_v9 = vadd.f32 1e-24, %v4813_v32  ;;  %10907 = vrsqrt.f32 %v4685_v33  ;;  %v4733_v32 = vmul.f32 %v4717_v36, %v11396_v59 }
 0x756   : > { %10909 = vrsqrt.f32 %v4849_v9 }
 0x757   : > { %v4648_v49 = vpop.xlane.xlu1 %4647 }
 0x758   : > { %v10902_v50 = vpop.eup %10901  ;;  %v4686_v48 = vadd.f32 1e-24, %v4648_v49  ;;  %v4852_v49 = vadd.f32 1e-24, %v4822_v28 }
 0x759   : > { %v4878_v56 = vmul.f32 %v10902_v50, %v14026_v62 }
 0x75a   : > { %10911 = vrsqrt.f32 %v4686_v48  ;;  %v12516_v25 = vpop.f32.mrb[26].mxu0  ;;  %v4689_v48 = vadd.f32 1e-24, %v4657_v58 }
 0x75b   : > { %v12518_v1 = vpop.f32.mrb[27].mxu0  ;;  %v4819_v15 = vpop.xlane.xlu1 %4818  ;;  %v10522_v12 = vpack.i.bf16 %v4879_v41, %v4878_v56  ;;  %10913 = vrsqrt.f32 %v4850_v42 }
 0x75c   : > { %v10904_v7 = vpop.eup %10903  ;;  %v4851_v55 = vadd.f32 1e-24, %v4819_v15  ;;  %10915 = vrsqrt.f32 %v4687_v6  ;;  %v14029_v6 = vld [vmem:[#allocation16_spill] sm:$0xff] }
 0x75d   : > { %10523 = vrot.lane.b32.xlu1 %v10522_v12, %s11243_s9  ;;  %v10906_v38 = vpop.eup %10905  ;;  %v4718_v9 = vmul.f32 %v10904_v7, %v12497_v53 }
 0x75e   : > { %10917 = vrsqrt.f32 %v4851_v55  ;;  %v10908_v33 = vpop.eup %10907  ;;  %v4880_v42 = vmul.f32 %v10906_v38, %v14028_v24 }
 0x75f   : > { %v4654_v5 = vpop.xlane.xlu1 %4653  ;;  %v4734_v15 = vmul.f32 %v4718_v9, %v14026_v62  ;;  %v4719_v55 = vmul.f32 %v10908_v33, %v12497_v53  ;;  %v14030_v33 = vld [vmem:[#allocation10_spill] sm:$0xff] }
 0x760   : > { %v10910_v30 = vpop.eup %10909  ;;  %v4688_v50 = vadd.f32 1e-24, %v4654_v5 }
 0x761   : > { %4899 = vrot.lane.b32.xlu1 %v4733_v32, %s11244_s10  ;;  %v4881_v56 = vmul.f32 %v10910_v30, %v14029_v6  ;;  %v4735_v5 = vmul.f32 %v4719_v55, %v14027_v4 }
 0x762   : > { %10919 = vrsqrt.f32 %v4688_v50 }
 0x763   : > { %v4825_v41 = vpop.xlane.xlu1 %4824  ;;  %v10527_v12 = vpack.i.bf16 %v4881_v56, %v4880_v42  ;;  %10921 = vrsqrt.f32 %v4852_v49  ;;  %v14031_v49 = vld [vmem:[#allocation13_spill] sm:$0xff] }
 0x764   : > { %v10912_v36 = vpop.eup %10911  ;;  %v4853_v7 = vadd.f32 1e-24, %v4825_v41  ;;  %10923 = vrsqrt.f32 %v4689_v48 }
 0x765   : > { %4992 = vrot.lane.b32.xlu1 %v4734_v15, %s11244_s10  ;;  %10528 = vrot.lane.b32.xlu0 %v10527_v12, %s11243_s9  ;;  %v10914_v28 = vpop.eup %10913  ;;  %v4720_v32 = vmul.f32 %v10912_v36, %v12497_v53 }
 0x766   : > { %10925 = vrsqrt.f32 %v4853_v7  ;;  %v10916_v38 = vpop.eup %10915  ;;  %v4882_v30 = vmul.f32 %v10914_v28, %v14030_v33 }
 0x767   : > { %v12531_v58 = vpop.xlane.xlu1 %4659  ;;  %v4736_v41 = vmul.f32 %v4720_v32, %v14028_v24  ;;  %v4721_v12 = vmul.f32 %v10916_v38, %v12497_v53  ;;  %v14034_v38 = vld [vmem:[#allocation7_spill] sm:$0xff] }
 0x768   : > { %v10918_v9 = vpop.eup %10917  ;;  %v4690_v43 = vadd.f32 1e-24, %v12531_v58 }
 0x769   : > { %4994 = vrot.lane.b32.xlu0 %v4735_v5, %s11244_s10  ;;  %v4883_v50 = vmul.f32 %v10918_v9, %v14031_v49  ;;  %v4737_v5 = vmul.f32 %v4721_v12, %v14029_v6 }
 0x76a   : > { %v12538_v48 = vpop.f32.mrb[24].mxu1  ;;  %10927 = vrsqrt.f32 %v4690_v43 }
 0x76b   : > { %14032 = vst [vmem:[#allocation49_spill] sm:$0xff] %v12538_v48  ;;  %v12540_v42 = vpop.xlane.xlu1 %4830  ;;  %v12542_v56 = vpop.f32.mrb[25].mxu1  ;;  %v10532_v15 = vpack.i.bf16 %v4883_v50, %v4882_v30  ;;  %v14035_v30 = vld [vmem:[#allocation26_spill] sm:$0xff] }
 0x76c   : > { %14033 = vst [vmem:[#allocation58_spill] sm:$0xff] %v12542_v56  ;;  %v10920_v55 = vpop.eup %10919  ;;  %v14039_v48 = vld [vmem:[#allocation6_spill] sm:$0xff] }
 0x76d   : > { %5087 = vrot.lane.b32.xlu0 %v4736_v41, %s11244_s10  ;;  %10533 = vrot.lane.b32.xlu1 %v10532_v15, %s11243_s9  ;;  %v10922_v7 = vpop.eup %10921  ;;  %v4722_v9 = vmul.f32 %v10920_v55, %v12497_v53 }
 0x76e   : > { %v10924_v28 = vpop.eup %10923  ;;  %v4884_v32 = vmul.f32 %v10922_v7, %v14034_v38 }
 0x76f   : > { %v12552_v46 = vpop.xlane.xlu1 %4665  ;;  %v4738_v36 = vmul.f32 %v4722_v9, %v14030_v33  ;;  %v4723_v15 = vmul.f32 %v10924_v28, %v12497_v53  ;;  %v12574_v28 = vld [vmem:[%s13795_s4 + $0x10] sm:$0xff] }
 0x770   : > { %v10926_v8 = vpop.eup %10925  ;;  %v12580_v9 = vadd.f32 %v12574_v28, %v12504_v26  ;;  %v12591_v26 = vadd.f32 %v12502_v13, %v12587_v44 }
 0x771   : > { %5089 = vrot.lane.b32.xlu1 %v4737_v5, %s11244_s10  ;;  %v4885_v50 = vmul.f32 %v10926_v8, %v14035_v30  ;;  %v4739_v55 = vmul.f32 %v4723_v15, %v14031_v49 }
 0x773   : > { %v10537_v41 = vpack.i.bf16 %v4885_v50, %v4884_v32  ;;  %v12561_v12 = vpop.xlane.xlu1 %4836  ;;  %v4828_v32 = vpop.xlane.xlu0 %4827 }
 0x774   : > { %v10928_v57 = vpop.eup %10927 }
 0x775   : > { %5182 = vrot.lane.b32.xlu1 %v4738_v36, %s11244_s10  ;;  %10538 = vrot.lane.b32.xlu0 %v10537_v41, %s11243_s9  ;;  %v4724_v43 = vmul.f32 %v10928_v57, %v12497_v53 }
 0x777   : > { %v12565_v5 = vpop.xlane.xlu1 %4668  ;;  %v4663_v3 = vpop.xlane.xlu0 %4662  ;;  %v4740_v31 = vmul.f32 %v4724_v43, %v14034_v38 }
 0x778   : > { %v4691_v57 = vadd.f32 1e-24, %v4663_v3 }
 0x779   : > { %5184 = vrot.lane.b32.xlu1 %v4739_v55, %s11244_s10  ;;  %v3457_v55 = vsel %vm1491_vm3, %v12580_v9, -inf }
 0x77b   : > { %v12567_v7 = vpop.xlane.xlu1 %4671  ;;  %v12593_v54 = vpop.xlane.xlu0 %4833 }
 0x77f   : > { %v12569_v8 = vpop.xlane.xlu1 %4842 }
 0x78c   : > { %v12576_v36 = vpop.xlane.xlu1 %4677 }
 0x790   : > { %v10499_v50 = vpop.permute.xlu1 %10498 }
 0x791   : > { %v10501_v41 = vunpack.i.h.bf16 %v10499_v50  ;;  %v10500_v15 = vunpack.i.l.bf16 %v10499_v50  ;;  %v3460_v50 = vsel %vm1491_vm3, %v12591_v26, -inf }
 0x793   : > { %v10103_v29 = vpack.c.bf16 %v10501_v41, %v10500_v15  ;;  %v12597_v41 = vpop.xlane.xlu0 %4839 }
 0x794   : > { %3458 = vmax.xlane.f32.xlu0 %v3457_v55 }
 0x795   : > { %10104 = vmatprep.subr.bf16.mxu1 %v10103_v29 }
 0x796   : > { %10106 = vmatpush3.bf16.msra.mxu1 %v10103_v29 }
 0x797   : > { %v12599_v15 = vpop.xlane.xlu0 %4674 }
 0x79d   : > { %3461 = vmax.xlane.f32.xlu1 %v3460_v50 }
 0x7a9   : > { %v12601_v55 = vpop.xlane.xlu0 %4680 }
 0x7ad   : > { %v10504_v49 = vpop.permute.xlu0 %10503 }
 0x7ae   : > { %v10506_v33 = vunpack.i.h.bf16 %v10504_v49  ;;  %v10505_v6 = vunpack.i.l.bf16 %v10504_v49 }
 0x7b0   : > { %v12603_v29 = vpack.c.bf16 %v10506_v33, %v10505_v6 }
 0x7b2   : > { %10112 = vmatprep.subr.bf16.mxu1 %v12603_v29 }
 0x7c3   : > { %v12606_v13 = vpop.f32.mrb[26].mxu1 }
 0x7c4   : > { %14036 = vst [vmem:[#allocation59_spill] sm:$0xff] %v12606_v13  ;;  %v12608_v24 = vpop.f32.mrb[27].mxu1  ;;  %v4854_v13 = vadd.f32 1e-24, %v4828_v32 }
 0x7c5   : > { %14037 = vst [vmem:[#allocation60_spill] sm:$0xff] %v12608_v24 }
 0x7cb   : > { %v9576_v4 = vpop.f32.mrb[28].mxu1 }
 0x7cc   : > { %v12613_v62 = vadd.f32 %v9576_v4, %v12587_v44  ;;  %v2878_v52 = vpop.f32.mrb[29].mxu1 }
 0x7cd   : > { %v12616_v59 = vadd.f32 %v12574_v28, %v2878_v52 }
 0x7ce   : > { %v3466_v6 = vsel %vm1491_vm3, %v12613_v62, -inf }
 0x7cf   : > { %3467 = vmax.xlane.f32.xlu1 %v3466_v6  ;;  %v3463_v33 = vsel %vm1491_vm3, %v12616_v59, -inf }
 0x7d0   : > { %3464 = vmax.xlane.f32.xlu0 %v3463_v33 }
 0x7d3   : > { %v9590_v49 = vpop.f32.mrb[30].mxu1 }
 0x7d4   : > { %v12623_v60 = vadd.f32 %v9590_v49, %v12587_v44  ;;  %v3068_v50 = vpop.f32.mrb[31].mxu1 }
 0x7d5   : > { %v12626_v4 = vadd.f32 %v12574_v28, %v3068_v50 }
 0x7d6   : > { %v3478_v52 = vsel %vm1491_vm3, %v12623_v60, -inf }
 0x7d7   : > { %3479 = vmax.xlane.f32.xlu1 %v3478_v52  ;;  %v3475_v6 = vsel %vm1491_vm3, %v12626_v4, -inf  ;;  %v4855_v52 = vadd.f32 1e-24, %v12540_v42  ;;  %v14038_v42 = vld [vmem:[#allocation19_spill] sm:$0xff] }
 0x7d9   : > { %10929 = vrsqrt.f32 %v4855_v52 }
 0x7da   : > { %10931 = vrsqrt.f32 %v4854_v13  ;;  %v12655_v13 = vadd.f32 %v12574_v28, %v12508_v23 }
 0x7db   : > { %v9604_v22 = vpop.f32.mrb[32].mxu1  ;;  %3476 = vmax.xlane.f32.xlu1 %v3475_v6  ;;  %10933 = vrsqrt.f32 %v4691_v57 }
 0x7dc   : > { %v12634_v33 = vadd.f32 %v9604_v22, %v12587_v44  ;;  %v3258_v49 = vpop.f32.mrb[33].mxu1 }
 0x7dd   : > { %v12637_v24 = vadd.f32 %v12574_v28, %v3258_v49 }
 0x7de   : > { %v3490_v50 = vsel %vm1491_vm3, %v12634_v33, -inf }
 0x7df   : > { %3491 = vmax.xlane.f32.xlu1 %v3490_v50  ;;  %v3487_v58 = vsel %vm1491_vm3, %v12637_v24, -inf }
 0x7e0   : > { %3488 = vmax.xlane.f32.xlu0 %v3487_v58  ;;  %v12668_v58 = vpop.permute.xlu1 %10508 }
 0x7e3   : > { %v9618_v6 = vpop.f32.mrb[34].mxu1  ;;  %v10930_v49 = vpop.eup %10929 }
 0x7e4   : > { %v3448_v22 = vpop.f32.mrb[35].mxu1  ;;  %v10932_v56 = vpop.eup %10931  ;;  %v4887_v50 = vmul.f32 %v10930_v49, %v14038_v42  ;;  %v12651_v32 = vadd.f32 %v9618_v6, %v12587_v44 }
 0x7e5   : > { %v4886_v10 = vmul.f32 %v10932_v56, %v14039_v48  ;;  %v12658_v52 = vadd.f32 %v12574_v28, %v3448_v22  ;;  %v10934_v56 = vpop.eup %10933  ;;  %v12671_v6 = vpop.permute.xlu1 %10513 }
 0x7e6   : > { %v4725_v23 = vmul.f32 %v10934_v56, %v12497_v53  ;;  %v12677_v49 = vpop.permute.xlu0 %10518 }
 0x7e7   : > { %v10542_v39 = vpack.i.bf16 %v4887_v50, %v4886_v10  ;;  %v3469_v10 = vsel %vm1491_vm3, %v12655_v13, -inf }
 0x7e8   : > { %v4741_v3 = vmul.f32 %v4725_v23, %v14035_v30 }
 0x7e9   : > { %v12673_v22 = vpop.permute.xlu1 %10523 }
 0x7ea   : > { %v12681_v57 = vpop.permute.xlu0 %4897 }
 0x7ed   : > { %v12675_v43 = vpop.permute.xlu1 %4899 }
 0x7f0   : > { %5277 = vrot.lane.b32.xlu1 %v4740_v31, %s11244_s10  ;;  %v3502_v31 = vsel %vm1491_vm3, %v12651_v32, -inf }
 0x7f1   : > { %v12679_v50 = vpop.permute.xlu1 %4992 }
 0x7f6   : > { %10543 = vrot.lane.b32.xlu0 %v10542_v39, %s11243_s9  ;;  %v3499_v39 = vsel %vm1491_vm3, %v12658_v52, -inf }
 0x814   : > { %3503 = vmax.xlane.f32.xlu1 %v3502_v31  ;;  %v12683_v31 = vpop.permute.xlu1 %10533 }
 0x815   : > { %3470 = vmax.xlane.f32.xlu0 %v3469_v10  ;;  %v12685_v10 = vpop.permute.xlu0 %10528 }
 0x818   : > { %3500 = vmax.xlane.f32.xlu1 %v3499_v39  ;;  %v12689_v39 = vadd.f32 %v12506_v2, %v12587_v44  ;;  %v12691_v56 = vpop.permute.xlu1 %5089 }
 0x819   : > { %v12693_v23 = vpop.permute.xlu0 %4994 }
 0x81c   : > { %v12697_v30 = vpop.permute.xlu1 %5182 }
 0x81d   : > { %v12699_v38 = vpop.permute.xlu0 %5087 }
 0x820   : > { %v12701_v14 = vpop.permute.xlu1 %5184 }
 0x821   : > { %v12703_v27 = vpop.permute.xlu0 %10538 }
 0x825   : > { %v12707_v2 = vpop.xlane.xlu0 %3458 }
 0x829   : > { %5279 = vrot.lane.b32.xlu1 %v4741_v3, %s11244_s10  ;;  %v3472_v3 = vsel %vm1491_vm3, %v12689_v39, -inf }
 0x82a   : > { %v12705_v61 = vpop.xlane.xlu1 %3461 }
 0x84d   : > { %3473 = vmax.xlane.f32.xlu1 %v3472_v3 }
 0x85c   : > { %v3468_v37 = vpop.xlane.xlu1 %3467 }
 0x85d   : > { %v3508_v34 = vsub.f32 %v12613_v62, %v3468_v37  ;;  %v3465_v11 = vpop.xlane.xlu0 %3464 }
 0x85e   : > { %v3507_v19 = vsub.f32 %v12616_v59, %v3465_v11 }
 0x85f   : > { %v3527_v21 = vmul.f32 1.442695, %v3508_v34 }
 0x860   : > { %v3525_v3 = vmul.f32 1.442695, %v3507_v19 }
 0x861   : > { %10935 = vpow2.f32 %v3527_v21 }
 0x862   : > { %10937 = vpow2.f32 %v3525_v3 }
 0x864   : > { %v3480_v35 = vpop.xlane.xlu1 %3479 }
 0x865   : > { %v3512_v47 = vsub.f32 %v12623_v60, %v3480_v35 }
 0x867   : > { %v3535_v63 = vmul.f32 1.442695, %v3512_v47 }
 0x868   : > { %v3477_v18 = vpop.xlane.xlu1 %3476 }
 0x869   : > { %10939 = vpow2.f32 %v3535_v63  ;;  %v3511_v17 = vsub.f32 %v12626_v4, %v3477_v18  ;;  %v4693_v4 = vadd.f32 1e-24, %v12565_v5 }
 0x86b   : > { %v12713_v40 = vpop.eup %10935  ;;  %v3533_v16 = vmul.f32 1.442695, %v3511_v17  ;;  %v4692_v17 = vadd.f32 1e-24, %v12552_v46 }
 0x86c   : > { %v12715_v20 = vpop.eup %10937  ;;  %v3492_v37 = vpop.xlane.xlu1 %3491  ;;  %v3562_v59 = vsel %vm1491_vm3, %v12713_v40, 0.0 }
 0x86d   : > { %10941 = vpow2.f32 %v3533_v16  ;;  %v3516_v21 = vsub.f32 %v12634_v33, %v3492_v37  ;;  %3563 = vadd.xlane.f32.xlu0 %v3562_v59  ;;  %v3489_v19 = vpop.xlane.xlu0 %3488  ;;  %v3559_v60 = vsel %vm1491_vm3, %v12715_v20, 0.0 }
 0x86e   : > { %v3515_v63 = vsub.f32 %v12637_v24, %v3489_v19  ;;  %3560 = vadd.xlane.f32.xlu1 %v3559_v60 }
 0x86f   : > { %v3543_v18 = vmul.f32 1.442695, %v3516_v21 }
 0x870   : > { %v3541_v47 = vmul.f32 1.442695, %v3515_v63  ;;  %v12747_v60 = vpop.permute.xlu1 %5277 }
 0x871   : > { %10943 = vpow2.f32 %v3543_v18 }
 0x872   : > { %10945 = vpow2.f32 %v3541_v47 }
 0x873   : > { %v12723_v35 = vpop.eup %10939  ;;  %10947 = vrsqrt.f32 %v4692_v17 }
 0x874   : > { %v3574_v11 = vsel %vm1491_vm3, %v12723_v35, 0.0  ;;  %10949 = vrsqrt.f32 %v4693_v4 }
 0x875   : > { %3575 = vadd.xlane.f32.xlu0 %v3574_v11 }
 0x877   : > { %v12727_v34 = vpop.eup %10941 }
 0x878   : > { %v3571_v16 = vsel %vm1491_vm3, %v12727_v34, 0.0 }
 0x879   : > { %3572 = vadd.xlane.f32.xlu0 %v3571_v16 }
 0x87b   : > { %v12732_v62 = vpop.eup %10943 }
 0x87c   : > { %v12734_v24 = vpop.eup %10945  ;;  %v3586_v33 = vsel %vm1491_vm3, %v12732_v62, 0.0 }
 0x87d   : > { %3587 = vadd.xlane.f32.xlu0 %v3586_v33  ;;  %v3583_v3 = vsel %vm1491_vm3, %v12734_v24, 0.0  ;;  %v10948_v46 = vpop.eup %10947  ;;  %v4857_v33 = vadd.f32 1e-24, %v12561_v12  ;;  %v4695_v12 = vadd.f32 1e-24, %v12599_v15 }
 0x87e   : > { %3584 = vadd.xlane.f32.xlu1 %v3583_v3  ;;  %v4726_v37 = vmul.f32 %v10948_v46, %v12497_v53  ;;  %v10950_v59 = vpop.eup %10949  ;;  %v12758_v46 = vadd.f32 %v12510_v45, %v12587_v44 }
 0x87f   : > { %v4727_v19 = vmul.f32 %v10950_v59, %v12497_v53 }
 0x880   : > { %v4742_v21 = vmul.f32 %v4726_v37, %v14039_v48  ;;  %v4694_v37 = vadd.f32 1e-24, %v12567_v7 }
 0x881   : > { %v4743_v5 = vmul.f32 %v4727_v19, %v14038_v42  ;;  %v14040_v19 = vld [vmem:[#allocation18_spill] sm:$0xff] }
 0x88f   : > { %5372 = vrot.lane.b32.xlu1 %v4742_v21, %s11244_s10 }
 0x893   : > { %5374 = vrot.lane.b32.xlu1 %v4743_v5, %s11244_s10 }
 0x8a1   : > { %v3504_v63 = vpop.xlane.xlu1 %3503 }
 0x8a2   : > { %v3520_v18 = vsub.f32 %v12651_v32, %v3504_v63  ;;  %v4856_v32 = vadd.f32 1e-24, %v12593_v54  ;;  %v14041_v63 = vld [vmem:[#allocation14_spill] sm:$0xff] }
 0x8a4   : > { %v3551_v47 = vmul.f32 1.442695, %v3520_v18 }
 0x8a5   : > { %v3501_v11 = vpop.xlane.xlu1 %3500 }
 0x8a6   : > { %10951 = vpow2.f32 %v3551_v47  ;;  %v3519_v17 = vsub.f32 %v12658_v52, %v3501_v11  ;;  %v3484_v52 = vsel %vm1491_vm3, %v12758_v46, -inf }
 0x8a8   : > { %v3549_v16 = vmul.f32 1.442695, %v3519_v17 }
 0x8aa   : > { %10953 = vpow2.f32 %v3549_v16 }
 0x8ab   : > { %10955 = vrsqrt.f32 %v4857_v33 }
 0x8ac   : > { %10957 = vrsqrt.f32 %v4856_v32  ;;  %v4859_v32 = vadd.f32 1e-24, %v12569_v8 }
 0x8ad   : > { %10959 = vrsqrt.f32 %v4694_v37 }
 0x8ae   : > { %10961 = vrsqrt.f32 %v4695_v12  ;;  %v4697_v12 = vadd.f32 1e-24, %v12601_v55  ;;  %v14042_v55 = vld [vmem:[#allocation17_spill] sm:$0xff] }
 0x8af   : > { %10963 = vrsqrt.f32 %v4859_v32 }
 0x8b0   : > { %v12751_v4 = vpop.eup %10951 }
 0x8b1   : > { %v3598_v3 = vsel %vm1491_vm3, %v12751_v4, 0.0 }
 0x8b2   : > { %3599 = vadd.xlane.f32.xlu0 %v3598_v3  ;;  %v12780_v3 = vadd.f32 %v12574_v28, %v12512_v51  ;;  %v12793_v51 = vpop.permute.xlu1 %5279 }
 0x8b4   : > { %v12764_v59 = vpop.eup %10953  ;;  %v3481_v37 = vsel %vm1491_vm3, %v12780_v3, -inf }
 0x8b5   : > { %v3595_v45 = vsel %vm1491_vm3, %v12764_v59, 0.0  ;;  %v10956_v21 = vpop.eup %10955 }
 0x8b6   : > { %v10958_v54 = vpop.eup %10957  ;;  %v4889_v5 = vmul.f32 %v10956_v21, %v14040_v19  ;;  %v12791_v21 = vpop.permute.xlu0 %10543 }
 0x8b7   : > { %3485 = vmax.xlane.f32.xlu1 %v3484_v52  ;;  %v10960_v7 = vpop.eup %10959  ;;  %v4888_v18 = vmul.f32 %v10958_v54, %v14041_v63  ;;  %v4858_v52 = vadd.f32 1e-24, %v12597_v41 }
 0x8b8   : > { %v4728_v11 = vmul.f32 %v10960_v7, %v12497_v53  ;;  %v10962_v17 = vpop.eup %10961 }
 0x8b9   : > { %v10547_v47 = vpack.i.bf16 %v4889_v5, %v4888_v18  ;;  %v4729_v16 = vmul.f32 %v10962_v17, %v12497_v53  ;;  %10965 = vrsqrt.f32 %v4858_v52  ;;  %v10964_v54 = vpop.eup %10963 }
 0x8ba   : > { %v4744_v15 = vmul.f32 %v4728_v11, %v14041_v63  ;;  %10967 = vrsqrt.f32 %v4697_v12  ;;  %v12797_v41 = vpop.xlane.xlu0 %3470  ;;  %v4891_v18 = vmul.f32 %v10964_v54, %v14042_v55  ;;  %v10511_v12 = vunpack.i.h.bf16 %v12668_v58 }
 0x8bb   : > { %3596 = vadd.xlane.f32.xlu1 %v3595_v45  ;;  %v4745_v33 = vmul.f32 %v4729_v16, %v14040_v19  ;;  %v12789_v45 = vadd.f32 %v12516_v25, %v12587_v44 }
 0x8bd   : > { %v3496_v8 = vsel %vm1491_vm3, %v12789_v45, -inf }
 0x8c3   : > { %v10966_v5 = vpop.eup %10965 }
 0x8c8   : > { %10548 = vrot.lane.b32.xlu0 %v10547_v47, %s11243_s9  ;;  %v14043_v47 = vld [vmem:[#allocation12_spill] sm:$0xff] }
 0x8c9   : > { %v4890_v44 = vmul.f32 %v10966_v5, %v14043_v47 }
 0x8cb   : > { %v10552_v17 = vpack.i.bf16 %v4891_v18, %v4890_v44 }
 0x8cc   : > { %5467 = vrot.lane.b32.xlu1 %v4744_v15, %s11244_s10  ;;  %v10968_v15 = vpop.eup %10967 }
 0x8cd   : > { %v4731_v16 = vmul.f32 %v10968_v15, %v12497_v53  ;;  %v10516_v15 = vunpack.i.h.bf16 %v12671_v6 }
 0x8cf   : > { %v4747_v32 = vmul.f32 %v4731_v16, %v14042_v55  ;;  %v3506_v16 = vsub.f32 %v12591_v26, %v12705_v61 }
 0x8d0   : > { %5469 = vrot.lane.b32.xlu1 %v4745_v33, %s11244_s10 }
 0x8da   : > { %v12799_v7 = vpop.xlane.xlu1 %3473 }
 0x8e7   : > { %3482 = vmax.xlane.f32.xlu0 %v3481_v37 }
 0x8f4   : > { %3497 = vmax.xlane.f32.xlu1 %v3496_v8  ;;  %v10510_v8 = vunpack.i.l.bf16 %v12668_v58 }
 0x8fa   : > { %v3564_v25 = vpop.xlane.xlu0 %3563 }
 0x8fb   : > { %10969 = vrcp.f32 %v3564_v25  ;;  %v3561_v11 = vpop.xlane.xlu1 %3560  ;;  %v10119_v25 = vpack.c.bf16 %v10511_v12, %v10510_v8  ;;  %v10520_v12 = vunpack.i.l.bf16 %v12677_v49  ;;  %v4696_v8 = vadd.f32 1e-24, %v12576_v36 }
 0x8fc   : > { %10971 = vrcp.f32 %v3561_v11 }
 0x8fd   : > { %10553 = vrot.lane.b32.xlu0 %v10552_v17, %s11243_s9 }
 0x902   : > { %v3576_v33 = vpop.xlane.xlu0 %3575 }
 0x903   : > { %10973 = vrcp.f32 %v3576_v33 }
 0x905   : > { %v10970_v37 = vpop.eup %10969  ;;  %5564 = vrot.lane.b32.xlu1 %v4747_v32, %s11244_s10 }
 0x906   : > { %v10972_v52 = vpop.eup %10971  ;;  %v3573_v54 = vpop.xlane.xlu0 %3572  ;;  %v3620_v18 = vmul.f32 %v10970_v37, %v12713_v40 }
 0x907   : > { %10975 = vrcp.f32 %v3573_v54  ;;  %v3619_v5 = vmul.f32 %v10972_v52, %v12715_v20  ;;  %v10515_v20 = vunpack.i.l.bf16 %v12671_v6  ;;  %v10521_v52 = vunpack.i.h.bf16 %v12677_v49 }
 0x908   : > { %v12826_v6 = vadd.f32 %v12574_v28, %v12518_v1 }
 0x909   : > { %9630 = vmatprep.mubr.msk.f32.mxu1 %vm1491_vm3, %v3619_v5  ;;  %v10127_v32 = vpack.c.bf16 %v10516_v15, %v10515_v20  ;;  %v3505_v5 = vsub.f32 %v12580_v9, %v12707_v2 }
 0x90a   : > { %9631 = vmatmul.mubr.msk.f32.vlgmr.msra.gmra.mrb[36].mxu1 %vm1491_vm3, %v3620_v18  ;;  %v3588_v44 = vpop.xlane.xlu0 %3587  ;;  %v3493_v49 = vsel %vm1491_vm3, %v12826_v6, -inf }
 0x90b   : > { %10114 = vmatpush3.bf16.msra.mxu1 %v12603_v29  ;;  %10977 = vrcp.f32 %v3588_v44  ;;  %v3585_v11 = vpop.xlane.xlu1 %3584  ;;  %v3521_v18 = vmul.f32 1.442695, %v3505_v5  ;;  %v3509_v44 = vsub.f32 %v12655_v13, %v12797_v41  ;;  %v14044_v5 = vld [vmem:[#allocation55_spill] sm:$0xff] }
 0x90c   : > { %10979 = vrcp.f32 %v3585_v11  ;;  %10120 = vmatprep.subr.bf16.mxu1 %v10119_v25 }
 0x90d   : > { %v10974_v58 = vpop.eup %10973  ;;  %v3529_v11 = vmul.f32 1.442695, %v3509_v44 }
 0x90e   : > { %v3624_v33 = vmul.f32 %v10974_v58, %v12723_v35  ;;  %v10131_v35 = vpack.c.bf16 %v10521_v52, %v10520_v12  ;;  %v10535_v12 = vunpack.i.l.bf16 %v12683_v31 }
 0x90f   : > { %v12844_v54 = vpop.permute.xlu1 %5372 }
 0x911   : > { %v10976_v17 = vpop.eup %10975 }
 0x912   : > { %v3623_v40 = vmul.f32 %v10976_v17, %v12727_v34  ;;  %v3523_v34 = vmul.f32 1.442695, %v3506_v16 }
 0x914   : > { %9644 = vmatprep.mubr.msk.f32.mxu1 %vm1491_vm3, %v3623_v40  ;;  %10981 = vpow2.f32 %v3523_v34 }
 0x915   : > { %v10978_v29 = vpop.eup %10977  ;;  %9645 = vmatmul.mubr.msk.f32.vlgmr.msra.gmra.mrb[38].mxu1 %vm1491_vm3, %v3624_v33  ;;  %10983 = vrsqrt.f32 %v4696_v8 }
 0x916   : > { %v10980_v37 = vpop.eup %10979  ;;  %10122 = vmatpush3.bf16.msra.mxu1 %v10119_v25  ;;  %v3628_v26 = vmul.f32 %v10978_v29, %v12732_v62  ;;  %v12850_v25 = vpop.permute.xlu1 %5374  ;;  %10985 = vpow2.f32 %v3521_v18  ;;  %v14045_v18 = vld [vmem:[#allocation56_spill] sm:$0xff] }
 0x917   : > { %10128 = vmatprep.subr.bf16.mxu1 %v10127_v32  ;;  %v3627_v61 = vmul.f32 %v10980_v37, %v12734_v24  ;;  %10987 = vpow2.f32 %v3529_v11  ;;  %v14046_v11 = vld [vmem:[#allocation57_spill] sm:$0xff] }
 0x919   : > { %9658 = vmatprep.mubr.msk.f32.mxu1 %vm1491_vm3, %v3627_v61 }
 0x91a   : > { %9659 = vmatmul.mubr.msk.f32.vlgmr.msra.gmra.mrb[40].mxu1 %vm1491_vm3, %v3628_v26 }
 0x91b   : > { %10130 = vmatpush3.bf16.msra.mxu1 %v10127_v32 }
 0x91c   : > { %10133 = vmatprep.subr.msk.bf16.mxu1 %vm11859_vm2, %v10131_v35  ;;  %3494 = vmax.xlane.f32.xlu0 %v3493_v49 }
 0x91e   : > { %v12837_v1 = vpop.eup %10981 }
 0x91f   : > { %v3556_v28 = vsel %vm1491_vm3, %v12837_v1, 0.0  ;;  %v10984_v62 = vpop.eup %10983 }
 0x920   : > { %v4730_v24 = vmul.f32 %v10984_v62, %v12497_v53  ;;  %v3510_v53 = vsub.f32 %v12689_v39, %v12799_v7  ;;  %v12854_v9 = vpop.eup %10985  ;;  %v10526_v39 = vunpack.i.h.bf16 %v12673_v22  ;;  %v10525_v7 = vunpack.i.l.bf16 %v12673_v22 }
 0x921   : > { %v3553_v13 = vsel %vm1491_vm3, %v12854_v9, 0.0  ;;  %v12858_v2 = vpop.eup %10987 }
 0x922   : > { %v4746_v36 = vmul.f32 %v4730_v24, %v14043_v47  ;;  %v3531_v15 = vmul.f32 1.442695, %v3510_v53  ;;  %v3565_v16 = vsel %vm1491_vm3, %v12858_v2, 0.0  ;;  %v10137_v37 = vpack.c.bf16 %v10526_v39, %v10525_v7  ;;  %v14048_v7 = vld [vmem:[#allocation54_spill] sm:$0xff] }
 0x929   : > { %3557 = vadd.xlane.f32.xlu1 %v3556_v28 }
 0x932   : > { %5562 = vrot.lane.b32.xlu0 %v4746_v36, %s11244_s10  ;;  %s9067_s10 = sld [smem:[#allocation2 + $0x3]] }
 0x93f   : > { %v3600_v17 = vpop.xlane.xlu0 %3599 }
 0x940   : > { %10989 = vrcp.f32 %v3600_v17 }
 0x943   : > { %v10549_v61 = vpop.permute.xlu0 %10548 }
 0x944   : > { %v3486_v58 = vpop.xlane.xlu1 %3485 }
 0x948   : > { %v3597_v20 = vpop.xlane.xlu1 %3596 }
 0x949   : > { %10991 = vrcp.f32 %v3597_v20  ;;  %v14047_v20 = vld [vmem:[#allocation40_spill] sm:$0xff] }
 0x94a   : > { %10993 = vpow2.f32 %v3531_v15  ;;  %v10990_v41 = vpop.eup %10989 }
 0x94b   : > { %v3632_v32 = vmul.f32 %v10990_v41, %v12751_v4  ;;  %v10531_v4 = vunpack.i.h.bf16 %v12685_v10 }
 0x951   : > { %3554 = vadd.xlane.f32.xlu0 %v3553_v13 }
 0x953   : > { %v10992_v40 = vpop.eup %10991 }
 0x954   : > { %v3631_v33 = vmul.f32 %v10992_v40, %v12764_v59  ;;  %v12865_v29 = vpop.eup %10993  ;;  %v10530_v59 = vunpack.i.l.bf16 %v12685_v10 }
 0x955   : > { %3566 = vadd.xlane.f32.xlu0 %v3565_v16  ;;  %v3568_v22 = vsel %vm1491_vm3, %v12865_v29, 0.0 }
 0x956   : > { %9672 = vmatprep.mubr.msk.f32.mxu1 %vm1491_vm3, %v3631_v33  ;;  %v10143_v52 = vpack.c.bf16 %v10531_v4, %v10530_v59 }
 0x957   : > { %9673 = vmatmul.mubr.msk.f32.vlgmr.msra.gmra.mrb[42].mxu1 %vm1491_vm3, %v3632_v32 }
 0x958   : > { %10136 = vmatpush3.bf16.xpose.msk.msra.mxu1 %vm11859_vm2, %v10131_v35  ;;  %9715 = vmatprep.mubr.msk.f32.mxu1 %vm486_vm1, %v12681_v57  ;;  %v10536_v57 = vunpack.i.h.bf16 %v12683_v31  ;;  %v10545_v31 = vunpack.i.l.bf16 %v12791_v21 }
 0x959   : > { %10139 = vmatprep.subr.msk.bf16.mxu1 %vm11859_vm2, %v10137_v37  ;;  %3569 = vadd.xlane.f32.xlu0 %v3568_v22 }
 0x95a   : > { %v10149_v34 = vpack.c.bf16 %v10536_v57, %v10535_v12 }
 0x95f   : > { %9716 = vmatmul.mubr.msk.f32.vlgmr.msra.gmra.mrb[44].mxu1 %vm486_vm1, %v12675_v43  ;;  %v10541_v43 = vunpack.i.h.bf16 %v12703_v27 }
 0x960   : > { %10142 = vmatpush3.bf16.xpose.msk.msra.mxu1 %vm11859_vm2, %v10137_v37  ;;  %9722 = vmatprep.mubr.msk.f32.mxu1 %vm486_vm1, %v12679_v50  ;;  %v10540_v50 = vunpack.i.l.bf16 %v12703_v27  ;;  %v3514_v27 = vsub.f32 %v12758_v46, %v3486_v58  ;;  %v10550_v46 = vunpack.i.l.bf16 %v10549_v61 }
 0x961   : > { %10145 = vmatprep.subr.msk.bf16.mxu1 %vm11859_vm2, %v10143_v52 }
 0x962   : > { %v10155_v10 = vpack.c.bf16 %v10541_v43, %v10540_v50  ;;  %v3539_v8 = vmul.f32 1.442695, %v3514_v27 }
 0x967   : > { %9723 = vmatmul.mubr.msk.f32.vlgmr.msra.gmra.mrb[46].mxu1 %vm486_vm1, %v12693_v23 }
 0x968   : > { %10148 = vmatpush3.bf16.xpose.msk.msra.mxu1 %vm11859_vm2, %v10143_v52  ;;  %9729 = vmatprep.mubr.msk.f32.mxu1 %vm486_vm1, %v12699_v38  ;;  %v10546_v38 = vunpack.i.h.bf16 %v12791_v21 }
 0x969   : > { %10151 = vmatprep.subr.msk.bf16.mxu1 %vm11859_vm2, %v10149_v34 }
 0x96f   : > { %9730 = vmatmul.mubr.msk.f32.vlgmr.msra.gmra.mrb[48].mxu1 %vm486_vm1, %v12691_v56  ;;  %v10161_v56 = vpack.c.bf16 %v10546_v38, %v10545_v31 }
 0x970   : > { %10154 = vmatpush3.bf16.xpose.msk.msra.mxu1 %vm11859_vm2, %v10149_v34  ;;  %9736 = vmatprep.mubr.msk.f32.mxu1 %vm486_vm1, %v12697_v30  ;;  %v10551_v30 = vunpack.i.h.bf16 %v10549_v61 }
 0x971   : > { %10157 = vmatprep.subr.msk.bf16.mxu1 %vm11859_vm2, %v10155_v10 }
 0x974   : > { %v3483_v23 = vpop.xlane.xlu0 %3482 }
 0x975   : > { %v3513_v26 = vsub.f32 %v12780_v3, %v3483_v23  ;;  %v10167_v3 = vpack.c.bf16 %v10551_v30, %v10550_v46 }
 0x977   : > { %v3537_v35 = vmul.f32 1.442695, %v3513_v26  ;;  %9737 = vmatmul.mubr.msk.f32.vlgmr.msra.gmra.mrb[50].mxu1 %vm486_vm1, %v12701_v14 }
 0x978   : > { %10160 = vmatpush3.bf16.xpose.msk.msra.mxu1 %vm11859_vm2, %v10155_v10  ;;  %9743 = vmatprep.mubr.msk.f32.mxu1 %vm486_vm1, %v12747_v60  ;;  %v10554_v21 = vpop.permute.xlu0 %10553 }
 0x979   : > { %10995 = vpow2.f32 %v3537_v35  ;;  %10163 = vmatprep.subr.msk.bf16.mxu1 %vm11859_vm2, %v10161_v56  ;;  %v10556_v60 = vunpack.i.h.bf16 %v10554_v21  ;;  %v10555_v49 = vunpack.i.l.bf16 %v10554_v21 }
 0x97a   : > { %10997 = vpow2.f32 %v3539_v8 }
 0x97b   : > { %v10173_v24 = vpack.c.bf16 %v10556_v60, %v10555_v49 }
 0x97f   : > { %9744 = vmatmul.mubr.msk.f32.vlgmr.msra.gmra.mrb[52].mxu1 %vm486_vm1, %v12793_v51  ;;  %v5468_v51 = vpop.permute.xlu1 %5467 }
 0x980   : > { %10166 = vmatpush3.bf16.xpose.msk.msra.mxu1 %vm11859_vm2, %v10161_v56  ;;  %9750 = vmatprep.mubr.msk.f32.mxu1 %vm486_vm1, %v12844_v54 }
 0x981   : > { %10169 = vmatprep.subr.msk.bf16.mxu1 %vm11859_vm2, %v10167_v3 }
 0x983   : > { %v12928_v14 = vpop.eup %10995  ;;  %v5470_v54 = vpop.permute.xlu1 %5469 }
 0x984   : > { %v3577_v28 = vsel %vm1491_vm3, %v12928_v14, 0.0  ;;  %v12932_v62 = vpop.eup %10997 }
 0x985   : > { %3578 = vadd.xlane.f32.xlu0 %v3577_v28  ;;  %v3580_v36 = vsel %vm1491_vm3, %v12932_v62, 0.0 }
 0x987   : > { %9751 = vmatmul.mubr.msk.f32.vlgmr.msra.gmra.mrb[54].mxu1 %vm486_vm1, %v12850_v25  ;;  %v3498_v44 = vpop.xlane.xlu1 %3497 }
 0x988   : > { %10172 = vmatpush3.bf16.xpose.msk.msra.mxu1 %vm11859_vm2, %v10167_v3  ;;  %9757 = vmatprep.mubr.msk.f32.mxu1 %vm486_vm1, %v5468_v51  ;;  %v3518_v25 = vsub.f32 %v12789_v45, %v3498_v44 }
 0x989   : > { %10175 = vmatprep.subr.msk.bf16.mxu1 %vm11859_vm2, %v10173_v24  ;;  %3581 = vadd.xlane.f32.xlu0 %v3580_v36  ;;  %v13012_v36 = vld [vmem:[%s13795_s4 + $0x20] sm:$0xff] }
 0x98a   : > { %v3547_v17 = vmul.f32 1.442695, %v3518_v25 }
 0x98b   : > { %v5565_v41 = vpop.permute.xlu1 %5564 }
 0x98f   : > { %9758 = vmatmul.mubr.msk.f32.vlgmr.msra.gmra.mrb[56].mxu1 %vm486_vm1, %v5470_v54 }
 0x990   : > { %10178 = vmatpush3.bf16.xpose.msk.msra.mxu1 %vm11859_vm2, %v10173_v24 }
 0x99f   : > { %10558 = vrot.lane.b32.xlu0 %v14044_v5, %s11245_s11 }
 0x9a3   : > { %10568 = vrot.lane.b32.xlu0 %v14045_v18, %s11245_s11 }
 0x9a7   : > { %10573 = vrot.lane.b32.xlu0 %v14046_v11, %s11245_s11 }
 0x9a9   : > { %v3495_v53 = vpop.xlane.xlu0 %3494 }
 0x9aa   : > { %v3517_v58 = vsub.f32 %v12826_v6, %v3495_v53 }
 0x9ab   : > { %10583 = vrot.lane.b32.xlu0 %v14047_v20, %s11246_s19 }
 0x9ac   : > { %v3545_v15 = vmul.f32 1.442695, %v3517_v58 }
 0x9ad   : > { %v5563_v13 = vpop.permute.xlu0 %5562 }
 0x9ae   : > { %10999 = vpow2.f32 %v3545_v15  ;;  %9764 = vmatprep.mubr.msk.f32.mxu1 %vm486_vm1, %v5563_v13 }
 0x9af   : > { %9765 = vmatmul.mubr.msk.f32.vlgmr.msra.gmra.mrb[58].mxu1 %vm486_vm1, %v5565_v41  ;;  %11001 = vpow2.f32 %v3547_v17 }
 0x9b6   : > { %v3558_v61 = vpop.xlane.xlu1 %3557 }
 0x9b8   : > { %v12958_v45 = vpop.eup %10999 }
 0x9b9   : > { %v3589_v40 = vsel %vm1491_vm3, %v12958_v45, 0.0  ;;  %v12962_v6 = vpop.eup %11001 }
 0x9ba   : > { %3590 = vadd.xlane.f32.xlu1 %v3589_v40  ;;  %v3592_v39 = vsel %vm1491_vm3, %v12962_v6, 0.0 }
 0x9be   : > { %3593 = vadd.xlane.f32.xlu1 %v3592_v39 }
 0x9cf   : > { %10563 = vrot.lane.b32.xlu1 %v14048_v7, %s11245_s11 }
 0x9d3   : > { %10578 = vrot.lane.b32.xlu1 %v14044_v5, %s11246_s19 }
 0x9d7   : > { %10588 = vrot.lane.b32.xlu1 %v14048_v7, %s11246_s19 }
 0x9dd   : > { %v12972_v16 = vpop.f32.mrb[36].mxu1 }
 0x9de   : > { %v12974_v33 = vpop.f32.mrb[37].mxu1  ;;  %v3555_v32 = vpop.xlane.xlu0 %3554 }
 0x9df   : > { %v4330_v37 = vpack.c.bf16 %v12972_v16, %v12974_v33  ;;  %11003 = vrcp.f32 %v3555_v32 }
 0x9e0   : > { %11005 = vrcp.f32 %v3558_v61 }
 0x9e2   : > { %v3567_v50 = vpop.xlane.xlu0 %3566 }
 0x9e3   : > { %11007 = vrcp.f32 %v3567_v50 }
 0x9e6   : > { %v3570_v10 = vpop.xlane.xlu0 %3569 }
 0x9e7   : > { %11009 = vrcp.f32 %v3570_v10 }
 0x9e8   : > { %v12978_v22 = vpop.f32.mrb[38].mxu1 }
 0x9e9   : > { %v11004_v4 = vpop.eup %11003  ;;  %v12980_v59 = vpop.f32.mrb[39].mxu1 }
 0x9ea   : > { %v4332_v52 = vpack.c.bf16 %v12978_v22, %v12980_v59  ;;  %v3617_v57 = vmul.f32 %v11004_v4, %v12854_v9  ;;  %v11006_v35 = vpop.eup %11005  ;;  %v14052_v22 = vld [vmem:[#allocation23_spill] sm:$0xff]  ;;  %v14053_v59 = vld [vmem:[#allocation8_spill] sm:$0xff] }
 0x9eb   : > { %v3618_v30 = vmul.f32 %v11006_v35, %v12837_v1 }
 0x9ec   : > { %9623 = vmatprep.mubr.msk.f32.mxu0 %vm1491_vm3, %v3617_v57 }
 0x9ed   : > { %v12986_v12 = vpop.f32.mrb[40].mxu1  ;;  %v11008_v8 = vpop.eup %11007 }
 0x9ee   : > { %v12988_v34 = vpop.f32.mrb[41].mxu1  ;;  %v3621_v3 = vmul.f32 %v11008_v8, %v12858_v2  ;;  %v13007_v2 = vld [vmem:[%s13795_s4 + $0x28] sm:$0xff] }
 0x9ef   : > { %v4334_v43 = vpack.c.bf16 %v12986_v12, %v12988_v34  ;;  %v14055_v12 = vld [vmem:[#allocation43_spill] sm:$0xff]  ;;  %v14056_v34 = vld [vmem:[#allocation37_spill] sm:$0xff] }
 0xa12   : > { %v3579_v38 = vpop.xlane.xlu0 %3578 }
 0xa13   : > { %11011 = vrcp.f32 %v3579_v38 }
 0xa16   : > { %v3582_v31 = vpop.xlane.xlu0 %3581 }
 0xa17   : > { %11013 = vrcp.f32 %v3582_v31 }
 0xa1a   : > { %v10559_v27 = vpop.permute.xlu0 %10558 }
 0xa1b   : > { %v10561_v23 = vunpack.i.h.bf16 %v10559_v27  ;;  %v10560_v26 = vunpack.i.l.bf16 %v10559_v27 }
 0xa1d   : > { %v10099_v9 = vpack.c.bf16 %v10561_v23, %v10560_v26 }
 0xa1e   : > { %v10569_v56 = vpop.permute.xlu0 %10568 }
 0xa1f   : > { %10100 = vmatprep.subr.bf16.mxu0 %v10099_v9  ;;  %v10570_v35 = vunpack.i.l.bf16 %v10569_v56 }
 0xa20   : > { %10102 = vmatpush3.bf16.msra.mxu0 %v10099_v9  ;;  %v10571_v9 = vunpack.i.h.bf16 %v10569_v56 }
 0xa22   : > { %v12993_v46 = vpop.permute.xlu0 %10573  ;;  %v10115_v38 = vpack.c.bf16 %v10571_v9, %v10570_v35 }
 0xa23   : > { %9624 = vmatmul.mubr.msk.f32.vlgmr.msra.gmra.mrb[28].mxu0 %vm1491_vm3, %v3618_v30 }
 0xa24   : > { %9637 = vmatprep.mubr.msk.f32.mxu0 %vm1491_vm3, %v3621_v3 }
 0xa26   : > { %v10584_v21 = vpop.permute.xlu0 %10583 }
 0xa27   : > { %v10586_v60 = vunpack.i.h.bf16 %v10584_v21  ;;  %v10585_v49 = vunpack.i.l.bf16 %v10584_v21  ;;  %v11010_v21 = vpop.eup %11009 }
 0xa28   : > { %v3622_v31 = vmul.f32 %v11010_v21, %v12865_v29  ;;  %v467_v21 = vld [vmem:[%s13796_s5 + $0x4] sm:$0xf] }
 0xa29   : > { %v10183_v28 = vpack.c.bf16 %v10586_v60, %v10585_v49  ;;  %v10576_v49 = vunpack.i.h.bf16 %v12993_v46 }
 0xa2a   : > { %v12998_v51 = vpop.f32.mrb[42].mxu1 }
 0xa2b   : > { %v13000_v24 = vpop.f32.mrb[43].mxu1  ;;  %10184 = vmatprep.subr.bf16.mxu1 %v10183_v28 }
 0xa2c   : > { %v4336_v1 = vpack.c.bf16 %v12998_v51, %v13000_v24  ;;  %10186 = vmatpush3.bf16.msra.mxu1 %v10183_v28  ;;  %v10575_v28 = vunpack.i.l.bf16 %v12993_v46  ;;  %v14058_v51 = vld [vmem:[#allocation31_spill] sm:$0xff]  ;;  %v14059_v24 = vld [vmem:[#allocation25_spill] sm:$0xff] }
 0xa32   : > { %v9717_v54 = vpop.f32.mrb[44].mxu1 }
 0xa33   : > { %v13015_v44 = vadd.f32 %v9717_v54, %v13007_v2  ;;  %v4981_v25 = vpop.f32.mrb[45].mxu1  ;;  %v11012_v54 = vpop.eup %11011 }
 0xa34   : > { %v13018_v53 = vadd.f32 %v13012_v36, %v4981_v25  ;;  %v11014_v25 = vpop.eup %11013 }
 0xa35   : > { %v5658_v58 = vsel %vm1491_vm3, %v13015_v44, -inf  ;;  %v3626_v46 = vmul.f32 %v11014_v25, %v12932_v62 }
 0xa36   : > { %5659 = vmax.xlane.f32.xlu1 %v5658_v58  ;;  %v5655_v17 = vsel %vm1491_vm3, %v13018_v53, -inf  ;;  %v3625_v58 = vmul.f32 %v11012_v54, %v12928_v14 }
 0xa37   : > { %5656 = vmax.xlane.f32.xlu0 %v5655_v17  ;;  %v10123_v17 = vpack.c.bf16 %v10576_v49, %v10575_v28 }
 0xa3a   : > { %v9724_v15 = vpop.f32.mrb[46].mxu1 }
 0xa3b   : > { %v13025_v13 = vadd.f32 %v9724_v15, %v13007_v2  ;;  %v5076_v41 = vpop.f32.mrb[47].mxu1  ;;  %v14049_v15 = vld [vmem:[#allocation46_spill] sm:$0xff] }
 0xa3c   : > { %v13028_v40 = vadd.f32 %v13012_v36, %v5076_v41 }
 0xa3d   : > { %v5664_v39 = vsel %vm1491_vm3, %v13025_v13, -inf }
 0xa3e   : > { %5665 = vmax.xlane.f32.xlu0 %v5664_v39  ;;  %v5661_v32 = vsel %vm1491_vm3, %v13028_v40, -inf }
 0xa42   : > { %v9731_v4 = vpop.f32.mrb[48].mxu1  ;;  %5662 = vmax.xlane.f32.xlu0 %v5661_v32 }
 0xa43   : > { %v5171_v57 = vpop.f32.mrb[49].mxu1  ;;  %v13064_v35 = vadd.f32 %v9731_v4, %v13007_v2 }
 0xa47   : > { %v3591_v50 = vpop.xlane.xlu1 %3590  ;;  %10598 = vrot.lane.b32.xlu1 %v14045_v18, %s11246_s19 }
 0xa48   : > { %11015 = vrcp.f32 %v3591_v50 }
 0xa4a   : > { %v9738_v61 = vpop.f32.mrb[50].mxu1 }
 0xa4b   : > { %v3594_v27 = vpop.xlane.xlu1 %3593  ;;  %v5266_v23 = vpop.f32.mrb[51].mxu1 }
 0xa4c   : > { %11017 = vrcp.f32 %v3594_v27  ;;  %v13054_v62 = vadd.f32 %v13012_v36, %v5266_v23 }
 0xa4f   : > { %v10564_v26 = vpop.permute.xlu1 %10563 }
 0xa50   : > { %v10566_v8 = vunpack.i.h.bf16 %v10564_v26  ;;  %v10565_v30 = vunpack.i.l.bf16 %v10564_v26  ;;  %v13051_v26 = vadd.f32 %v13012_v36, %v5171_v57 }
 0xa52   : > { %v10107_v3 = vpack.c.bf16 %v10566_v8, %v10565_v30  ;;  %v9745_v60 = vpop.f32.mrb[52].mxu1  ;;  %v11016_v56 = vpop.eup %11015  ;;  %v5670_v8 = vsel %vm1491_vm3, %v13064_v35, -inf  ;;  %v13074_v30 = vadd.f32 %v9738_v61, %v13007_v2 }
 0xa53   : > { %v5361_v10 = vpop.f32.mrb[53].mxu1  ;;  %v3629_v29 = vmul.f32 %v11016_v56, %v12958_v45  ;;  %v5667_v45 = vsel %vm1491_vm3, %v13051_v26, -inf  ;;  %v13086_v49 = vadd.f32 %v9745_v60, %v13007_v2 }
 0xa54   : > { %10108 = vmatprep.subr.bf16.mxu0 %v10107_v3  ;;  %v13059_v9 = vadd.f32 %v13012_v36, %v5361_v10  ;;  %v5676_v61 = vsel %vm1491_vm3, %v13074_v30, -inf  ;;  %v4363_v10 = vsel %vm4361_vm4, %v467_v21, 0 }
 0xa55   : > { %10110 = vmatpush3.bf16.msra.mxu0 %v10107_v3  ;;  %v5682_v60 = vsel %vm1491_vm3, %v13086_v49, -inf }
 0xa56   : > { %10116 = vmatprep.subr.bf16.mxu0 %v10115_v38  ;;  %v11018_v41 = vpop.eup %11017  ;;  %v5679_v23 = vsel %vm1491_vm3, %v13059_v9, -inf }
 0xa57   : > { %v3630_v14 = vmul.f32 %v11018_v41, %v12962_v6  ;;  %v5673_v6 = vsel %vm1491_vm3, %v13054_v62, -inf }
 0xa58   : > { %9638 = vmatmul.mubr.msk.f32.vlgmr.msra.gmra.mrb[30].mxu0 %vm1491_vm3, %v3622_v31  ;;  %10593 = vrot.lane.b32.xlu0 %v14049_v15, %s11246_s19 }
 0xa59   : > { %10118 = vmatpush3.bf16.msra.mxu0 %v10115_v38  ;;  %9651 = vmatprep.mubr.msk.f32.mxu0 %vm1491_vm3, %v3625_v58  ;;  %v13096_v38 = vld [vmem:[%s13796_s5] sm:$0xf] }
 0xa5a   : > { %10124 = vmatprep.subr.bf16.mxu0 %v10123_v17  ;;  %v9752_v39 = vpop.f32.mrb[54].mxu1 }
 0xa5b   : > { %v5456_v32 = vpop.f32.mrb[55].mxu1  ;;  %v13099_v54 = vadd.f32 %v9752_v39, %v13007_v2 }
 0xa5c   : > { %9652 = vmatmul.mubr.msk.f32.vlgmr.msra.gmra.mrb[32].mxu0 %vm1491_vm3, %v3626_v46  ;;  %v13067_v57 = vadd.f32 %v13012_v36, %v5456_v32  ;;  %v14050_v32 = vld [vmem:[#allocation41_spill] sm:$0xff] }
 0xa5d   : > { %10126 = vmatpush3.bf16.msra.mxu0 %v10123_v17  ;;  %9665 = vmatprep.mubr.msk.f32.mxu0 %vm1491_vm3, %v3629_v29  ;;  %v5688_v56 = vsel %vm1491_vm3, %v13099_v54, -inf }
 0xa5e   : > { %v5685_v4 = vsel %vm1491_vm3, %v13067_v57, -inf  ;;  %10343 = vmatprep.subr.msk.bf16.mxu0 %vm4361_vm4, %v467_v21 }
 0xa60   : > { %9666 = vmatmul.mubr.msk.f32.vlgmr.msra.gmra.mrb[34].mxu0 %vm1491_vm3, %v3630_v14 }
 0xa61   : > { %9676 = vmatpush3.bf16.msra.mxu0 %v4363_v10 }
 0xa62   : > { %v9759_v50 = vpop.f32.mrb[56].mxu1  ;;  %10344 = vmatprep.subr.msk.bf16.mxu0 %vm4361_vm4, %v13096_v38 }
 0xa63   : > { %v5551_v27 = vpop.f32.mrb[57].mxu1  ;;  %v13106_v25 = vadd.f32 %v9759_v50, %v13007_v2 }
 0xa64   : > { %v13077_v3 = vadd.f32 %v13012_v36, %v5551_v27 }
 0xa65   : > { %v5694_v39 = vsel %vm1491_vm3, %v13106_v25, -inf }
 0xa66   : > { %v5691_v28 = vsel %vm1491_vm3, %v13077_v3, -inf }
 0xa6b   : > { %5668 = vmax.xlane.f32.xlu1 %v5667_v45 }
 0xa6f   : > { %5674 = vmax.xlane.f32.xlu1 %v5673_v6 }
 0xa73   : > { %5680 = vmax.xlane.f32.xlu1 %v5679_v23 }
 0xa77   : > { %5671 = vmax.xlane.f32.xlu0 %v5670_v8  ;;  %5686 = vmax.xlane.f32.xlu1 %v5685_v4 }
 0xa7b   : > { %5677 = vmax.xlane.f32.xlu0 %v5676_v61  ;;  %5692 = vmax.xlane.f32.xlu1 %v5691_v28 }
 0xa7f   : > { %5683 = vmax.xlane.f32.xlu0 %v5682_v60 }
 0xa82   : > { %v9766_v31 = vpop.f32.mrb[58].mxu1 }
 0xa83   : > { %v5646_v58 = vpop.f32.mrb[59].mxu1  ;;  %5689 = vmax.xlane.f32.xlu0 %v5688_v56  ;;  %v13116_v41 = vadd.f32 %v9766_v31, %v13007_v2 }
 0xa84   : > { %v13111_v17 = vadd.f32 %v13012_v36, %v5646_v58  ;;  %v10579_v36 = vpop.permute.xlu1 %10578 }
 0xa85   : > { %v5700_v29 = vsel %vm1491_vm3, %v13116_v41, -inf }
 0xa86   : > { %v5697_v46 = vsel %vm1491_vm3, %v13111_v17, -inf }
 0xa87   : > { %5698 = vmax.xlane.f32.xlu1 %v5697_v46  ;;  %5695 = vmax.xlane.f32.xlu0 %v5694_v39 }
 0xa88   : > { %v13126_v14 = vpop.permute.xlu1 %10588 }
 0xa8b   : > { %5701 = vmax.xlane.f32.xlu0 %v5700_v29 }
 0xa98   : > { %10603 = vrot.lane.b32.xlu1 %v14050_v32, %s11246_s19 }
 0xaa1   : > { %10608 = vrot.lane.b32.xlu0 %v14046_v11, %s11246_s19 }
 0xac3   : > { %v5660_v2 = vpop.xlane.xlu1 %5659 }
 0xac4   : > { %v5704_v50 = vsub.f32 %v13015_v44, %v5660_v2  ;;  %v5657_v27 = vpop.xlane.xlu0 %5656 }
 0xac5   : > { %v5703_v45 = vsub.f32 %v13018_v53, %v5657_v27 }
 0xac6   : > { %v5721_v6 = vmul.f32 1.442695, %v5704_v50 }
 0xac7   : > { %v5719_v23 = vmul.f32 1.442695, %v5703_v45  ;;  %v13151_v50 = vpop.permute.xlu1 %10598  ;;  %v10581_v45 = vunpack.i.h.bf16 %v10579_v36 }
 0xac8   : > { %11019 = vpow2.f32 %v5721_v6  ;;  %v10580_v6 = vunpack.i.l.bf16 %v10579_v36 }
 0xac9   : > { %11021 = vpow2.f32 %v5719_v23 }
 0xacb   : > { %v5666_v8 = vpop.xlane.xlu0 %5665 }
 0xacc   : > { %v5706_v4 = vsub.f32 %v13025_v13, %v5666_v8 }
 0xace   : > { %v5725_v21 = vmul.f32 1.442695, %v5706_v4 }
 0xacf   : > { %v5663_v61 = vpop.xlane.xlu0 %5662 }
 0xad0   : > { %11023 = vpow2.f32 %v5725_v21  ;;  %v5705_v28 = vsub.f32 %v13028_v40, %v5663_v61  ;;  %v4487_v61 = vsel %vm4361_vm4, %v13096_v38, 0 }
 0xad2   : > { %v13132_v10 = vpop.eup %11019  ;;  %v5723_v60 = vmul.f32 1.442695, %v5705_v28 }
 0xad3   : > { %v13134_v31 = vpop.eup %11021  ;;  %v10594_v44 = vpop.permute.xlu0 %10593  ;;  %v5754_v53 = vsel %vm1491_vm3, %v13132_v10, 0.0 }
 0xad4   : > { %11025 = vpow2.f32 %v5723_v60  ;;  %v10596_v56 = vunpack.i.h.bf16 %v10594_v44  ;;  %v10595_v58 = vunpack.i.l.bf16 %v10594_v44  ;;  %5755 = vadd.xlane.f32.xlu0 %v5754_v53  ;;  %v5751_v13 = vsel %vm1491_vm3, %v13134_v31, 0.0 }
 0xad5   : > { %5752 = vadd.xlane.f32.xlu1 %v5751_v13  ;;  %v13161_v60 = vpack.c.bf16 %v10581_v45, %v10580_v6 }
 0xad6   : > { %v13140_v46 = vpack.c.bf16 %v10596_v56, %v10595_v58 }
 0xad8   : > { %10192 = vmatprep.subr.bf16.mxu1 %v13140_v46 }
 0xada   : > { %v13143_v40 = vpop.eup %11023 }
 0xadb   : > { %v5760_v39 = vsel %vm1491_vm3, %v13143_v40, 0.0 }
 0xadc   : > { %5761 = vadd.xlane.f32.xlu0 %v5760_v39 }
 0xade   : > { %v13147_v29 = vpop.eup %11025 }
 0xadf   : > { %v5757_v2 = vsel %vm1491_vm3, %v13147_v29, 0.0 }
 0xae0   : > { %5758 = vadd.xlane.f32.xlu1 %v5757_v2 }
 0xaf6   : > { %v9625_v27 = vpop.f32.mrb[28].mxu0 }
 0xaf7   : > { %v3711_v23 = vpop.f32.mrb[29].mxu0 }
 0xaf8   : > { %v5669_v8 = vpop.xlane.xlu1 %5668  ;;  %v4329_v4 = vpack.c.bf16 %v9625_v27, %v3711_v23 }
 0xaf9   : > { %v5707_v21 = vsub.f32 %v13051_v26, %v5669_v8 }
 0xafa   : > { %9677 = vmatprep.mubr.msk.bf16.mxu0 %vm486_vm1, %v4329_v4 }
 0xafb   : > { %v5727_v28 = vmul.f32 1.442695, %v5707_v21  ;;  %9678 = vmatmul.mubr.msk.bf16.vlgmr.msra.gmra.mrb[36].mxu0 %vm486_vm1, %v4330_v37 }
 0xafc   : > { %v5675_v44 = vpop.xlane.xlu1 %5674  ;;  %9694 = vmatpush3.bf16.msra.mxu0 %v4487_v61 }
 0xafd   : > { %11027 = vpow2.f32 %v5727_v28  ;;  %v5709_v36 = vsub.f32 %v13054_v62, %v5675_v44  ;;  %10180 = vmatprep.subr.bf16.mxu0 %v13161_v60 }
 0xaff   : > { %v5731_v26 = vmul.f32 1.442695, %v5709_v36 }
 0xb00   : > { %v5681_v53 = vpop.xlane.xlu1 %5680 }
 0xb01   : > { %11029 = vpow2.f32 %v5731_v26  ;;  %v5711_v38 = vsub.f32 %v13059_v9, %v5681_v53 }
 0xb03   : > { %v5735_v56 = vmul.f32 1.442695, %v5711_v38 }
 0xb04   : > { %v5672_v58 = vpop.xlane.xlu0 %5671  ;;  %v5687_v13 = vpop.xlane.xlu1 %5686 }
 0xb05   : > { %11031 = vpow2.f32 %v5735_v56  ;;  %v5708_v16 = vsub.f32 %v13064_v35, %v5672_v58  ;;  %v5713_v33 = vsub.f32 %v13067_v57, %v5687_v13 }
 0xb07   : > { %v13168_v37 = vpop.eup %11027  ;;  %v5729_v39 = vmul.f32 1.442695, %v5708_v16  ;;  %v5739_v2 = vmul.f32 1.442695, %v5713_v33 }
 0xb08   : > { %v5678_v62 = vpop.xlane.xlu0 %5677  ;;  %v5693_v27 = vpop.xlane.xlu1 %5692  ;;  %v5763_v45 = vsel %vm1491_vm3, %v13168_v37, 0.0 }
 0xb09   : > { %11033 = vpow2.f32 %v5729_v39  ;;  %v5710_v9 = vsub.f32 %v13074_v30, %v5678_v62  ;;  %v5715_v6 = vsub.f32 %v13077_v3, %v5693_v27  ;;  %5764 = vadd.xlane.f32.xlu1 %v5763_v45 }
 0xb0a   : > { %11035 = vpow2.f32 %v5739_v2 }
 0xb0b   : > { %v13174_v23 = vpop.eup %11029  ;;  %v5733_v35 = vmul.f32 1.442695, %v5710_v9  ;;  %v5743_v57 = vmul.f32 1.442695, %v5715_v6 }
 0xb0c   : > { %v5684_v8 = vpop.xlane.xlu0 %5683  ;;  %v5769_v4 = vsel %vm1491_vm3, %v13174_v23, 0.0 }
 0xb0d   : > { %11037 = vpow2.f32 %v5733_v35  ;;  %v5712_v21 = vsub.f32 %v13086_v49, %v5684_v8  ;;  %5770 = vadd.xlane.f32.xlu1 %v5769_v4 }
 0xb0e   : > { %11039 = vpow2.f32 %v5743_v57 }
 0xb0f   : > { %v13179_v61 = vpop.eup %11031  ;;  %v5737_v30 = vmul.f32 1.442695, %v5712_v21 }
 0xb10   : > { %v5690_v28 = vpop.xlane.xlu0 %5689  ;;  %v5775_v3 = vsel %vm1491_vm3, %v13179_v61, 0.0 }
 0xb11   : > { %11041 = vpow2.f32 %v5737_v30  ;;  %v5714_v44 = vsub.f32 %v13099_v54, %v5690_v28  ;;  %5776 = vadd.xlane.f32.xlu1 %v5775_v3 }
 0xb13   : > { %v13184_v36 = vpop.eup %11033  ;;  %v5741_v26 = vmul.f32 1.442695, %v5714_v44 }
 0xb14   : > { %v5699_v53 = vpop.xlane.xlu1 %5698  ;;  %v13186_v38 = vpop.eup %11035  ;;  %v5766_v56 = vsel %vm1491_vm3, %v13184_v36, 0.0 }
 0xb15   : > { %v5696_v49 = vpop.xlane.xlu0 %5695  ;;  %v5717_v58 = vsub.f32 %v13111_v17, %v5699_v53  ;;  %11043 = vpow2.f32 %v5741_v26  ;;  %5767 = vadd.xlane.f32.xlu0 %v5766_v56  ;;  %v5781_v54 = vsel %vm1491_vm3, %v13186_v38, 0.0 }
 0xb16   : > { %v5716_v13 = vsub.f32 %v13106_v25, %v5696_v49  ;;  %5782 = vadd.xlane.f32.xlu1 %v5781_v54 }
 0xb17   : > { %v5747_v16 = vmul.f32 1.442695, %v5717_v58  ;;  %v13194_v33 = vpop.eup %11037 }
 0xb18   : > { %v5745_v39 = vmul.f32 1.442695, %v5716_v13  ;;  %v13196_v2 = vpop.eup %11039  ;;  %v5772_v27 = vsel %vm1491_vm3, %v13194_v33, 0.0 }
 0xb19   : > { %11045 = vpow2.f32 %v5747_v16  ;;  %v5702_v62 = vpop.xlane.xlu0 %5701  ;;  %5773 = vadd.xlane.f32.xlu0 %v5772_v27  ;;  %v5787_v25 = vsel %vm1491_vm3, %v13196_v2, 0.0  ;;  %v14051_v16 = vld [vmem:[#allocation42_spill] sm:$0xff]  ;;  %v14061_v27 = vld [vmem:[#allocation39_spill] sm:$0xff] }
 0xb1a   : > { %11047 = vpow2.f32 %v5745_v39  ;;  %v5718_v17 = vsub.f32 %v13116_v41, %v5702_v62  ;;  %5788 = vadd.xlane.f32.xlu1 %v5787_v25  ;;  %v10591_v39 = vunpack.i.h.bf16 %v13126_v14  ;;  %v10590_v62 = vunpack.i.l.bf16 %v13126_v14 }
 0xb1b   : > { %v13203_v45 = vpop.eup %11041 }
 0xb1c   : > { %v5749_v9 = vmul.f32 1.442695, %v5718_v17  ;;  %v5778_v6 = vsel %vm1491_vm3, %v13203_v45, 0.0  ;;  %v10187_v25 = vpack.c.bf16 %v10591_v39, %v10590_v62  ;;  %v14084_v39 = vld [vmem:[#allocation59_spill] sm:$0xff]  ;;  %v14085_v62 = vld [vmem:[#allocation60_spill] sm:$0xff] }
 0xb1d   : > { %5779 = vadd.xlane.f32.xlu0 %v5778_v6  ;;  %v14064_v6 = vld [vmem:[#allocation44_spill] sm:$0xff] }
 0xb1e   : > { %11049 = vpow2.f32 %v5749_v9  ;;  %v14063_v9 = vld [vmem:[#allocation53_spill] sm:$0xff] }
 0xb1f   : > { %v13207_v35 = vpop.eup %11043  ;;  %v14065_v14 = vpack.c.bf16 %v14063_v9, %v14064_v6 }
 0xb20   : > { %v5784_v57 = vsel %vm1491_vm3, %v13207_v35, 0.0 }
 0xb21   : > { %5785 = vadd.xlane.f32.xlu0 %v5784_v57  ;;  %v14066_v57 = vld [vmem:[#allocation29_spill] sm:$0xff] }
 0xb23   : > { %v13211_v41 = vpop.eup %11045 }
 0xb24   : > { %v13213_v8 = vpop.eup %11047  ;;  %v5793_v4 = vsel %vm1491_vm3, %v13211_v41, 0.0 }
 0xb25   : > { %v5790_v21 = vsel %vm1491_vm3, %v13213_v8, 0.0  ;;  %5794 = vadd.xlane.f32.xlu1 %v5793_v4  ;;  %v14067_v4 = vld [vmem:[#allocation35_spill] sm:$0xff] }
 0xb26   : > { %5791 = vadd.xlane.f32.xlu0 %v5790_v21  ;;  %v14068_v21 = vld [vmem:[#allocation52_spill] sm:$0xff] }
 0xb28   : > { %v13219_v30 = vpop.eup %11049 }
 0xb29   : > { %v5796_v28 = vsel %vm1491_vm3, %v13219_v30, 0.0 }
 0xb2a   : > { %5797 = vadd.xlane.f32.xlu0 %v5796_v28 }
 0xb2b   : > { %v9639_v3 = vpop.f32.mrb[30].mxu0 }
 0xb2c   : > { %v3885_v44 = vpop.f32.mrb[31].mxu0 }
 0xb2d   : > { %v4331_v26 = vpack.c.bf16 %v9639_v3, %v3885_v44  ;;  %v14071_v3 = vld [vmem:[#allocation47_spill] sm:$0xff]  ;;  %v14072_v44 = vld [vmem:[#allocation45_spill] sm:$0xff] }
 0xb2f   : > { %v9653_v53 = vpop.f32.mrb[32].mxu0  ;;  %9681 = vmatprep.mubr.msk.bf16.mxu0 %vm486_vm1, %v4331_v26  ;;  %v14073_v26 = vpack.c.bf16 %v14071_v3, %v14072_v44  ;;  %v14090_v44 = vld [vmem:[#allocation36_spill] sm:$0xff] }
 0xb30   : > { %v4059_v49 = vpop.f32.mrb[33].mxu0  ;;  %9682 = vmatmul.mubr.msk.bf16.gmra.mrb[40].mxu0 %vm486_vm1, %v4332_v52  ;;  %v14054_v52 = vld [vmem:[#allocation20_spill] sm:$0xff] }
 0xb31   : > { %v4333_v56 = vpack.c.bf16 %v9653_v53, %v4059_v49  ;;  %v14074_v53 = vld [vmem:[#allocation28_spill] sm:$0xff]  ;;  %v14075_v49 = vld [vmem:[#allocation33_spill] sm:$0xff] }
 0xb33   : > { %v9667_v58 = vpop.f32.mrb[34].mxu0  ;;  %9685 = vmatprep.mubr.msk.bf16.mxu0 %vm486_vm1, %v4333_v56  ;;  %v14076_v56 = vld [vmem:[#allocation49_spill] sm:$0xff] }
 0xb34   : > { %v4233_v13 = vpop.f32.mrb[35].mxu0 }
 0xb35   : > { %v4335_v54 = vpack.c.bf16 %v9667_v58, %v4233_v13  ;;  %v14077_v58 = vld [vmem:[#allocation58_spill] sm:$0xff] }
 0xb36   : > { %10613 = vrot.lane.b32.xlu1 %v14051_v16, %s11246_s19  ;;  %v14078_v13 = vpack.c.bf16 %v14076_v56, %v14077_v58 }
 0xb38   : > { %9686 = vmatmul.mubr.msk.bf16.gmra.mrb[44].mxu0 %vm486_vm1, %v4334_v43  ;;  %v14057_v43 = vpack.c.bf16 %v14055_v12, %v14056_v34  ;;  %v14082_v12 = vld [vmem:[#allocation22_spill] sm:$0xff]  ;;  %v10604_v34 = vpop.permute.xlu1 %10603 }
 0xb39   : > { %9689 = vmatprep.mubr.msk.bf16.mxu0 %vm486_vm1, %v4335_v54  ;;  %v14079_v54 = vld [vmem:[#allocation50_spill] sm:$0xff] }
 0xb3a   : > { %6839 = vrot.lane.b32.xlu1 %v14052_v22, %s11247_s29 }
 0xb3e   : > { %6841 = vrot.lane.b32.xlu1 %v14053_v59, %s11247_s29 }
 0xb40   : > { %6837 = vrot.lane.b32.xlu0 %v14054_v52, %s11247_s29  ;;  %9690 = vmatmul.mubr.msk.bf16.gmra.mrb[48].mxu0 %vm486_vm1, %v4336_v1  ;;  %v14060_v1 = vld [vmem:[#allocation38_spill] sm:$0xff] }
 0xb41   : > { %9695 = vmatprep.mubr.msk.bf16.mxu0 %vm486_vm1, %v14057_v43  ;;  %v14062_v17 = vpack.c.bf16 %v14060_v1, %v14061_v27  ;;  %v14083_v43 = vld [vmem:[#allocation27_spill] sm:$0xff]  ;;  %v14087_v27 = vld [vmem:[#allocation9_spill] sm:$0xff] }
 0xb42   : > { %6677 = vrot.lane.b32.xlu1 %v14052_v22, %s11248_s30  ;;  %v14080_v22 = vld [vmem:[#allocation51_spill] sm:$0xff] }
 0xb44   : > { %6675 = vrot.lane.b32.xlu0 %v14054_v52, %s11248_s30  ;;  %v13305_v52 = vpop.permute.xlu0 %10608 }
 0xb46   : > { %6845 = vrot.lane.b32.xlu1 %v14058_v51, %s11247_s29 }
 0xb48   : > { %6843 = vrot.lane.b32.xlu0 %v14059_v24, %s11247_s29  ;;  %9696 = vmatmul.mubr.msk.bf16.vlgmr.msra.gmra.mrb[36].mxu0 %vm486_vm1, %v14062_v17  ;;  %v14088_v17 = vld [vmem:[#allocation32_spill] sm:$0xff] }
 0xb49   : > { %10182 = vmatpush3.bf16.msra.mxu0 %v13161_v60  ;;  %9699 = vmatprep.mubr.msk.bf16.mxu0 %vm486_vm1, %v14065_v14  ;;  %v14069_v60 = vld [vmem:[#allocation48_spill] sm:$0xff] }
 0xb4a   : > { %10188 = vmatprep.subr.bf16.mxu0 %v10187_v25  ;;  %6681 = vrot.lane.b32.xlu1 %v14059_v24, %s11248_s30  ;;  %v14070_v28 = vpack.c.bf16 %v14068_v21, %v14069_v60  ;;  %v14089_v60 = vld [vmem:[#allocation34_spill] sm:$0xff] }
 0xb4c   : > { %6679 = vrot.lane.b32.xlu0 %v14053_v59, %s11248_s30  ;;  %v14081_v59 = vpack.c.bf16 %v14079_v54, %v14080_v22 }
 0xb4e   : > { %6849 = vrot.lane.b32.xlu1 %v14066_v57, %s11247_s29 }
 0xb50   : > { %6847 = vrot.lane.b32.xlu0 %v14067_v4, %s11247_s29  ;;  %9700 = vmatmul.mubr.msk.bf16.gmra.mrb[40].mxu0 %vm486_vm1, %v14070_v28 }
 0xb51   : > { %9703 = vmatprep.mubr.msk.bf16.mxu0 %vm486_vm1, %v14073_v26 }
 0xb52   : > { %6685 = vrot.lane.b32.xlu1 %v14067_v4, %s11248_s30  ;;  %v10600_v4 = vunpack.i.l.bf16 %v13151_v50 }
 0xb54   : > { %6683 = vrot.lane.b32.xlu0 %v14058_v51, %s11248_s30  ;;  %v14086_v51 = vpack.c.bf16 %v14084_v39, %v14085_v62 }
 0xb56   : > { %6853 = vrot.lane.b32.xlu1 %v14074_v53, %s11247_s29 }
 0xb58   : > { %6851 = vrot.lane.b32.xlu0 %v14075_v49, %s11247_s29  ;;  %9704 = vmatmul.mubr.msk.bf16.gmra.mrb[44].mxu0 %vm486_vm1, %v14078_v13 }
 0xb59   : > { %9707 = vmatprep.mubr.msk.bf16.mxu0 %vm486_vm1, %v14081_v59 }
 0xb5a   : > { %6689 = vrot.lane.b32.xlu1 %v14075_v49, %s11248_s30  ;;  %v10605_v49 = vunpack.i.l.bf16 %v10604_v34 }
 0xb5c   : > { %6687 = vrot.lane.b32.xlu0 %v14066_v57, %s11248_s30  ;;  %v10601_v57 = vunpack.i.h.bf16 %v13151_v50  ;;  %v14091_v50 = vld [vmem:[#allocation30_spill] sm:$0xff] }
 0xb5e   : > { %6859 = vrot.lane.b32.xlu1 %v14082_v12, %s11247_s29  ;;  %v10195_v26 = vpack.c.bf16 %v10601_v57, %v10600_v4 }
 0xb60   : > { %6855 = vrot.lane.b32.xlu0 %v14083_v43, %s11247_s29  ;;  %9708 = vmatmul.mubr.msk.bf16.gmra.mrb[48].mxu0 %vm486_vm1, %v14086_v51 }
 0xb61   : > { %v5756_v24 = vpop.xlane.xlu0 %5755 }
 0xb62   : > { %6693 = vrot.lane.b32.xlu1 %v14083_v43, %s11248_s30  ;;  %11051 = vrcp.f32 %v5756_v24  ;;  %v5753_v1 = vpop.xlane.xlu1 %5752  ;;  %v10611_v24 = vunpack.i.h.bf16 %v13305_v52 }
 0xb63   : > { %11053 = vrcp.f32 %v5753_v1 }
 0xb64   : > { %6857 = vrot.lane.b32.xlu0 %v14087_v27, %s11247_s29 }
 0xb66   : > { %6861 = vrot.lane.b32.xlu1 %v14088_v17, %s11247_s29 }
 0xb68   : > { %6691 = vrot.lane.b32.xlu0 %v14074_v53, %s11248_s30  ;;  %v10606_v53 = vunpack.i.h.bf16 %v10604_v34 }
 0xb69   : > { %v5762_v9 = vpop.xlane.xlu0 %5761 }
 0xb6a   : > { %6697 = vrot.lane.b32.xlu1 %v14082_v12, %s11248_s30  ;;  %11055 = vrcp.f32 %v5762_v9 }
 0xb6c   : > { %6695 = vrot.lane.b32.xlu0 %v14087_v27, %s11248_s30  ;;  %v11052_v6 = vpop.eup %11051 }
 0xb6d   : > { %v11054_v14 = vpop.eup %11053  ;;  %v5759_v21 = vpop.xlane.xlu1 %5758  ;;  %v5816_v3 = vmul.f32 %v11052_v6, %v13132_v10 }
 0xb6e   : > { %6867 = vrot.lane.b32.xlu1 %v14089_v60, %s11247_s29  ;;  %11057 = vrcp.f32 %v5759_v21  ;;  %v5815_v28 = vmul.f32 %v11054_v14, %v13134_v31 }
 0xb70   : > { %6863 = vrot.lane.b32.xlu0 %v14090_v44, %s11247_s29  ;;  %9771 = vmatprep.mubr.msk.f32.mxu0 %vm1491_vm3, %v5815_v28 }
 0xb71   : > { %9772 = vmatmul.mubr.msk.f32.vlgmr.msra.gmra.mrb[52].mxu0 %vm1491_vm3, %v5816_v3 }
 0xb72   : > { %6701 = vrot.lane.b32.xlu1 %v14090_v44, %s11248_s30  ;;  %10190 = vmatpush3.bf16.msra.mxu0 %v10187_v25  ;;  %v10199_v25 = vpack.c.bf16 %v10606_v53, %v10605_v49 }
 0xb73   : > { %10196 = vmatprep.subr.bf16.mxu0 %v10195_v26 }
 0xb74   : > { %6865 = vrot.lane.b32.xlu0 %v14091_v50, %s11247_s29  ;;  %v11056_v10 = vpop.eup %11055 }
 0xb75   : > { %v5818_v58 = vmul.f32 %v11056_v10, %v13143_v40 }
 0xb76   : > { %6705 = vrot.lane.b32.xlu1 %v14089_v60, %s11248_s30 }
 0xb78   : > { %6699 = vrot.lane.b32.xlu0 %v14088_v17, %s11248_s30  ;;  %v11058_v31 = vpop.eup %11057 }
 0xb79   : > { %v5817_v56 = vmul.f32 %v11058_v31, %v13147_v29 }
 0xb7b   : > { %9778 = vmatprep.mubr.msk.f32.mxu1 %vm1491_vm3, %v5817_v56 }
 0xb7c   : > { %6703 = vrot.lane.b32.xlu0 %v14091_v50, %s11248_s30  ;;  %9779 = vmatmul.mubr.msk.f32.vlgmr.msra.gmra.mrb[60].mxu1 %vm1491_vm3, %v5818_v58 }
 0xb7d   : > { %10194 = vmatpush3.bf16.msra.mxu1 %v13140_v46 }
 0xb7e   : > { %10200 = vmatprep.subr.bf16.mxu1 %v10199_v25 }
 0xb96   : > { %v5765_v13 = vpop.xlane.xlu1 %5764 }
 0xb97   : > { %11059 = vrcp.f32 %v5765_v13 }
 0xb9a   : > { %v5771_v54 = vpop.xlane.xlu1 %5770 }
 0xb9b   : > { %11061 = vrcp.f32 %v5771_v54 }
 0xb9e   : > { %v5777_v22 = vpop.xlane.xlu1 %5776 }
 0xb9f   : > { %11063 = vrcp.f32 %v5777_v22 }
 0xba1   : > { %v11060_v59 = vpop.eup %11059 }
 0xba2   : > { %v5768_v29 = vpop.xlane.xlu0 %5767  ;;  %v5819_v40 = vmul.f32 %v11060_v59, %v13168_v37  ;;  %v10610_v37 = vunpack.i.l.bf16 %v13305_v52 }
 0xba3   : > { %11065 = vrcp.f32 %v5768_v29  ;;  %v5783_v12 = vpop.xlane.xlu1 %5782 }
 0xba4   : > { %9785 = vmatprep.mubr.msk.f32.mxu0 %vm1491_vm3, %v5819_v40  ;;  %11067 = vrcp.f32 %v5783_v12  ;;  %v10203_v6 = vpack.c.bf16 %v10611_v24, %v10610_v37 }
 0xba5   : > { %v11062_v34 = vpop.eup %11061 }
 0xba6   : > { %v5774_v43 = vpop.xlane.xlu0 %5773  ;;  %v5821_v46 = vmul.f32 %v11062_v34, %v13174_v23 }
 0xba7   : > { %11069 = vrcp.f32 %v5774_v43  ;;  %v5789_v39 = vpop.xlane.xlu1 %5788 }
 0xba8   : > { %9792 = vmatprep.mubr.msk.f32.mxu1 %vm1491_vm3, %v5821_v46  ;;  %11071 = vrcp.f32 %v5789_v39 }
 0xba9   : > { %v11064_v51 = vpop.eup %11063 }
 0xbaa   : > { %v5780_v62 = vpop.xlane.xlu0 %5779  ;;  %v5823_v9 = vmul.f32 %v11064_v51, %v13179_v61 }
 0xbab   : > { %11073 = vrcp.f32 %v5780_v62 }
 0xbad   : > { %v11066_v1 = vpop.eup %11065 }
 0xbae   : > { %v5786_v27 = vpop.xlane.xlu0 %5785  ;;  %v5820_v17 = vmul.f32 %v11066_v1, %v13184_v36  ;;  %v11068_v23 = vpop.eup %11067 }
 0xbaf   : > { %11075 = vrcp.f32 %v5786_v27  ;;  %v5825_v36 = vmul.f32 %v11068_v23, %v13186_v38 }
 0xbb0   : > { %9786 = vmatmul.mubr.msk.f32.vlgmr.msra.gmra.mrb[54].mxu0 %vm1491_vm3, %v5820_v17  ;;  %v468_v17 = vld [vmem:[%s13796_s5 + $0x8] sm:$0xf] }
 0xbb1   : > { %v11070_v14 = vpop.eup %11069  ;;  %10198 = vmatpush3.bf16.msra.mxu0 %v10195_v26  ;;  %9799 = vmatprep.mubr.msk.f32.mxu0 %vm1491_vm3, %v5823_v9  ;;  %v6560_v23 = vsel %vm4361_vm4, %v468_v17, 0 }
 0xbb2   : > { %v5795_v57 = vpop.xlane.xlu1 %5794  ;;  %10204 = vmatprep.subr.bf16.mxu0 %v10203_v6  ;;  %v5822_v52 = vmul.f32 %v11070_v14, %v13194_v33  ;;  %v11072_v21 = vpop.eup %11071 }
 0xbb3   : > { %v5792_v4 = vpop.xlane.xlu0 %5791  ;;  %11077 = vrcp.f32 %v5795_v57  ;;  %v5827_v50 = vmul.f32 %v11072_v21, %v13196_v2 }
 0xbb4   : > { %11079 = vrcp.f32 %v5792_v4  ;;  %9793 = vmatmul.mubr.msk.f32.vlgmr.msra.gmra.mrb[62].mxu1 %vm1491_vm3, %v5822_v52 }
 0xbb5   : > { %v11074_v61 = vpop.eup %11073  ;;  %10202 = vmatpush3.bf16.msra.mxu1 %v10199_v25  ;;  %9806 = vmatprep.mubr.msk.f32.mxu1 %vm1491_vm3, %v5825_v36 }
 0xbb6   : > { %v10614_v60 = vpop.permute.xlu1 %10613  ;;  %v5824_v26 = vmul.f32 %v11074_v61, %v13203_v45 }
 0xbb7   : > { %v5798_v28 = vpop.xlane.xlu0 %5797  ;;  %v10616_v3 = vunpack.i.h.bf16 %v10614_v60  ;;  %v10615_v44 = vunpack.i.l.bf16 %v10614_v60 }
 0xbb8   : > { %11081 = vrcp.f32 %v5798_v28  ;;  %9800 = vmatmul.mubr.msk.f32.vlgmr.msra.gmra.mrb[56].mxu0 %vm1491_vm3, %v5824_v26 }
 0xbb9   : > { %v10207_v33 = vpack.c.bf16 %v10616_v3, %v10615_v44  ;;  %v11076_v38 = vpop.eup %11075  ;;  %10206 = vmatpush3.bf16.msra.mxu0 %v10203_v6  ;;  %9813 = vmatprep.mubr.msk.f32.mxu0 %vm1491_vm3, %v5827_v50 }
 0xbba   : > { %v6840_v10 = vpop.permute.xlu1 %6839  ;;  %v5826_v53 = vmul.f32 %v11076_v38, %v13207_v35  ;;  %10345 = vmatprep.subr.msk.bf16.mxu0 %vm4361_vm4, %v468_v17 }
 0xbbb   : > { %v6838_v31 = vpop.permute.xlu0 %6837  ;;  %10208 = vmatprep.subr.bf16.mxu1 %v10207_v33  ;;  %v6888_v49 = vsel %vm486_vm1, %v6840_v10, 0.0 }
 0xbbc   : > { %v6885_v56 = vsel %vm486_vm1, %v6838_v31, 0.0  ;;  %6889 = vadd.xlane.f32.xlu1 %v6888_v49  ;;  %9807 = vmatmul.mubr.msk.f32.vlgmr.msra.gmra.mrb[64].mxu1 %vm1491_vm3, %v5826_v53 }
 0xbbd   : > { %v11078_v45 = vpop.eup %11077  ;;  %6886 = vadd.xlane.f32.xlu0 %v6885_v56  ;;  %10210 = vmatpush3.bf16.msra.mxu1 %v10207_v33 }
 0xbbe   : > { %v11080_v2 = vpop.eup %11079  ;;  %v6842_v58 = vpop.permute.xlu1 %6841  ;;  %v5829_v25 = vmul.f32 %v11078_v45, %v13211_v41 }
 0xbbf   : > { %v6676_v13 = vpop.permute.xlu0 %6675  ;;  %v5828_v54 = vmul.f32 %v11080_v2, %v13213_v8  ;;  %v6891_v34 = vsel %vm486_vm1, %v6842_v58, 0.0 }
 0xbc0   : > { %v6723_v35 = vsel %vm486_vm1, %v6676_v13, 0.0  ;;  %9820 = vmatprep.mubr.msk.f32.mxu1 %vm1491_vm3, %v5829_v25 }
 0xbc1   : > { %6724 = vadd.xlane.f32.xlu0 %v6723_v35  ;;  %9814 = vmatmul.mubr.msk.f32.vlgmr.msra.gmra.mrb[58].mxu0 %vm1491_vm3, %v5828_v54 }
 0xbc2   : > { %v11082_v22 = vpop.eup %11081  ;;  %v6678_v59 = vpop.permute.xlu1 %6677  ;;  %9824 = vmatpush3.bf16.msra.mxu0 %v6560_v23 }
 0xbc3   : > { %v6844_v29 = vpop.permute.xlu0 %6843  ;;  %v5830_v40 = vmul.f32 %v11082_v22, %v13219_v30  ;;  %v6726_v46 = vsel %vm486_vm1, %v6678_v59, 0.0 }
 0xbc4   : > { %v6894_v12 = vsel %vm486_vm1, %v6844_v29, 0.0 }
 0xbc5   : > { %6895 = vadd.xlane.f32.xlu1 %v6894_v12  ;;  %6892 = vadd.xlane.f32.xlu0 %v6891_v34 }
 0xbc6   : > { %9821 = vmatmul.mubr.msk.f32.vlgmr.msra.gmra.mrb[66].mxu1 %vm1491_vm3, %v5830_v40  ;;  %v6846_v41 = vpop.permute.xlu1 %6845 }
 0xbc7   : > { %v6680_v8 = vpop.permute.xlu0 %6679  ;;  %v6897_v51 = vsel %vm486_vm1, %v6846_v41, 0.0 }
 0xbc8   : > { %v6729_v43 = vsel %vm486_vm1, %v6680_v8, 0.0 }
 0xbc9   : > { %6730 = vadd.xlane.f32.xlu1 %v6729_v43  ;;  %6727 = vadd.xlane.f32.xlu0 %v6726_v46 }
 0xbca   : > { %v6682_v39 = vpop.permute.xlu1 %6681 }
 0xbcb   : > { %v6848_v62 = vpop.permute.xlu0 %6847  ;;  %v6732_v27 = vsel %vm486_vm1, %v6682_v39, 0.0 }
 0xbcc   : > { %v6900_v30 = vsel %vm486_vm1, %v6848_v62, 0.0 }
 0xbcd   : > { %6901 = vadd.xlane.f32.xlu1 %v6900_v30  ;;  %6898 = vadd.xlane.f32.xlu0 %v6897_v51 }
 0xbce   : > { %v6850_v24 = vpop.permute.xlu1 %6849 }
 0xbcf   : > { %v6684_v37 = vpop.permute.xlu0 %6683  ;;  %v6903_v57 = vsel %vm486_vm1, %v6850_v24, 0.0 }
 0xbd0   : > { %v6735_v1 = vsel %vm486_vm1, %v6684_v37, 0.0 }
 0xbd1   : > { %6736 = vadd.xlane.f32.xlu1 %v6735_v1  ;;  %6733 = vadd.xlane.f32.xlu0 %v6732_v27 }
 0xbd2   : > { %v6686_v9 = vpop.permute.xlu1 %6685 }
 0xbd3   : > { %v6852_v6 = vpop.permute.xlu0 %6851  ;;  %v6738_v21 = vsel %vm486_vm1, %v6686_v9, 0.0 }
 0xbd4   : > { %v6906_v14 = vsel %vm486_vm1, %v6852_v6, 0.0 }
 0xbd5   : > { %6907 = vadd.xlane.f32.xlu1 %v6906_v14  ;;  %6904 = vadd.xlane.f32.xlu0 %v6903_v57 }
 0xbd6   : > { %v6854_v4 = vpop.permute.xlu1 %6853 }
 0xbd7   : > { %v6688_v52 = vpop.permute.xlu0 %6687  ;;  %v6909_v3 = vsel %vm486_vm1, %v6854_v4, 0.0 }
 0xbd8   : > { %v6741_v36 = vsel %vm486_vm1, %v6688_v52, 0.0 }
 0xbd9   : > { %6742 = vadd.xlane.f32.xlu1 %v6741_v36  ;;  %6739 = vadd.xlane.f32.xlu0 %v6738_v21 }
 0xbda   : > { %v6690_v61 = vpop.permute.xlu1 %6689 }
 0xbdb   : > { %v6856_v60 = vpop.permute.xlu0 %6855  ;;  %v6744_v33 = vsel %vm486_vm1, %v6690_v61, 0.0 }
 0xbdc   : > { %v6912_v28 = vsel %vm486_vm1, %v6856_v60, 0.0 }
 0xbdd   : > { %6913 = vadd.xlane.f32.xlu1 %v6912_v28  ;;  %6910 = vadd.xlane.f32.xlu0 %v6909_v3 }
 0xbde   : > { %v6860_v44 = vpop.permute.xlu1 %6859 }
 0xbdf   : > { %v6858_v26 = vpop.permute.xlu0 %6857  ;;  %v6918_v53 = vsel %vm486_vm1, %v6860_v44, 0.0 }
 0xbe0   : > { %v6915_v50 = vsel %vm486_vm1, %v6858_v26, 0.0 }
 0xbe1   : > { %6916 = vadd.xlane.f32.xlu1 %v6915_v50  ;;  %6745 = vadd.xlane.f32.xlu0 %v6744_v33  ;;  %v14092_v50 = vld [vmem:[#allocation21_spill] sm:$0xff] }
 0xbe2   : > { %v6694_v38 = vpop.permute.xlu1 %6693 }
 0xbe3   : > { %v6692_v10 = vpop.permute.xlu0 %6691  ;;  %v6750_v2 = vsel %vm486_vm1, %v6694_v38, 0.0  ;;  %v14093_v38 = vld [vmem:[#allocation15_spill] sm:$0xff] }
 0xbe4   : > { %v6747_v31 = vsel %vm486_vm1, %v6692_v10, 0.0 }
 0xbe5   : > { %6748 = vadd.xlane.f32.xlu1 %v6747_v31  ;;  %6919 = vadd.xlane.f32.xlu0 %v6918_v53  ;;  %v13419_v31 = vstv %s9067_s10 }
 0xbe6   : > { %v6862_v49 = vpop.permute.xlu1 %6861 }
 0xbe7   : > { %v6696_v56 = vpop.permute.xlu0 %6695  ;;  %v6921_v54 = vsel %vm486_vm1, %v6862_v49, 0.0 }
 0xbe8   : > { %v6753_v45 = vsel %vm486_vm1, %v6696_v56, 0.0 }
 0xbe9   : > { %6754 = vadd.xlane.f32.xlu1 %v6753_v45  ;;  %6751 = vadd.xlane.f32.xlu0 %v6750_v2 }
 0xbea   : > { %v6698_v58 = vpop.permute.xlu1 %6697 }
 0xbeb   : > { %v6864_v25 = vpop.permute.xlu0 %6863  ;;  %v6756_v29 = vsel %vm486_vm1, %v6698_v58, 0.0 }
 0xbec   : > { %v6924_v13 = vsel %vm486_vm1, %v6864_v25, 0.0 }
 0xbed   : > { %6925 = vadd.xlane.f32.xlu1 %v6924_v13  ;;  %6922 = vadd.xlane.f32.xlu0 %v6921_v54 }
 0xbee   : > { %v6868_v35 = vpop.permute.xlu1 %6867 }
 0xbef   : > { %v6866_v22 = vpop.permute.xlu0 %6865  ;;  %v6930_v41 = vsel %vm486_vm1, %v6868_v35, 0.0 }
 0xbf0   : > { %v6927_v59 = vsel %vm486_vm1, %v6866_v22, 0.0 }
 0xbf1   : > { %6928 = vadd.xlane.f32.xlu1 %v6927_v59  ;;  %6757 = vadd.xlane.f32.xlu0 %v6756_v29 }
 0xbf2   : > { %v6702_v12 = vpop.permute.xlu1 %6701 }
 0xbf3   : > { %v6700_v40 = vpop.permute.xlu0 %6699  ;;  %v6762_v46 = vsel %vm486_vm1, %v6702_v12, 0.0  ;;  %v14094_v12 = vld [vmem:[#allocation5_spill] sm:$0xff] }
 0xbf4   : > { %v6759_v34 = vsel %vm486_vm1, %v6700_v40, 0.0 }
 0xbf5   : > { %6760 = vadd.xlane.f32.xlu1 %v6759_v34  ;;  %6931 = vadd.xlane.f32.xlu0 %v6930_v41  ;;  %v14095_v41 = vld [vmem:[#allocation24_spill] sm:$0xff] }
 0xbf6   : > { %v6706_v39 = vpop.permute.xlu1 %6705 }
 0xbf7   : > { %v6704_v8 = vpop.permute.xlu0 %6703  ;;  %v6768_v62 = vsel %vm486_vm1, %v6706_v39, 0.0 }
 0xbf8   : > { %v6765_v43 = vsel %vm486_vm1, %v6704_v8, 0.0 }
 0xbf9   : > { %6766 = vadd.xlane.f32.xlu1 %v6765_v43  ;;  %6763 = vadd.xlane.f32.xlu0 %v6762_v46 }
 0xbfd   : > { %6769 = vadd.xlane.f32.xlu0 %v6768_v62 }
 0xc44   : > { %v9773_v30 = vpop.f32.mrb[52].mxu0 }
 0xc45   : > { %v5909_v51 = vpop.f32.mrb[53].mxu0 }
 0xc46   : > { %v6527_v24 = vpack.c.bf16 %v9773_v30, %v5909_v51 }
 0xc48   : > { %9825 = vmatprep.mubr.msk.bf16.mxu0 %vm486_vm1, %v6527_v24 }
 0xc49   : > { %v6890_v37 = vpop.xlane.xlu1 %6889 }
 0xc4a   : > { %v6887_v1 = vpop.xlane.xlu0 %6886  ;;  %v6934_v27 = vadd.f32 1e-24, %v6890_v37 }
 0xc4b   : > { %v6933_v17 = vadd.f32 1e-24, %v6887_v1 }
 0xc4c   : > { %11083 = vrsqrt.f32 %v6934_v27 }
 0xc4d   : > { %11085 = vrsqrt.f32 %v6933_v17 }
 0xc4e   : > { %v6725_v9 = vpop.xlane.xlu0 %6724 }
 0xc4f   : > { %v6771_v23 = vadd.f32 1e-24, %v6725_v9  ;;  %v9780_v6 = vpop.f32.mrb[60].mxu1 }
 0xc50   : > { %v5996_v14 = vpop.f32.mrb[61].mxu1 }
 0xc51   : > { %11087 = vrsqrt.f32 %v6771_v23  ;;  %v6528_v57 = vpack.c.bf16 %v9780_v6, %v5996_v14 }
 0xc52   : > { %v6893_v4 = vpop.xlane.xlu0 %6892  ;;  %v6896_v52 = vpop.xlane.xlu1 %6895 }
 0xc53   : > { %v6935_v36 = vadd.f32 1e-24, %v6893_v4  ;;  %v6936_v21 = vadd.f32 1e-24, %v6896_v52  ;;  %9826 = vmatmul.mubr.msk.bf16.vlgmr.msra.gmra.mrb[36].mxu0 %vm486_vm1, %v6528_v57  ;;  %v14096_v4 = vld [vmem:[#allocation11_spill] sm:$0xff] }
 0xc55   : > { %11089 = vrsqrt.f32 %v6935_v36  ;;  %v14097_v36 = vld [vmem:[#allocation16_spill] sm:$0xff] }
 0xc56   : > { %v11084_v61 = vpop.eup %11083  ;;  %11091 = vrsqrt.f32 %v6936_v21  ;;  %v6728_v60 = vpop.xlane.xlu0 %6727 }
 0xc57   : > { %v6731_v28 = vpop.xlane.xlu1 %6730  ;;  %v11086_v3 = vpop.eup %11085  ;;  %v6772_v44 = vadd.f32 1e-24, %v6728_v60  ;;  %v6966_v33 = vmul.f32 %v11084_v61, %v14092_v50 }
 0xc58   : > { %v6773_v26 = vadd.f32 1e-24, %v6731_v28  ;;  %v6965_v10 = vmul.f32 %v11086_v3, %v14093_v38 }
 0xc59   : > { %11093 = vrsqrt.f32 %v6772_v44 }
 0xc5a   : > { %11095 = vrsqrt.f32 %v6773_v26  ;;  %v6899_v53 = vpop.xlane.xlu0 %6898  ;;  %v10617_v56 = vpack.i.bf16 %v6966_v33, %v6965_v10 }
 0xc5b   : > { %v6902_v49 = vpop.xlane.xlu1 %6901  ;;  %v11088_v45 = vpop.eup %11087  ;;  %v6937_v2 = vadd.f32 1e-24, %v6899_v53 }
 0xc5c   : > { %v6938_v58 = vadd.f32 1e-24, %v6902_v49  ;;  %10618 = vrot.lane.b32.xlu1 %v10617_v56, %s11247_s29  ;;  %v6805_v25 = vmul.f32 %v11088_v45, %v13419_v31 }
 0xc5d   : > { %11097 = vrsqrt.f32 %v6937_v2 }
 0xc5e   : > { %11099 = vrsqrt.f32 %v6938_v58  ;;  %v6734_v13 = vpop.xlane.xlu0 %6733  ;;  %v6821_v35 = vmul.f32 %v6805_v25, %v14093_v38 }
 0xc5f   : > { %v6737_v54 = vpop.xlane.xlu1 %6736  ;;  %v11090_v22 = vpop.eup %11089  ;;  %v6774_v59 = vadd.f32 1e-24, %v6734_v13  ;;  %v14098_v13 = vld [vmem:[#allocation10_spill] sm:$0xff] }
 0xc60   : > { %v6775_v29 = vadd.f32 1e-24, %v6737_v54  ;;  %v11092_v40 = vpop.eup %11091  ;;  %6986 = vrot.lane.b32.xlu1 %v6821_v35, %s11248_s30  ;;  %v6967_v34 = vmul.f32 %v11090_v22, %v14094_v12  ;;  %v14099_v35 = vld [vmem:[#allocation13_spill] sm:$0xff] }
 0xc61   : > { %11101 = vrsqrt.f32 %v6774_v59  ;;  %v6968_v8 = vmul.f32 %v11092_v40, %v14095_v41 }
 0xc62   : > { %11103 = vrsqrt.f32 %v6775_v29  ;;  %v6905_v43 = vpop.xlane.xlu0 %6904 }
 0xc63   : > { %v6908_v46 = vpop.xlane.xlu1 %6907  ;;  %v11094_v39 = vpop.eup %11093  ;;  %v6939_v62 = vadd.f32 1e-24, %v6905_v43  ;;  %v10622_v51 = vpack.i.bf16 %v6968_v8, %v6967_v34 }
 0xc64   : > { %v6940_v30 = vadd.f32 1e-24, %v6908_v46  ;;  %v11096_v24 = vpop.eup %11095  ;;  %v6806_v37 = vmul.f32 %v11094_v39, %v13419_v31 }
 0xc65   : > { %11105 = vrsqrt.f32 %v6939_v62  ;;  %10623 = vrot.lane.b32.xlu0 %v10622_v51, %s11247_s29  ;;  %v6807_v9 = vmul.f32 %v11096_v24, %v13419_v31 }
 0xc66   : > { %11107 = vrsqrt.f32 %v6940_v30  ;;  %v6740_v1 = vpop.xlane.xlu0 %6739  ;;  %v6822_v17 = vmul.f32 %v6806_v37, %v14092_v50 }
 0xc67   : > { %v6743_v27 = vpop.xlane.xlu1 %6742  ;;  %v11098_v23 = vpop.eup %11097  ;;  %v6776_v6 = vadd.f32 1e-24, %v6740_v1  ;;  %v6823_v28 = vmul.f32 %v6807_v9, %v14094_v12  ;;  %v14100_v1 = vld [vmem:[#allocation7_spill] sm:$0xff] }
 0xc68   : > { %v11100_v14 = vpop.eup %11099  ;;  %v6777_v57 = vadd.f32 1e-24, %v6743_v27  ;;  %6988 = vrot.lane.b32.xlu1 %v6822_v17, %s11248_s30  ;;  %v6969_v52 = vmul.f32 %v11098_v23, %v14096_v4  ;;  %v14101_v17 = vld [vmem:[#allocation26_spill] sm:$0xff] }
 0xc69   : > { %11109 = vrsqrt.f32 %v6776_v6  ;;  %v6970_v21 = vmul.f32 %v11100_v14, %v14097_v36 }
 0xc6a   : > { %v6911_v61 = vpop.xlane.xlu0 %6910  ;;  %11111 = vrsqrt.f32 %v6777_v57 }
 0xc6b   : > { %v6914_v60 = vpop.xlane.xlu1 %6913  ;;  %v11102_v3 = vpop.eup %11101  ;;  %v6941_v44 = vadd.f32 1e-24, %v6911_v61  ;;  %v10627_v50 = vpack.i.bf16 %v6970_v21, %v6969_v52 }
 0xc6c   : > { %v6942_v26 = vadd.f32 1e-24, %v6914_v60  ;;  %v11104_v33 = vpop.eup %11103  ;;  %7081 = vrot.lane.b32.xlu1 %v6823_v28, %s11248_s30  ;;  %v6808_v38 = vmul.f32 %v11102_v3, %v13419_v31 }
 0xc6d   : > { %11113 = vrsqrt.f32 %v6941_v44  ;;  %10628 = vrot.lane.b32.xlu0 %v10627_v50, %s11247_s29  ;;  %v6809_v2 = vmul.f32 %v11104_v33, %v13419_v31 }
 0xc6e   : > { %11115 = vrsqrt.f32 %v6942_v26  ;;  %v6746_v10 = vpop.xlane.xlu0 %6745  ;;  %v6824_v49 = vmul.f32 %v6808_v38, %v14095_v41 }
 0xc6f   : > { %v6917_v53 = vpop.xlane.xlu1 %6916  ;;  %v11106_v56 = vpop.eup %11105  ;;  %v6778_v25 = vadd.f32 1e-24, %v6746_v10  ;;  %v6825_v34 = vmul.f32 %v6809_v2, %v14096_v4 }
 0xc70   : > { %v6943_v45 = vadd.f32 1e-24, %v6917_v53  ;;  %v11108_v58 = vpop.eup %11107  ;;  %v6971_v54 = vmul.f32 %v11106_v56, %v14098_v13 }
 0xc71   : > { %7083 = vrot.lane.b32.xlu0 %v6824_v49, %s11248_s30  ;;  %v6972_v22 = vmul.f32 %v11108_v58, %v14099_v35 }
 0xc72   : > { %v6920_v59 = vpop.xlane.xlu0 %6919  ;;  %11117 = vrsqrt.f32 %v6943_v45 }
 0xc73   : > { %v6749_v29 = vpop.xlane.xlu1 %6748  ;;  %v11110_v40 = vpop.eup %11109  ;;  %v6944_v12 = vadd.f32 1e-24, %v6920_v59  ;;  %v10632_v41 = vpack.i.bf16 %v6972_v22, %v6971_v54  ;;  %11119 = vrsqrt.f32 %v6778_v25 }
 0xc74   : > { %v6810_v8 = vmul.f32 %v11110_v40, %v13419_v31  ;;  %v6779_v43 = vadd.f32 1e-24, %v6749_v29  ;;  %v11112_v46 = vpop.eup %11111 }
 0xc75   : > { %11121 = vrsqrt.f32 %v6944_v12  ;;  %7176 = vrot.lane.b32.xlu0 %v6825_v34, %s11248_s30  ;;  %10633 = vrot.lane.b32.xlu1 %v10632_v41, %s11247_s29  ;;  %v6811_v52 = vmul.f32 %v11112_v46, %v13419_v31 }
 0xc76   : > { %v6752_v39 = vpop.xlane.xlu0 %6751  ;;  %v6826_v30 = vmul.f32 %v6810_v8, %v14097_v36  ;;  %11123 = vrsqrt.f32 %v6779_v43 }
 0xc77   : > { %v6755_v62 = vpop.xlane.xlu1 %6754  ;;  %v11114_v51 = vpop.eup %11113  ;;  %v6780_v37 = vadd.f32 1e-24, %v6752_v39  ;;  %v6827_v26 = vmul.f32 %v6811_v52, %v14098_v13 }
 0xc78   : > { %v11116_v24 = vpop.eup %11115  ;;  %v6973_v27 = vmul.f32 %v11114_v51, %v14100_v1  ;;  %v6781_v50 = vadd.f32 1e-24, %v6755_v62 }
 0xc79   : > { %7178 = vrot.lane.b32.xlu1 %v6826_v30, %s11248_s30  ;;  %v6974_v9 = vmul.f32 %v11116_v24, %v14101_v17  ;;  %11125 = vrsqrt.f32 %v6780_v37 }
 0xc7a   : > { %v6923_v23 = vpop.xlane.xlu0 %6922 }
 0xc7b   : > { %v6926_v6 = vpop.xlane.xlu1 %6925  ;;  %v6945_v14 = vadd.f32 1e-24, %v6923_v23  ;;  %v10637_v4 = vpack.i.bf16 %v6974_v9, %v6973_v27 }
 0xc7c   : > { %v6946_v57 = vadd.f32 1e-24, %v6926_v6  ;;  %v11118_v21 = vpop.eup %11117 }
 0xc7d   : > { %11127 = vrsqrt.f32 %v6945_v14  ;;  %10638 = vrot.lane.b32.xlu0 %v10637_v4, %s11247_s29  ;;  %v11120_v36 = vpop.eup %11119  ;;  %v6975_v33 = vmul.f32 %v11118_v21, %v14039_v48 }
 0xc7e   : > { %11129 = vrsqrt.f32 %v6946_v57  ;;  %v6758_v61 = vpop.xlane.xlu0 %6757  ;;  %v6812_v56 = vmul.f32 %v11120_v36, %v13419_v31 }
 0xc7f   : > { %v6929_v60 = vpop.xlane.xlu1 %6928  ;;  %v11122_v28 = vpop.eup %11121  ;;  %v6782_v3 = vadd.f32 1e-24, %v6758_v61 }
 0xc80   : > { %v6947_v44 = vadd.f32 1e-24, %v6929_v60  ;;  %v6976_v38 = vmul.f32 %v11122_v28, %v14038_v42  ;;  %v11124_v45 = vpop.eup %11123  ;;  %v6828_v40 = vmul.f32 %v6812_v56, %v14099_v35 }
 0xc81   : > { %11131 = vrsqrt.f32 %v6782_v3  ;;  %7271 = vrot.lane.b32.xlu0 %v6827_v26, %s11248_s30  ;;  %v6813_v12 = vmul.f32 %v11124_v45, %v13419_v31 }
 0xc82   : > { %v6932_v10 = vpop.xlane.xlu0 %6931  ;;  %v10642_v49 = vpack.i.bf16 %v6976_v38, %v6975_v33  ;;  %11133 = vrsqrt.f32 %v6947_v44 }
 0xc83   : > { %v6761_v53 = vpop.xlane.xlu1 %6760  ;;  %v6948_v2 = vadd.f32 1e-24, %v6932_v10  ;;  %11135 = vrsqrt.f32 %v6781_v50  ;;  %v9787_v25 = vpop.f32.mrb[54].mxu0  ;;  %v6829_v24 = vmul.f32 %v6813_v12, %v14100_v1 }
 0xc84   : > { %v6783_v58 = vadd.f32 1e-24, %v6761_v53  ;;  %10643 = vrot.lane.b32.xlu1 %v10642_v49, %s11247_s29  ;;  %v6083_v13 = vpop.f32.mrb[55].mxu0  ;;  %v11126_v54 = vpop.eup %11125 }
 0xc85   : > { %11137 = vrsqrt.f32 %v6948_v2  ;;  %v6529_v22 = vpack.c.bf16 %v9787_v25, %v6083_v13  ;;  %v6814_v37 = vmul.f32 %v11126_v54, %v13419_v31 }
 0xc86   : > { %v6764_v59 = vpop.xlane.xlu0 %6763  ;;  %11139 = vrsqrt.f32 %v6783_v58 }
 0xc87   : > { %v6767_v29 = vpop.xlane.xlu1 %6766  ;;  %v11128_v34 = vpop.eup %11127  ;;  %v6784_v41 = vadd.f32 1e-24, %v6764_v59  ;;  %9829 = vmatprep.mubr.msk.bf16.mxu0 %vm486_vm1, %v6529_v22  ;;  %v6830_v1 = vmul.f32 %v6814_v37, %v14101_v17 }
 0xc88   : > { %v11130_v8 = vpop.eup %11129  ;;  %v6785_v43 = vadd.f32 1e-24, %v6767_v29  ;;  %v9794_v46 = vpop.f32.mrb[62].mxu1  ;;  %7273 = vrot.lane.b32.xlu1 %v6828_v40, %s11248_s30  ;;  %v6977_v39 = vmul.f32 %v11128_v34, %v14041_v63 }
 0xc89   : > { %11141 = vrsqrt.f32 %v6784_v41  ;;  %v6170_v62 = vpop.f32.mrb[63].mxu1  ;;  %v6978_v30 = vmul.f32 %v11130_v8, %v14040_v19 }
 0xc8a   : > { %v6530_v51 = vpack.c.bf16 %v9794_v46, %v6170_v62  ;;  %v6770_v35 = vpop.xlane.xlu0 %6769  ;;  %11143 = vrsqrt.f32 %v6785_v43 }
 0xc8b   : > { %v11132_v27 = vpop.eup %11131  ;;  %v6786_v9 = vadd.f32 1e-24, %v6770_v35  ;;  %v10647_v23 = vpack.i.bf16 %v6978_v30, %v6977_v39  ;;  %v9801_v6 = vpop.f32.mrb[56].mxu0 }
 0xc8c   : > { %7366 = vrot.lane.b32.xlu1 %v6829_v24, %s11248_s30  ;;  %9830 = vmatmul.mubr.msk.bf16.gmra.mrb[40].mxu0 %vm486_vm1, %v6530_v51  ;;  %v11134_v14 = vpop.eup %11133  ;;  %v6257_v57 = vpop.f32.mrb[57].mxu0  ;;  %v6816_v21 = vmul.f32 %v11132_v27, %v13419_v31 }
 0xc8d   : > { %11145 = vrsqrt.f32 %v6786_v9  ;;  %10648 = vrot.lane.b32.xlu0 %v10647_v23, %s11247_s29  ;;  %v11136_v4 = vpop.eup %11135  ;;  %v6531_v52 = vpack.c.bf16 %v9801_v6, %v6257_v57  ;;  %v6979_v60 = vmul.f32 %v11134_v14, %v14043_v47 }
 0xc8e   : > { %v6832_v50 = vmul.f32 %v6816_v21, %v14038_v42  ;;  %v6815_v17 = vmul.f32 %v11136_v4, %v13419_v31 }
 0xc8f   : > { %v11138_v36 = vpop.eup %11137  ;;  %v9808_v61 = vpop.f32.mrb[64].mxu1  ;;  %9833 = vmatprep.mubr.msk.bf16.mxu0 %vm486_vm1, %v6531_v52 }
 0xc90   : > { %7368 = vrot.lane.b32.xlu1 %v6830_v1, %s11248_s30  ;;  %v6980_v28 = vmul.f32 %v11138_v36, %v14042_v55  ;;  %v6344_v3 = vpop.f32.mrb[65].mxu1  ;;  %v11140_v44 = vpop.eup %11139  ;;  %v6831_v42 = vmul.f32 %v6815_v17, %v14039_v48 }
 0xc91   : > { %v6532_v26 = vpack.c.bf16 %v9808_v61, %v6344_v3  ;;  %v6817_v58 = vmul.f32 %v11140_v44, %v13419_v31 }
 0xc92   : > { %v10652_v33 = vpack.i.bf16 %v6980_v28, %v6979_v60 }
 0xc93   : > { %v11142_v38 = vpop.eup %11141  ;;  %v6833_v29 = vmul.f32 %v6817_v58, %v14041_v63 }
 0xc94   : > { %7463 = vrot.lane.b32.xlu1 %v6832_v50, %s11248_s30  ;;  %10653 = vrot.lane.b32.xlu0 %v10652_v33, %s11247_s29  ;;  %v9815_v10 = vpop.f32.mrb[58].mxu0  ;;  %v6818_v53 = vmul.f32 %v11142_v38, %v13419_v31  ;;  %v11144_v56 = vpop.eup %11143 }
 0xc95   : > { %9834 = vmatmul.mubr.msk.bf16.gmra.mrb[44].mxu0 %vm486_vm1, %v6532_v26  ;;  %v6431_v49 = vpop.f32.mrb[59].mxu0 }
 0xc96   : > { %v6533_v45 = vpack.c.bf16 %v9815_v10, %v6431_v49  ;;  %v6834_v2 = vmul.f32 %v6818_v53, %v14040_v19  ;;  %v6819_v19 = vmul.f32 %v11144_v56, %v13419_v31 }
 0xc97   : > { %v11146_v25 = vpop.eup %11145 }
 0xc98   : > { %7558 = vrot.lane.b32.xlu1 %v6834_v2, %s11248_s30  ;;  %7461 = vrot.lane.b32.xlu0 %v6831_v42, %s11248_s30  ;;  %v6820_v13 = vmul.f32 %v11146_v25, %v13419_v31  ;;  %v6835_v40 = vmul.f32 %v6819_v19, %v14043_v47 }
 0xc99   : > { %v9822_v54 = vpop.f32.mrb[66].mxu1  ;;  %9837 = vmatprep.mubr.msk.bf16.mxu0 %vm486_vm1, %v6533_v45 }
 0xc9a   : > { %v6518_v22 = vpop.f32.mrb[67].mxu1  ;;  %v6836_v59 = vmul.f32 %v6820_v13, %v14042_v55 }
 0xc9b   : > { %v6534_v48 = vpack.c.bf16 %v9822_v54, %v6518_v22  ;;  %v9069_v54 = vld [vmem:[%s13795_s4 + $0x38] sm:$0xff] }
 0xc9c   : > { %7653 = vrot.lane.b32.xlu1 %v6836_v59, %s11248_s30  ;;  %7556 = vrot.lane.b32.xlu0 %v6833_v29, %s11248_s30 }
 0xc9d   : > { %9838 = vmatmul.mubr.msk.bf16.gmra.mrb[48].mxu0 %vm486_vm1, %v6534_v48 }
 0xca0   : > { %7651 = vrot.lane.b32.xlu0 %v6835_v40, %s11248_s30 }
 0xcce   : > { %v10619_v12 = vpop.permute.xlu1 %10618 }
 0xccf   : > { %v10621_v34 = vunpack.i.h.bf16 %v10619_v12  ;;  %v10620_v41 = vunpack.i.l.bf16 %v10619_v12 }
 0xcd1   : > { %v10211_v8 = vpack.c.bf16 %v10621_v34, %v10620_v41 }
 0xcd2   : > { %v6987_v55 = vpop.permute.xlu1 %6986 }
 0xcd3   : > { %10213 = vmatprep.subr.msk.bf16.mxu1 %vm11859_vm2, %v10211_v8  ;;  %9845 = vmatprep.mubr.msk.f32.mxu1 %vm486_vm1, %v6987_v55 }
 0xcd4   : > { %10216 = vmatpush3.bf16.xpose.msk.msra.mxu1 %vm11859_vm2, %v10211_v8 }
 0xcd7   : > { %v10624_v63 = vpop.permute.xlu0 %10623 }
 0xcd8   : > { %v10626_v31 = vunpack.i.h.bf16 %v10624_v63  ;;  %v10625_v43 = vunpack.i.l.bf16 %v10624_v63 }
 0xcda   : > { %v10217_v46 = vpack.c.bf16 %v10626_v31, %v10625_v43  ;;  %v6989_v47 = vpop.permute.xlu1 %6988 }
 0xcdb   : > { %9846 = vmatmul.mubr.msk.f32.vlgmr.msra.gmra.mrb[68].mxu1 %vm486_vm1, %v6989_v47 }
 0xcdc   : > { %10219 = vmatprep.subr.msk.bf16.mxu1 %vm11859_vm2, %v10217_v46 }
 0xcdd   : > { %10222 = vmatpush3.bf16.xpose.msk.msra.mxu1 %vm11859_vm2, %v10217_v46 }
 0xcde   : > { %v7082_v39 = vpop.permute.xlu1 %7081 }
 0xcdf   : > { %v10629_v62 = vpop.permute.xlu0 %10628  ;;  %9852 = vmatprep.mubr.msk.f32.mxu1 %vm486_vm1, %v7082_v39 }
 0xce0   : > { %v10631_v30 = vunpack.i.h.bf16 %v10629_v62  ;;  %v10630_v51 = vunpack.i.l.bf16 %v10629_v62 }
 0xce2   : > { %v10223_v35 = vpack.c.bf16 %v10631_v30, %v10630_v51 }
 0xce3   : > { %v7084_v24 = vpop.permute.xlu0 %7083 }
 0xce4   : > { %10225 = vmatprep.subr.msk.bf16.mxu1 %vm11859_vm2, %v10223_v35  ;;  %9853 = vmatmul.mubr.msk.f32.vlgmr.msra.gmra.mrb[70].mxu1 %vm486_vm1, %v7084_v24 }
 0xce5   : > { %10228 = vmatpush3.bf16.xpose.msk.msra.mxu1 %vm11859_vm2, %v10223_v35 }
 0xce7   : > { %v7177_v37 = vpop.permute.xlu0 %7176  ;;  %v10634_v27 = vpop.permute.xlu1 %10633 }
 0xce8   : > { %v10636_v9 = vunpack.i.h.bf16 %v10634_v27  ;;  %v10635_v23 = vunpack.i.l.bf16 %v10634_v27  ;;  %9859 = vmatprep.mubr.msk.f32.mxu1 %vm486_vm1, %v7177_v37 }
 0xcea   : > { %v10229_v6 = vpack.c.bf16 %v10636_v9, %v10635_v23 }
 0xceb   : > { %v7179_v14 = vpop.permute.xlu1 %7178 }
 0xcec   : > { %10231 = vmatprep.subr.msk.bf16.mxu1 %vm11859_vm2, %v10229_v6  ;;  %9860 = vmatmul.mubr.msk.f32.vlgmr.msra.gmra.mrb[72].mxu1 %vm486_vm1, %v7179_v14 }
 0xced   : > { %10234 = vmatpush3.bf16.xpose.msk.msra.mxu1 %vm11859_vm2, %v10229_v6 }
 0xcef   : > { %v10639_v57 = vpop.permute.xlu0 %10638 }
 0xcf0   : > { %v10641_v4 = vunpack.i.h.bf16 %v10639_v57  ;;  %v10640_v52 = vunpack.i.l.bf16 %v10639_v57 }
 0xcf2   : > { %v10235_v1 = vpack.c.bf16 %v10641_v4, %v10640_v52 }
 0xcf3   : > { %v7272_v21 = vpop.permute.xlu0 %7271 }
 0xcf4   : > { %9866 = vmatprep.mubr.msk.f32.mxu1 %vm486_vm1, %v7272_v21  ;;  %10237 = vmatprep.subr.msk.bf16.mxu0 %vm11859_vm2, %v10235_v1 }
 0xcf5   : > { %10240 = vmatpush3.bf16.xpose.msk.msra.mxu0 %vm11859_vm2, %v10235_v1 }
 0xcf6   : > { %v10644_v36 = vpop.permute.xlu1 %10643 }
 0xcf7   : > { %v10646_v61 = vunpack.i.h.bf16 %v10644_v36  ;;  %v10645_v60 = vunpack.i.l.bf16 %v10644_v36 }
 0xcf9   : > { %v10241_v28 = vpack.c.bf16 %v10646_v61, %v10645_v60 }
 0xcfa   : > { %v7274_v3 = vpop.permute.xlu1 %7273 }
 0xcfb   : > { %9867 = vmatmul.mubr.msk.f32.vlgmr.msra.gmra.mrb[74].mxu1 %vm486_vm1, %v7274_v3  ;;  %10243 = vmatprep.subr.msk.bf16.mxu1 %vm11859_vm2, %v10241_v28 }
 0xcfc   : > { %10246 = vmatpush3.bf16.xpose.msk.msra.mxu1 %vm11859_vm2, %v10241_v28 }
 0xcfe   : > { %v7367_v44 = vpop.permute.xlu1 %7366 }
 0xcff   : > { %v10649_v26 = vpop.permute.xlu0 %10648  ;;  %9873 = vmatprep.mubr.msk.f32.mxu0 %vm486_vm1, %v7367_v44 }
 0xd00   : > { %v10651_v50 = vunpack.i.h.bf16 %v10649_v26  ;;  %v10650_v33 = vunpack.i.l.bf16 %v10649_v26 }
 0xd02   : > { %v10247_v17 = vpack.c.bf16 %v10651_v50, %v10650_v33  ;;  %v7369_v38 = vpop.permute.xlu1 %7368 }
 0xd03   : > { %9874 = vmatmul.mubr.msk.f32.vlgmr.msra.gmra.mrb[60].mxu0 %vm486_vm1, %v7369_v38 }
 0xd04   : > { %10249 = vmatprep.subr.msk.bf16.mxu0 %vm11859_vm2, %v10247_v17 }
 0xd05   : > { %10252 = vmatpush3.bf16.xpose.msk.msra.mxu0 %vm11859_vm2, %v10247_v17 }
 0xd06   : > { %v10654_v10 = vpop.permute.xlu0 %10653  ;;  %v7464_v56 = vpop.permute.xlu1 %7463 }
 0xd07   : > { %v10656_v53 = vunpack.i.h.bf16 %v10654_v10  ;;  %v10655_v49 = vunpack.i.l.bf16 %v10654_v10 }
 0xd09   : > { %v10253_v45 = vpack.c.bf16 %v10656_v53, %v10655_v49 }
 0xd0a   : > { %v7462_v2 = vpop.permute.xlu0 %7461  ;;  %v7559_v42 = vpop.permute.xlu1 %7558 }
 0xd0b   : > { %9880 = vmatprep.mubr.msk.f32.mxu1 %vm486_vm1, %v7462_v2  ;;  %10255 = vmatprep.subr.msk.bf16.mxu1 %vm11859_vm2, %v10253_v45 }
 0xd0c   : > { %9881 = vmatmul.mubr.msk.f32.vlgmr.msra.gmra.mrb[76].mxu1 %vm486_vm1, %v7464_v56 }
 0xd0d   : > { %10258 = vmatpush3.bf16.xpose.msk.msra.mxu1 %vm11859_vm2, %v10253_v45 }
 0xd0e   : > { %v7557_v58 = vpop.permute.xlu0 %7556  ;;  %v7654_v13 = vpop.permute.xlu1 %7653 }
 0xd0f   : > { %9887 = vmatprep.mubr.msk.f32.mxu0 %vm486_vm1, %v7557_v58 }
 0xd10   : > { %9888 = vmatmul.mubr.msk.f32.vlgmr.msra.gmra.mrb[62].mxu0 %vm486_vm1, %v7559_v42 }
 0xd12   : > { %v7652_v25 = vpop.permute.xlu0 %7651 }
 0xd13   : > { %9894 = vmatprep.mubr.msk.f32.mxu1 %vm486_vm1, %v7652_v25 }
 0xd14   : > { %9895 = vmatmul.mubr.msk.f32.vlgmr.msra.gmra.mrb[78].mxu1 %vm486_vm1, %v7654_v13 }
 0xdae   : > { %v9847_v22 = vpop.f32.mrb[68].mxu1 }
 0xdaf   : > { %v7076_v59 = vadd.f32 %v9847_v22, %v9069_v54  ;;  %v7070_v29 = vpop.f32.mrb[69].mxu1 }
 0xdb0   : > { %v7071_v19 = vadd.f32 %v9068_v0, %v7070_v29 }
 0xdb1   : > { %v7747_v48 = vsel %vm1491_vm3, %v7076_v59, -inf }
 0xdb2   : > { %7748 = vmax.xlane.f32.xlu1 %v7747_v48  ;;  %v7744_v40 = vsel %vm1491_vm3, %v7071_v19, -inf }
 0xdb3   : > { %7745 = vmax.xlane.f32.xlu0 %v7744_v40 }
 0xdb7   : > { %v9854_v12 = vpop.f32.mrb[70].mxu1 }
 0xdb8   : > { %v7171_v34 = vadd.f32 %v9854_v12, %v9069_v54  ;;  %v7165_v41 = vpop.f32.mrb[71].mxu1 }
 0xdb9   : > { %v7166_v8 = vadd.f32 %v9068_v0, %v7165_v41 }
 0xdba   : > { %v7753_v55 = vsel %vm1491_vm3, %v7171_v34, -inf }
 0xdbb   : > { %7754 = vmax.xlane.f32.xlu0 %v7753_v55  ;;  %v7750_v63 = vsel %vm1491_vm3, %v7166_v8, -inf }
 0xdbf   : > { %v9861_v31 = vpop.f32.mrb[72].mxu1  ;;  %7751 = vmax.xlane.f32.xlu0 %v7750_v63 }
 0xdc0   : > { %v13555_v43 = vadd.f32 %v9861_v31, %v9069_v54  ;;  %v7260_v46 = vpop.f32.mrb[73].mxu1 }
 0xdc1   : > { %v13557_v47 = vadd.f32 %v9068_v0, %v7260_v46 }
 0xdc2   : > { %v7759_v39 = vsel %vm1491_vm3, %v13555_v43, -inf }
 0xdc3   : > { %7760 = vmax.xlane.f32.xlu0 %v7759_v39  ;;  %v7756_v62 = vsel %vm1491_vm3, %v13557_v47, -inf }
 0xdc4   : > { %7757 = vmax.xlane.f32.xlu1 %v7756_v62 }
 0xdce   : > { %v9868_v30 = vpop.f32.mrb[74].mxu1 }
 0xdcf   : > { %v13563_v51 = vadd.f32 %v9868_v30, %v9069_v54  ;;  %v7355_v35 = vpop.f32.mrb[75].mxu1 }
 0xdd0   : > { %v13565_v24 = vadd.f32 %v9068_v0, %v7355_v35 }
 0xdd1   : > { %v7765_v37 = vsel %vm1491_vm3, %v13563_v51, -inf }
 0xdd2   : > { %7766 = vmax.xlane.f32.xlu0 %v7765_v37  ;;  %v7762_v27 = vsel %vm1491_vm3, %v13565_v24, -inf }
 0xdd3   : > { %7763 = vmax.xlane.f32.xlu1 %v7762_v27 }
 0xdd6   : > { %v9875_v9 = vpop.f32.mrb[60].mxu0 }
 0xdd7   : > { %v13571_v23 = vadd.f32 %v9875_v9, %v9069_v54  ;;  %v7450_v6 = vpop.f32.mrb[61].mxu0 }
 0xdd8   : > { %v13573_v14 = vadd.f32 %v9068_v0, %v7450_v6 }
 0xddf   : > { %v9882_v57 = vpop.f32.mrb[76].mxu1 }
 0xde0   : > { %v13575_v4 = vadd.f32 %v9882_v57, %v9069_v54  ;;  %v7545_v52 = vpop.f32.mrb[77].mxu1 }
 0xde1   : > { %v13577_v1 = vadd.f32 %v9068_v0, %v7545_v52 }
 0xde2   : > { %v7777_v21 = vsel %vm1491_vm3, %v13575_v4, -inf }
 0xde3   : > { %7778 = vmax.xlane.f32.xlu0 %v7777_v21  ;;  %v9889_v36 = vpop.f32.mrb[62].mxu0  ;;  %v7774_v61 = vsel %vm1491_vm3, %v13577_v1, -inf }
 0xde4   : > { %v13583_v60 = vadd.f32 %v9889_v36, %v9069_v54  ;;  %7775 = vmax.xlane.f32.xlu1 %v7774_v61  ;;  %v7640_v28 = vpop.f32.mrb[63].mxu0 }
 0xde5   : > { %v13585_v3 = vadd.f32 %v9068_v0, %v7640_v28 }
 0xde7   : > { %v9896_v44 = vpop.f32.mrb[78].mxu1 }
 0xde8   : > { %v13587_v26 = vadd.f32 %v9896_v44, %v9069_v54  ;;  %v7735_v50 = vpop.f32.mrb[79].mxu1 }
 0xde9   : > { %v13589_v33 = vadd.f32 %v9068_v0, %v7735_v50 }
 0xdea   : > { %v7789_v17 = vsel %vm1491_vm3, %v13587_v26, -inf }
 0xdeb   : > { %7790 = vmax.xlane.f32.xlu0 %v7789_v17  ;;  %v7786_v38 = vsel %vm1491_vm3, %v13589_v33, -inf }
 0xdec   : > { %7787 = vmax.xlane.f32.xlu1 %v7786_v38 }
 0xe3f   : > { %v7749_v10 = vpop.xlane.xlu1 %7748 }
 0xe40   : > { %v7793_v53 = vsub.f32 %v7076_v59, %v7749_v10  ;;  %v7746_v49 = vpop.xlane.xlu0 %7745 }
 0xe41   : > { %v7792_v56 = vsub.f32 %v7071_v19, %v7746_v49  ;;  %v7783_v49 = vsel %vm1491_vm3, %v13583_v60, -inf }
 0xe42   : > { %v7810_v45 = vmul.f32 1.442695, %v7793_v53 }
 0xe43   : > { %v7808_v2 = vmul.f32 1.442695, %v7792_v56  ;;  %v7780_v56 = vsel %vm1491_vm3, %v13585_v3, -inf }
 0xe44   : > { %11147 = vpow2.f32 %v7810_v45 }
 0xe45   : > { %11149 = vpow2.f32 %v7808_v2 }
 0xe48   : > { %v7755_v42 = vpop.xlane.xlu0 %7754 }
 0xe49   : > { %v7795_v58 = vsub.f32 %v7171_v34, %v7755_v42 }
 0xe4b   : > { %v7814_v25 = vmul.f32 1.442695, %v7795_v58 }
 0xe4c   : > { %v7752_v13 = vpop.xlane.xlu0 %7751 }
 0xe4d   : > { %11151 = vpow2.f32 %v7814_v25  ;;  %v7794_v54 = vsub.f32 %v7166_v8, %v7752_v13 }
 0xe4e   : > { %v13595_v0 = vpop.eup %11147 }
 0xe4f   : > { %v13597_v22 = vpop.eup %11149  ;;  %v7812_v29 = vmul.f32 1.442695, %v7794_v54  ;;  %v7843_v59 = vsel %vm1491_vm3, %v13595_v0, 0.0 }
 0xe50   : > { %v7761_v48 = vpop.xlane.xlu0 %7760  ;;  %7844 = vadd.xlane.f32.xlu0 %v7843_v59  ;;  %v7840_v19 = vsel %vm1491_vm3, %v13597_v22, 0.0 }
 0xe51   : > { %11153 = vpow2.f32 %v7812_v29  ;;  %v7797_v40 = vsub.f32 %v13555_v43, %v7761_v48  ;;  %v7758_v12 = vpop.xlane.xlu1 %7757  ;;  %7841 = vadd.xlane.f32.xlu1 %v7840_v19 }
 0xe52   : > { %v7796_v34 = vsub.f32 %v13557_v47, %v7758_v12 }
 0xe53   : > { %v7818_v41 = vmul.f32 1.442695, %v7797_v40 }
 0xe54   : > { %v7816_v8 = vmul.f32 1.442695, %v7796_v34 }
 0xe55   : > { %11155 = vpow2.f32 %v7818_v41 }
 0xe56   : > { %11157 = vpow2.f32 %v7816_v8 }
 0xe57   : > { %v13605_v55 = vpop.eup %11151 }
 0xe58   : > { %v7849_v63 = vsel %vm1491_vm3, %v13605_v55, 0.0 }
 0xe59   : > { %7850 = vadd.xlane.f32.xlu0 %v7849_v63 }
 0xe5b   : > { %v13609_v31 = vpop.eup %11153 }
 0xe5c   : > { %v7846_v46 = vsel %vm1491_vm3, %v13609_v31, 0.0 }
 0xe5d   : > { %7847 = vadd.xlane.f32.xlu1 %v7846_v46 }
 0xe5f   : > { %v13613_v43 = vpop.eup %11155  ;;  %v7767_v39 = vpop.xlane.xlu0 %7766 }
 0xe60   : > { %v13615_v47 = vpop.eup %11157  ;;  %v7799_v62 = vsub.f32 %v13563_v51, %v7767_v39  ;;  %v7764_v30 = vpop.xlane.xlu1 %7763  ;;  %v7855_v35 = vsel %vm1491_vm3, %v13613_v43, 0.0 }
 0xe61   : > { %v7798_v37 = vsub.f32 %v13565_v24, %v7764_v30  ;;  %7856 = vadd.xlane.f32.xlu0 %v7855_v35  ;;  %v7852_v27 = vsel %vm1491_vm3, %v13615_v47, 0.0 }
 0xe62   : > { %v7822_v9 = vmul.f32 1.442695, %v7799_v62  ;;  %7853 = vadd.xlane.f32.xlu1 %v7852_v27 }
 0xe63   : > { %v7820_v6 = vmul.f32 1.442695, %v7798_v37 }
 0xe64   : > { %11159 = vpow2.f32 %v7822_v9 }
 0xe65   : > { %11161 = vpow2.f32 %v7820_v6 }
 0xe6e   : > { %v13623_v57 = vpop.eup %11159 }
 0xe6f   : > { %v13625_v52 = vpop.eup %11161  ;;  %v7861_v51 = vsel %vm1491_vm3, %v13623_v57, 0.0 }
 0xe70   : > { %7862 = vadd.xlane.f32.xlu0 %v7861_v51  ;;  %v7779_v21 = vpop.xlane.xlu0 %7778  ;;  %v7858_v24 = vsel %vm1491_vm3, %v13625_v52, 0.0 }
 0xe71   : > { %v7803_v36 = vsub.f32 %v13575_v4, %v7779_v21  ;;  %v7776_v61 = vpop.xlane.xlu1 %7775  ;;  %7859 = vadd.xlane.f32.xlu1 %v7858_v24  ;;  %v7771_v4 = vsel %vm1491_vm3, %v13571_v23, -inf }
 0xe72   : > { %v7802_v28 = vsub.f32 %v13577_v1, %v7776_v61  ;;  %v7768_v1 = vsel %vm1491_vm3, %v13573_v14, -inf }
 0xe73   : > { %v7830_v44 = vmul.f32 1.442695, %v7803_v36 }
 0xe74   : > { %v7828_v50 = vmul.f32 1.442695, %v7802_v28 }
 0xe75   : > { %11163 = vpow2.f32 %v7830_v44 }
 0xe76   : > { %11165 = vpow2.f32 %v7828_v50 }
 0xe78   : > { %v7791_v45 = vpop.xlane.xlu0 %7790 }
 0xe79   : > { %v7788_v2 = vpop.xlane.xlu1 %7787  ;;  %v7807_v42 = vsub.f32 %v13587_v26, %v7791_v45 }
 0xe7a   : > { %v7806_v58 = vsub.f32 %v13589_v33, %v7788_v2 }
 0xe7b   : > { %v7838_v25 = vmul.f32 1.442695, %v7807_v42 }
 0xe7c   : > { %v7836_v13 = vmul.f32 1.442695, %v7806_v58 }
 0xe7d   : > { %11167 = vpow2.f32 %v7838_v25 }
 0xe7e   : > { %11169 = vpow2.f32 %v7836_v13 }
 0xe7f   : > { %v13633_v17 = vpop.eup %11163 }
 0xe80   : > { %v13635_v38 = vpop.eup %11165  ;;  %v7873_v10 = vsel %vm1491_vm3, %v13633_v17, 0.0 }
 0xe81   : > { %7874 = vadd.xlane.f32.xlu0 %v7873_v10  ;;  %v7870_v53 = vsel %vm1491_vm3, %v13635_v38, 0.0 }
 0xe82   : > { %7871 = vadd.xlane.f32.xlu1 %v7870_v53 }
 0xe85   : > { %7772 = vmax.xlane.f32.xlu0 %v7771_v4 }
 0xe86   : > { %7769 = vmax.xlane.f32.xlu1 %v7768_v1 }
 0xe87   : > { %v13655_v54 = vpop.eup %11167 }
 0xe88   : > { %v13657_v29 = vpop.eup %11169 }
 0xe89   : > { %7784 = vmax.xlane.f32.xlu0 %v7783_v49 }
 0xe8a   : > { %7781 = vmax.xlane.f32.xlu1 %v7780_v56 }
 0xe9b   : > { %10658 = vrot.lane.b32.xlu1 %v14044_v5, %s11249_s17  ;;  %v7885_v5 = vsel %vm1491_vm3, %v13655_v54, 0.0 }
 0xe9f   : > { %10663 = vrot.lane.b32.xlu0 %v14047_v20, %s11249_s17  ;;  %v7882_v20 = vsel %vm1491_vm3, %v13657_v29, 0.0 }
 0xebe   : > { %7886 = vadd.xlane.f32.xlu0 %v7885_v5 }
 0xebf   : > { %7883 = vadd.xlane.f32.xlu1 %v7882_v20 }
 0xed0   : > { %10668 = vrot.lane.b32.xlu1 %v14048_v7, %s11249_s17 }
 0xed4   : > { %10673 = vrot.lane.b32.xlu0 %v14049_v15, %s11249_s17  ;;  %10678 = vrot.lane.b32.xlu1 %v14045_v18, %s11249_s17 }
 0xed8   : > { %10683 = vrot.lane.b32.xlu1 %v14050_v32, %s11249_s17 }
 0xedd   : > { %v7845_v15 = vpop.xlane.xlu0 %7844 }
 0xede   : > { %v7842_v26 = vpop.xlane.xlu1 %7841 }
 0xedf   : > { %11171 = vrcp.f32 %v7842_v26 }
 0xee6   : > { %v7851_v18 = vpop.xlane.xlu0 %7850 }
 0xee9   : > { %v11172_v33 = vpop.eup %11171 }
 0xeea   : > { %v7848_v59 = vpop.xlane.xlu1 %7847  ;;  %v7904_v48 = vmul.f32 %v11172_v33, %v13597_v22 }
 0xeec   : > { %9901 = vmatprep.mubr.msk.f32.mxu0 %vm1491_vm3, %v7904_v48 }
 0xeee   : > { %v13675_v12 = vpop.xlane.xlu0 %7856 }
 0xeef   : > { %v7854_v19 = vpop.xlane.xlu1 %7853 }
 0xef0   : > { %11173 = vrcp.f32 %v7854_v19 }
 0xef1   : > { %11175 = vrcp.f32 %v7845_v15 }
 0xef2   : > { %11177 = vrcp.f32 %v7848_v59 }
 0xefa   : > { %v11174_v7 = vpop.eup %11173 }
 0xefb   : > { %v7908_v40 = vmul.f32 %v11174_v7, %v13615_v47  ;;  %v11176_v28 = vpop.eup %11175 }
 0xefc   : > { %v11178_v44 = vpop.eup %11177  ;;  %v7905_v10 = vmul.f32 %v11176_v28, %v13595_v0 }
 0xefd   : > { %9915 = vmatprep.mubr.msk.f32.mxu1 %vm1491_vm3, %v7908_v40  ;;  %v7863_v32 = vpop.xlane.xlu0 %7862  ;;  %v7906_v49 = vmul.f32 %v11178_v44, %v13609_v31 }
 0xefe   : > { %v7860_v34 = vpop.xlane.xlu1 %7859 }
 0xf0e   : > { %v13677_v41 = vpop.xlane.xlu0 %7874 }
 0xf0f   : > { %v7872_v8 = vpop.xlane.xlu1 %7871 }
 0xf12   : > { %v7773_v63 = vpop.xlane.xlu0 %7772 }
 0xf13   : > { %v7801_v22 = vsub.f32 %v13571_v23, %v7773_v63  ;;  %v7770_v46 = vpop.xlane.xlu1 %7769 }
 0xf14   : > { %v7800_v39 = vsub.f32 %v13573_v14, %v7770_v46 }
 0xf15   : > { %v7826_v62 = vmul.f32 1.442695, %v7801_v22 }
 0xf16   : > { %v7824_v47 = vmul.f32 1.442695, %v7800_v39  ;;  %v7785_v30 = vpop.xlane.xlu0 %7784 }
 0xf17   : > { %11179 = vpow2.f32 %v7826_v62  ;;  %v7805_v35 = vsub.f32 %v13583_v60, %v7785_v30  ;;  %v7782_v37 = vpop.xlane.xlu1 %7781 }
 0xf18   : > { %11181 = vpow2.f32 %v7824_v47  ;;  %v7804_v27 = vsub.f32 %v13585_v3, %v7782_v37 }
 0xf19   : > { %11183 = vrcp.f32 %v7851_v18  ;;  %v7834_v9 = vmul.f32 1.442695, %v7805_v35 }
 0xf1a   : > { %11185 = vrcp.f32 %v7860_v34  ;;  %v7832_v6 = vmul.f32 1.442695, %v7804_v27  ;;  %v10664_v23 = vpop.permute.xlu0 %10663 }
 0xf1b   : > { %11187 = vpow2.f32 %v7834_v9  ;;  %v10666_v51 = vunpack.i.h.bf16 %v10664_v23  ;;  %v10659_v14 = vpop.permute.xlu1 %10658  ;;  %v10665_v21 = vunpack.i.l.bf16 %v10664_v23 }
 0xf1c   : > { %11189 = vpow2.f32 %v7832_v6  ;;  %v10661_v24 = vunpack.i.h.bf16 %v10659_v14  ;;  %v10660_v36 = vunpack.i.l.bf16 %v10659_v14 }
 0xf1d   : > { %v10263_v60 = vpack.c.bf16 %v10666_v51, %v10665_v21  ;;  %11191 = vrcp.f32 %v7863_v32 }
 0xf1e   : > { %v10259_v61 = vpack.c.bf16 %v10661_v24, %v10660_v36  ;;  %11193 = vrcp.f32 %v13675_v12  ;;  %v469_v36 = vld [vmem:[%s13796_s5 + $0xc] sm:$0xf] }
 0xf1f   : > { %11195 = vrcp.f32 %v7872_v8 }
 0xf20   : > { %10260 = vmatprep.subr.bf16.mxu0 %v10259_v61  ;;  %11197 = vrcp.f32 %v13677_v41 }
 0xf21   : > { %v13683_v50 = vpop.eup %11179  ;;  %10262 = vmatpush3.bf16.msra.mxu0 %v10259_v61 }
 0xf22   : > { %v13685_v3 = vpop.eup %11181  ;;  %10264 = vmatprep.subr.bf16.mxu0 %v10263_v60  ;;  %v7867_v53 = vsel %vm1491_vm3, %v13683_v50, 0.0 }
 0xf23   : > { %v11184_v4 = vpop.eup %11183  ;;  %7868 = vadd.xlane.f32.xlu0 %v7867_v53  ;;  %v7864_v1 = vsel %vm1491_vm3, %v13685_v3, 0.0 }
 0xf24   : > { %v11186_v56 = vpop.eup %11185  ;;  %7865 = vadd.xlane.f32.xlu1 %v7864_v1  ;;  %9902 = vmatmul.mubr.msk.f32.vlgmr.msra.gmra.mrb[64].mxu0 %vm1491_vm3, %v7905_v10  ;;  %v7907_v2 = vmul.f32 %v11184_v4, %v13605_v55 }
 0xf25   : > { %v13694_v45 = vpop.eup %11187  ;;  %10266 = vmatpush3.bf16.msra.mxu0 %v10263_v60  ;;  %9908 = vmatprep.mubr.msk.f32.mxu0 %vm1491_vm3, %v7906_v49  ;;  %v7910_v58 = vmul.f32 %v11186_v56, %v13625_v52 }
 0xf26   : > { %v13697_v0 = vpop.eup %11189  ;;  %v7879_v42 = vsel %vm1491_vm3, %v13694_v45, 0.0 }
 0xf27   : > { %7880 = vadd.xlane.f32.xlu0 %v7879_v42  ;;  %v7876_v31 = vsel %vm1491_vm3, %v13697_v0, 0.0  ;;  %v11192_v48 = vpop.eup %11191 }
 0xf28   : > { %7877 = vadd.xlane.f32.xlu1 %v7876_v31  ;;  %9909 = vmatmul.mubr.msk.f32.vlgmr.msra.gmra.mrb[66].mxu0 %vm1491_vm3, %v7907_v2  ;;  %v11194_v19 = vpop.eup %11193  ;;  %v7911_v18 = vmul.f32 %v11192_v48, %v13623_v57 }
 0xf29   : > { %9922 = vmatprep.mubr.msk.f32.mxu0 %vm1491_vm3, %v7910_v58  ;;  %v11196_v7 = vpop.eup %11195  ;;  %v7909_v12 = vmul.f32 %v11194_v19, %v13613_v43 }
 0xf2a   : > { %v7914_v41 = vmul.f32 %v11196_v7, %v13635_v38  ;;  %v11198_v46 = vpop.eup %11197 }
 0xf2b   : > { %v7915_v43 = vmul.f32 %v11198_v46, %v13633_v17 }
 0xf39   : > { %10693 = vrot.lane.b32.xlu1 %v14051_v16, %s11249_s17 }
 0xf3d   : > { %10688 = vrot.lane.b32.xlu0 %v14046_v11, %s11249_s17 }
 0xf4b   : > { %v7887_v55 = vpop.xlane.xlu0 %7886 }
 0xf4c   : > { %v7884_v25 = vpop.xlane.xlu1 %7883 }
 0xf4d   : > { %11199 = vrcp.f32 %v7884_v25 }
 0xf4f   : > { %v10674_v13 = vpop.permute.xlu0 %10673 }
 0xf50   : > { %v10676_v5 = vunpack.i.h.bf16 %v10674_v13  ;;  %v10675_v52 = vunpack.i.l.bf16 %v10674_v13  ;;  %v10669_v20 = vpop.permute.xlu1 %10668 }
 0xf51   : > { %v10671_v26 = vunpack.i.h.bf16 %v10669_v20  ;;  %v10670_v33 = vunpack.i.l.bf16 %v10669_v20 }
 0xf52   : > { %v10271_v59 = vpack.c.bf16 %v10676_v5, %v10675_v52 }
 0xf53   : > { %v10267_v16 = vpack.c.bf16 %v10671_v26, %v10670_v33 }
 0xf54   : > { %v10679_v11 = vpop.permute.xlu1 %10678  ;;  %10272 = vmatprep.subr.bf16.mxu0 %v10271_v59 }
 0xf55   : > { %v10681_v40 = vunpack.i.h.bf16 %v10679_v11  ;;  %v10680_v15 = vunpack.i.l.bf16 %v10679_v11  ;;  %10268 = vmatprep.subr.bf16.mxu1 %v10267_v16  ;;  %10274 = vmatpush3.bf16.msra.mxu0 %v10271_v59  ;;  %v9126_v11 = vld [vmem:[%s13797_s6] ss:$0 sm:$0xff] }
 0xf56   : > { %10270 = vmatpush3.bf16.msra.mxu1 %v10267_v16 }
 0xf57   : > { %v10275_v32 = vpack.c.bf16 %v10681_v40, %v10680_v15  ;;  %v11200_v57 = vpop.eup %11199 }
 0xf58   : > { %v10684_v34 = vpop.permute.xlu1 %10683  ;;  %9923 = vmatmul.mubr.msk.f32.vlgmr.msra.gmra.mrb[68].mxu0 %vm1491_vm3, %v7911_v18  ;;  %v7918_v39 = vmul.f32 %v11200_v57, %v13657_v29 }
 0xf59   : > { %v10686_v8 = vunpack.i.h.bf16 %v10684_v34  ;;  %v10685_v63 = vunpack.i.l.bf16 %v10684_v34  ;;  %9916 = vmatmul.mubr.msk.f32.vlgmr.msra.gmra.mrb[80].mxu1 %vm1491_vm3, %v7909_v12  ;;  %10276 = vmatprep.subr.bf16.mxu1 %v10275_v32 }
 0xf5a   : > { %9936 = vmatprep.mubr.msk.f32.mxu0 %vm1491_vm3, %v7914_v41  ;;  %10278 = vmatpush3.bf16.msra.mxu1 %v10275_v32 }
 0xf5b   : > { %v10279_v22 = vpack.c.bf16 %v10686_v8, %v10685_v63 }
 0xf5d   : > { %10280 = vmatprep.subr.bf16.mxu0 %v10279_v22 }
 0xf5e   : > { %10282 = vmatpush3.bf16.msra.mxu0 %v10279_v22 }
 0xf61   : > { %9937 = vmatmul.mubr.msk.f32.vlgmr.msra.gmra.mrb[70].mxu0 %vm1491_vm3, %v7915_v43 }
 0xf62   : > { %9950 = vmatprep.mubr.msk.f32.mxu0 %vm1491_vm3, %v7918_v39 }
 0xfb0   : > { %v7869_v38 = vpop.xlane.xlu0 %7868 }
 0xfb1   : > { %11201 = vrcp.f32 %v7869_v38  ;;  %v7866_v62 = vpop.xlane.xlu1 %7865 }
 0xfb2   : > { %11203 = vrcp.f32 %v7866_v62 }
 0xfb3   : > { %11205 = vrcp.f32 %v7887_v55 }
 0xfb4   : > { %v7881_v47 = vpop.xlane.xlu0 %7880 }
 0xfb5   : > { %11207 = vrcp.f32 %v7881_v47  ;;  %v7878_v30 = vpop.xlane.xlu1 %7877 }
 0xfb6   : > { %11209 = vrcp.f32 %v7878_v30 }
 0xfb8   : > { %v10689_v35 = vpop.permute.xlu0 %10688 }
 0xfb9   : > { %v10691_v37 = vunpack.i.h.bf16 %v10689_v35  ;;  %v10690_v27 = vunpack.i.l.bf16 %v10689_v35  ;;  %v10694_v9 = vpop.permute.xlu1 %10693 }
 0xfba   : > { %v10696_v17 = vunpack.i.h.bf16 %v10694_v9  ;;  %v10695_v6 = vunpack.i.l.bf16 %v10694_v9 }
 0xfbb   : > { %v11202_v29 = vpop.eup %11201  ;;  %v10283_v23 = vpack.c.bf16 %v10691_v37, %v10690_v27 }
 0xfbc   : > { %v11204_v51 = vpop.eup %11203  ;;  %v10287_v14 = vpack.c.bf16 %v10696_v17, %v10695_v6  ;;  %v7913_v61 = vmul.f32 %v11202_v29, %v13683_v50 }
 0xfbd   : > { %v11206_v21 = vpop.eup %11205  ;;  %10284 = vmatprep.subr.bf16.mxu1 %v10283_v23  ;;  %v7912_v24 = vmul.f32 %v11204_v51, %v13685_v3  ;;  %v8649_v3 = vsel %vm4361_vm4, %v469_v36, 0 }
 0xfbe   : > { %10288 = vmatprep.subr.bf16.mxu0 %v10287_v14  ;;  %v7919_v60 = vmul.f32 %v11206_v21, %v13655_v54 }
 0xfbf   : > { %v11208_v28 = vpop.eup %11207  ;;  %9929 = vmatprep.mubr.msk.f32.mxu1 %vm1491_vm3, %v7912_v24  ;;  %10290 = vmatpush3.bf16.msra.mxu0 %v10287_v14 }
 0xfc0   : > { %v11210_v44 = vpop.eup %11209  ;;  %9930 = vmatmul.mubr.msk.f32.vlgmr.msra.gmra.mrb[82].mxu1 %vm1491_vm3, %v7913_v61  ;;  %10346 = vmatprep.subr.msk.bf16.mxu0 %vm4361_vm4, %v469_v36  ;;  %v7917_v53 = vmul.f32 %v11208_v28, %v13694_v45 }
 0xfc1   : > { %10286 = vmatpush3.bf16.msra.mxu1 %v10283_v23  ;;  %v7916_v10 = vmul.f32 %v11210_v44, %v13697_v0 }
 0xfc2   : > { %9951 = vmatmul.mubr.msk.f32.vlgmr.msra.gmra.mrb[72].mxu0 %vm1491_vm3, %v7919_v60 }
 0xfc3   : > { %9943 = vmatprep.mubr.msk.f32.mxu1 %vm1491_vm3, %v7916_v10  ;;  %9954 = vmatpush3.bf16.msra.mxu0 %v8649_v3 }
 0xfc4   : > { %9944 = vmatmul.mubr.msk.f32.vlgmr.msra.gmra.mrb[84].mxu1 %vm1491_vm3, %v7917_v53 }
 0xff7   : > { %v9903_v50 = vpop.f32.mrb[64].mxu0 }
 0xff8   : > { %v7998_v54 = vpop.f32.mrb[65].mxu0 }
 0xff9   : > { %v8616_v4 = vpack.c.bf16 %v9903_v50, %v7998_v54 }
 0xffb   : > { %v9910_v1 = vpop.f32.mrb[66].mxu0  ;;  %9955 = vmatprep.mubr.msk.bf16.mxu0 %vm486_vm1, %v8616_v4 }
 0xffc   : > { %v8085_v49 = vpop.f32.mrb[67].mxu0 }
 0xffd   : > { %v8617_v56 = vpack.c.bf16 %v9910_v1, %v8085_v49 }
 0xfff   : > { %9956 = vmatmul.mubr.msk.bf16.vlgmr.msra.gmra.mrb[36].mxu0 %vm486_vm1, %v8617_v56 }
0x102b   : > { %v9924_v0 = vpop.f32.mrb[68].mxu0 }
0x102c   : > { %v9917_v2 = vpop.f32.mrb[80].mxu1  ;;  %v8259_v45 = vpop.f32.mrb[69].mxu0 }
0x102d   : > { %v8619_v42 = vpack.c.bf16 %v9924_v0, %v8259_v45  ;;  %v8172_v31 = vpop.f32.mrb[81].mxu1 }
0x102e   : > { %v8618_v58 = vpack.c.bf16 %v9917_v2, %v8172_v31 }
0x1030   : > { %9959 = vmatprep.mubr.msk.bf16.mxu0 %vm486_vm1, %v8618_v58 }
0x1031   : > { %9960 = vmatmul.mubr.msk.bf16.gmra.mrb[40].mxu0 %vm486_vm1, %v8619_v42 }
0x1034   : > { %v9938_v55 = vpop.f32.mrb[70].mxu0 }
0x1035   : > { %v8433_v25 = vpop.f32.mrb[71].mxu0 }
0x1036   : > { %v8621_v13 = vpack.c.bf16 %v9938_v55, %v8433_v25 }
0x1093   : > { %v9931_v5 = vpop.f32.mrb[82].mxu1 }
0x1094   : > { %v8346_v52 = vpop.f32.mrb[83].mxu1 }
0x1095   : > { %v8620_v20 = vpack.c.bf16 %v9931_v5, %v8346_v52  ;;  %v9952_v26 = vpop.f32.mrb[72].mxu0 }
0x1096   : > { %v8607_v33 = vpop.f32.mrb[73].mxu0 }
0x1097   : > { %v8623_v59 = vpack.c.bf16 %v9952_v26, %v8607_v33  ;;  %v9945_v48 = vpop.f32.mrb[84].mxu1  ;;  %9963 = vmatprep.mubr.msk.bf16.mxu0 %vm486_vm1, %v8620_v20 }
0x1098   : > { %v8520_v16 = vpop.f32.mrb[85].mxu1  ;;  %9964 = vmatmul.mubr.msk.bf16.gmra.mrb[44].mxu0 %vm486_vm1, %v8621_v13 }
0x1099   : > { %v8622_v19 = vpack.c.bf16 %v9945_v48, %v8520_v16 }
0x109b   : > { %9967 = vmatprep.mubr.msk.bf16.mxu0 %vm486_vm1, %v8622_v19 }
0x10a0   : > { %9968 = vmatmul.mubr.msk.bf16.gmra.mrb[48].mxu0 %vm486_vm1, %v8623_v59 }
0x10d2   : > { %v9957_v7 = vpop.f32.mrb[36].mxu0 }
0x10d3   : > { %v8773_v40 = vadd.f32 %v9957_v7, %v9126_v11  ;;  %v8685_v15 = vpop.f32.mrb[37].mxu0 }
0x10d4   : > { %v8771_v18 = vadd.f32 %v9126_v11, %v8685_v15  ;;  %v9958_v12 = vpop.f32.mrb[38].mxu0 }
0x10d5   : > { %8789 = vst.msk [vmem:[%s13754_s25 + $0x10] sm:$0xff] %vm344_vm0, %v8773_v40  ;;  %v8774_v32 = vadd.f32 %v9958_v12, %v9126_v11  ;;  %v8688_v34 = vpop.f32.mrb[39].mxu0 }
0x10d6   : > { %8787 = vst.msk [vmem:[%s13754_s25] sm:$0xff] %vm344_vm0, %v8771_v18  ;;  %v8772_v41 = vadd.f32 %v9126_v11, %v8688_v34 }
0x10d7   : > { %8790 = vst.msk [vmem:[%s13754_s25 + $0x18] sm:$0xff] %vm344_vm0, %v8774_v32 }
0x10d8   : > { %8788 = vst.msk [vmem:[%s13754_s25 + $0x8] sm:$0xff] %vm344_vm0, %v8772_v41 }
0x1104   : > { %v9961_v8 = vpop.f32.mrb[40].mxu0 }
0x1105   : > { %v8777_v63 = vadd.f32 %v9961_v8, %v9126_v11  ;;  %v8701_v22 = vpop.f32.mrb[41].mxu0 }
0x1106   : > { %v8775_v46 = vadd.f32 %v9126_v11, %v8701_v22  ;;  %v9962_v57 = vpop.f32.mrb[42].mxu0 }
0x1107   : > { %8793 = vst.msk [vmem:[%s13754_s25 + $0x30] sm:$0xff] %vm344_vm0, %v8777_v63  ;;  %v8778_v43 = vadd.f32 %v9962_v57, %v9126_v11  ;;  %v8704_v39 = vpop.f32.mrb[43].mxu0 }
0x1108   : > { %8791 = vst.msk [vmem:[%s13754_s25 + $0x20] sm:$0xff] %vm344_vm0, %v8775_v46  ;;  %v8776_v38 = vadd.f32 %v9126_v11, %v8704_v39 }
0x1109   : > { %8794 = vst.msk [vmem:[%s13754_s25 + $0x38] sm:$0xff] %vm344_vm0, %v8778_v43 }
0x110a   : > { %8792 = vst.msk [vmem:[%s13754_s25 + $0x28] sm:$0xff] %vm344_vm0, %v8776_v38 }
0x116b   : > { %v9965_v62 = vpop.f32.mrb[44].mxu0 }
0x116c   : > { %v8781_v47 = vadd.f32 %v9965_v62, %v9126_v11  ;;  %v8717_v30 = vpop.f32.mrb[45].mxu0 }
0x116d   : > { %v8779_v35 = vadd.f32 %v9126_v11, %v8717_v30  ;;  %v9966_v37 = vpop.f32.mrb[46].mxu0 }
0x116e   : > { %8797 = vst.msk [vmem:[%s13754_s25 + $0x50] sm:$0xff] %vm344_vm0, %v8781_v47  ;;  %v8782_v27 = vadd.f32 %v9966_v37, %v9126_v11  ;;  %v8720_v9 = vpop.f32.mrb[47].mxu0 }
0x116f   : > { %8795 = vst.msk [vmem:[%s13754_s25 + $0x40] sm:$0xff] %vm344_vm0, %v8779_v35  ;;  %v8780_v17 = vadd.f32 %v9126_v11, %v8720_v9 }
0x1170   : > { %8798 = vst.msk [vmem:[%s13754_s25 + $0x58] sm:$0xff] %vm344_vm0, %v8782_v27 }
0x1171   : > { %8796 = vst.msk [vmem:[%s13754_s25 + $0x48] sm:$0xff] %vm344_vm0, %v8780_v17 }
0x1173   : > { %v9969_v6 = vpop.f32.mrb[48].mxu0 }
0x1174   : > { %v8785_v29 = vadd.f32 %v9969_v6, %v9126_v11  ;;  %v8733_v23 = vpop.f32.mrb[49].mxu0 }
0x1175   : > { %v8783_v51 = vadd.f32 %v9126_v11, %v8733_v23  ;;  %v9970_v14 = vpop.f32.mrb[50].mxu0 }
0x1176   : > { %8801 = vst.msk [vmem:[%s13754_s25 + $0x70] sm:$0xff] %vm344_vm0, %v8785_v29  ;;  %v8786_v21 = vadd.f32 %v9970_v14, %v9126_v11  ;;  %v8736_v24 = vpop.f32.mrb[51].mxu0 }
0x1177   : > { %8799 = vst.msk [vmem:[%s13754_s25 + $0x60] sm:$0xff] %vm344_vm0, %v8783_v51  ;;  %v8784_v36 = vadd.f32 %v9126_v11, %v8736_v24 }
0x1178   : > { %8802 = vst.msk [vmem:[%s13754_s25 + $0x78] sm:$0xff] %vm344_vm0, %v8786_v21 }
0x1179   : > { %8800 = vst.msk [vmem:[%s13754_s25 + $0x68] sm:$0xff] %vm344_vm0, %v8784_v36 }
0x117a PF: > { %s18_s24 = sadd.s32 1, %s11236_s24  }
0x117b   : > { %p15_p1 = scmp.ge.s32.totalorder %s18_s24, 4  }
0x117d   :  { %17 = sbr.rel (!%p15_p1) target bundleno = 1 (0x1), region = 86 }
0x1184   :  { %8825 = vsyncpa [#allocation3], 1 }
0x1185   :  { %8827 = vsyncpa [#allocation3 + $0x1], 1 }

</bundles_post_ra>
